<compile_context>
chip_gen: v7x
topology: tpu7x:2x2x1
jax: 0.10.0
libtpu: 0.0.40
codegen_flags: <defaults>
</compile_context>

<pallas_src>
import functools
import math

import jax
import jax.numpy as jnp
from jax import lax
from jax.experimental import pallas as pl
from jax.experimental.pallas import tpu as pltpu

LN_EPS = 1e-5


def _vmem_limit_bytes():
    # Raise the scoped VMEM limit above the default while leaving headroom
    # below physical capacity (64 MiB/TC on v7x, 128 MiB on v5e/v6e).
    try:
        cap = pltpu.get_tpu_info().vmem_capacity_bytes
        return int(cap * 3 // 4)
    except Exception:
        return 48 * 1024 * 1024


def _pick_chunk(total, cap):
    """Largest lane-aligned chunk <= cap dividing `total` (falls back to total)."""
    if total <= cap:
        return total
    for c in range(cap, 127, -128):
        if total % c == 0:
            return c
    return total


def _pick_batch_block(batch, seq):
    """Batch rows folded per grid step (targets M = bb*S >= 128 for the MXU)."""
    target = max(1, 128 // max(seq, 1))
    bb = max(1, min(batch, target))
    while batch % bb:
        bb -= 1
    return bb


def _pick_vocab_tile(vocab):
    # Generation-aware cap: smaller vocab tiles on v7x (64 MiB VMEM/TC).
    cap = 4096 if _vmem_limit_bytes() > 64 * 1024 * 1024 else 2048
    return _pick_chunk(vocab, cap)


def _layer_norm(x, w, b):
    # All LayerNorm math in f32 (v5e VPU/EUP has no bf16 path).
    mu = jnp.mean(x, axis=-1, keepdims=True)
    var = jnp.mean((x - mu) ** 2, axis=-1, keepdims=True)
    return (x - mu) * lax.rsqrt(var + LN_EPS) * w + b


# ----------------------------------------------------------------------------
# Pallas kernels
# ----------------------------------------------------------------------------
def transformer_layer_kernel(x_ref,
                             ln1_w, ln1_b, wqkv, bqkv, wo, bo,
                             ln2_w, ln2_b, w1, b1, w2, b2,
                             out_ref, *,
                             num_heads, head_dim, batch_block, kv_chunk, ffn_chunk):
    """One pre-LN OPT transformer layer for `batch_block` batch rows."""
    bb = batch_block
    S = x_ref.shape[1]
    H = x_ref.shape[2]
    F = w1.shape[1]
    M = bb * S

    # fold batch rows into the matmul M dimension
    x = x_ref[...].reshape(M, H).astype(jnp.float32)

    # ---- self-attention block (pre-LN) ----
    h = _layer_norm(x, ln1_w[...], ln1_b[...]).astype(jnp.bfloat16)
    # fused QKV projection (1/sqrt(head_dim) already folded into the Q weights)
    qkv = jnp.dot(h, wqkv[...], preferred_element_type=jnp.float32) + bqkv[...]
    q, k, v = qkv[:, :H], qkv[:, H:2 * H], qkv[:, 2 * H:]

    ctx_rows = []
    for b in range(bb):
        r0 = b * S

        def heads(t):  # (S, H) -> (nh, S, hd)
            return jnp.swapaxes(t[r0:r0 + S].reshape(S, num_heads, head_dim), 0, 1)
        # TODO(synk): try pltpu.einshape for the head split/merge relayouts.

        qh = heads(q).astype(jnp.bfloat16)
        kh = heads(k).astype(jnp.bfloat16)
        vh = heads(v).astype(jnp.bfloat16)

        # online-softmax (flash) accumulation over causal KV chunks
        m_i = jnp.full((num_heads, S, 1), -jnp.inf, jnp.float32)
        l_i = jnp.zeros((num_heads, S, 1), jnp.float32)
        acc = jnp.zeros((num_heads, S, head_dim), jnp.float32)
        row_ids = lax.broadcasted_iota(jnp.int32, (S, kv_chunk), 0)
        for c0 in range(0, S, kv_chunk):
            k_t = kh[:, c0:c0 + kv_chunk, :]
            v_t = vh[:, c0:c0 + kv_chunk, :]
            s = jnp.einsum('nqd,nkd->nqk', qh, k_t,
                           preferred_element_type=jnp.float32)
            col_ids = c0 + lax.broadcasted_iota(jnp.int32, (S, kv_chunk), 1)
            s = jnp.where((col_ids <= row_ids)[None, :, :], s, -1e30)  # causal mask
            m_new = jnp.maximum(m_i, jnp.max(s, axis=-1, keepdims=True))
            alpha = jnp.exp(m_i - m_new)
            p = jnp.exp(s - m_new)
            l_i = alpha * l_i + jnp.sum(p, axis=-1, keepdims=True)
            acc = alpha * acc + jnp.einsum('nqk,nkd->nqd', p.astype(jnp.bfloat16),
                                           v_t, preferred_element_type=jnp.float32)
            m_i = m_new
        o = acc * pl.reciprocal(l_i, approx=True)          # (nh, S, hd) f32
        ctx_rows.append(jnp.swapaxes(o, 0, 1).reshape(S, H))

    ctx = ctx_rows[0] if bb == 1 else jnp.concatenate(ctx_rows, axis=0)   # (M, H)
    attn = jnp.dot(ctx.astype(jnp.bfloat16), wo[...],
                   preferred_element_type=jnp.float32) + bo[...]
    x = x + attn

    # ---- feed-forward block (pre-LN, ReLU as in OPT), chunked over F ----
    h2 = _layer_norm(x, ln2_w[...], ln2_b[...]).astype(jnp.bfloat16)
    ffn = None
    for c0 in range(0, F, ffn_chunk):
        f = jnp.dot(h2, w1[:, c0:c0 + ffn_chunk],
                    preferred_element_type=jnp.float32) + b1[:, c0:c0 + ffn_chunk]
        f = jnp.maximum(f, 0.0).astype(jnp.bfloat16)
        part = jnp.dot(f, w2[c0:c0 + ffn_chunk, :],
                       preferred_element_type=jnp.float32)
        ffn = part if ffn is None else ffn + part
    x = x + ffn + b2[...]

    out_ref[...] = x.reshape(bb, S, H).astype(out_ref.dtype)


def final_kernel(x_ref, ln_w, ln_b, embt_ref, out_ref, h_scr):
    """Final LayerNorm (hoisted, once per batch row) + tied-embedding logits tile."""
    @pl.when(pl.program_id(1) == 0)
    def _():
        x = x_ref[0].astype(jnp.float32)
        h_scr[...] = _layer_norm(x, ln_w[...], ln_b[...]).astype(jnp.bfloat16)
    # logits tile = h @ emb_t_tile : plain (S,H)@(H,tile_v), pre-transposed RHS
    out_ref[0] = jnp.dot(h_scr[...], embt_ref[...],
                         preferred_element_type=jnp.float32)


# ----------------------------------------------------------------------------
# Wrappers around pallas_call
# ----------------------------------------------------------------------------
def _const_spec(shape):
    """Grid-invariant operand: single-buffered (double-buffering buys nothing)."""
    index_map = lambda *_: (0,) * len(shape)
    try:
        return pl.BlockSpec(shape, index_map, pipeline_mode=pl.Buffered(1))
    except Exception:
        return pl.BlockSpec(shape, index_map)


def run_layer(x, lp, num_heads, head_dim, batch_block):
    B, S, H = x.shape
    F = lp["w1"].shape[1]
    bb = batch_block
    kernel = functools.partial(
        transformer_layer_kernel,
        num_heads=num_heads, head_dim=head_dim, batch_block=bb,
        kv_chunk=_pick_chunk(S, 512), ffn_chunk=_pick_chunk(F, 2048))
    in_specs = [
        pl.BlockSpec((bb, S, H), lambda g: (g, 0, 0)),       # x (bf16 residual)
        _const_spec((1, H)), _const_spec((1, H)),            # ln1 w, b
        _const_spec((H, 3 * H)), _const_spec((1, 3 * H)),    # wqkv, bqkv (fused)
        _const_spec((H, H)), _const_spec((1, H)),            # wo, bo
        _const_spec((1, H)), _const_spec((1, H)),            # ln2 w, b
        _const_spec((H, F)), _const_spec((1, F)),            # w1, b1
        _const_spec((F, H)), _const_spec((1, H)),            # w2, b2
    ]
    return pl.pallas_call(
        kernel,
        out_shape=jax.ShapeDtypeStruct((B, S, H), jnp.bfloat16),
        grid=(B // bb,),
        in_specs=in_specs,
        out_specs=pl.BlockSpec((bb, S, H), lambda g: (g, 0, 0)),
        compiler_params=pltpu.CompilerParams(
            dimension_semantics=("parallel",),
            vmem_limit_bytes=_vmem_limit_bytes()),
    )(x,
      lp["ln1_w"], lp["ln1_b"], lp["wqkv"], lp["bqkv"], lp["wo"], lp["bo"],
      lp["ln2_w"], lp["ln2_b"], lp["w1"], lp["b1"], lp["w2"], lp["b2"])


def run_final(x, ln_w, ln_b, emb_t):
    B, S, H = x.shape
    V = emb_t.shape[1]
    tile_v = _pick_vocab_tile(V)
    n_v = V // tile_v
    return pl.pallas_call(
        final_kernel,
        out_shape=jax.ShapeDtypeStruct((B, S, V), jnp.float32),
        grid=(B, n_v),   # vocab innermost ("arbitrary") so the LN scratch is reused
        in_specs=[
            pl.BlockSpec((1, S, H), lambda b, j: (b, 0, 0)),
            _const_spec((1, H)), _const_spec((1, H)),
            pl.BlockSpec((H, tile_v), lambda b, j: (0, j)),   # pre-transposed table
        ],
        out_specs=pl.BlockSpec((1, S, tile_v), lambda b, j: (b, 0, j)),
        scratch_shapes=[pltpu.VMEM((S, H), jnp.bfloat16)],
        compiler_params=pltpu.CompilerParams(
            dimension_semantics=("parallel", "arbitrary"),
            vmem_limit_bytes=_vmem_limit_bytes()),
    )(x, ln_w, ln_b, emb_t)


# ----------------------------------------------------------------------------
# Model: parameters + forward
# ----------------------------------------------------------------------------
def init_params(key, *, vocab, hidden, heads, ffn, layers, max_pos):
    ks = jax.random.split(key, 4 + layers)
    std = 0.02
    bf = jnp.bfloat16
    head_dim = hidden // heads
    emb = (jax.random.normal(ks[0], (vocab, hidden), jnp.float32) * std).astype(bf)
    p = {
        "num_heads": heads,
        "head_dim": head_dim,
        "embed_tokens": emb,                          # (V, H) for the gather
        "embed_tokens_t": jnp.transpose(emb),         # (H, V) for the logits proj
        "embed_positions": (jax.random.normal(ks[1], (max_pos, hidden),
                                              jnp.float32) * std).astype(bf),
        "final_ln_w": jnp.ones((1, hidden), jnp.float32),
        "final_ln_b": jnp.zeros((1, hidden), jnp.float32),
        "layers": [],
    }
    scale = 1.0 / math.sqrt(head_dim)
    for li in range(layers):
        lk = jax.random.split(ks[4 + li], 6)
        # fold 1/sqrt(head_dim) into the Q weights (bias is zero so unaffected)
        wq = jax.random.normal(lk[0], (hidden, hidden), jnp.float32) * std * scale
        wk = jax.random.normal(lk[1], (hidden, hidden), jnp.float32) * std
        wv = jax.random.normal(lk[2], (hidden, hidden), jnp.float32) * std
        lp = {
            "ln1_w": jnp.ones((1, hidden), jnp.float32),
            "ln1_b": jnp.zeros((1, hidden), jnp.float32),
            "wqkv": jnp.concatenate([wq, wk, wv], axis=1).astype(bf),   # (H, 3H)
            "bqkv": jnp.zeros((1, 3 * hidden), jnp.float32),
            "wo": (jax.random.normal(lk[3], (hidden, hidden), jnp.float32) * std).astype(bf),
            "bo": jnp.zeros((1, hidden), jnp.float32),
            "ln2_w": jnp.ones((1, hidden), jnp.float32),
            "ln2_b": jnp.zeros((1, hidden), jnp.float32),
            "w1": (jax.random.normal(lk[4], (hidden, ffn), jnp.float32) * std).astype(bf),
            "b1": jnp.zeros((1, ffn), jnp.float32),
            "w2": (jax.random.normal(lk[5], (ffn, hidden), jnp.float32) * std).astype(bf),
            "b2": jnp.zeros((1, hidden), jnp.float32),
        }
        p["layers"].append(lp)
    return p


def opt_forward(params, input_ids):
    B, S = input_ids.shape
    # Embedding gathers are glue (data-dependent gather stays in plain JAX).
    tok = params["embed_tokens"][input_ids].astype(jnp.float32)   # (B, S, H)
    pos_ids = jnp.arange(S)
    # TODO(synk): HF's OPTLearnedPositionalEmbedding adds a +2 position offset and
    # indexes by attention-mask cumsum; the custom LearnedPositionalEmbedding in the
    # reference is assumed offset-free.
    pos = params["embed_positions"][pos_ids].astype(jnp.float32)[None, :, :]
    h = (tok + pos).astype(jnp.bfloat16)          # bf16 residual stream between layers
    bb = _pick_batch_block(B, S)
    for lp in params["layers"]:
        h = run_layer(h, lp, params["num_heads"], params["head_dim"], bb)
    return run_final(h, params["final_ln_w"], params["final_ln_b"],
                     params["embed_tokens_t"])    # (B, S, V) f32 logits


if __name__ == "__main__":
    # Small OPT-like config (head_dim = 128 so head splits stay lane-aligned).
    B, S = 2, 8
    VOCAB, HIDDEN, HEADS, FFN, LAYERS, MAX_POS = 512, 256, 2, 1024, 2, 32

    key = jax.random.PRNGKey(0)
    pkey, ikey = jax.random.split(key)
    params = init_params(pkey, vocab=VOCAB, hidden=HIDDEN, heads=HEADS,
                         ffn=FFN, layers=LAYERS, max_pos=MAX_POS)
    input_ids = jax.random.randint(ikey, (B, S), 0, VOCAB, dtype=jnp.int32)

    logits = opt_forward(params, input_ids)
    logits = jax.block_until_ready(logits)
    assert logits.shape == (B, S, VOCAB)
    assert bool(jnp.all(jnp.isfinite(logits)))
    print("KERNEL_OK")
</pallas_src>

<mosaic_0001>
module attributes {stable_mosaic.version = 11 : i64} {
  func.func @transformer_layer_kernel(%arg0: i32, %arg1: memref<2x8x256xbf16, #tpu.memory_space<vmem>>, %arg2: memref<1x256xf32, #tpu.memory_space<vmem>>, %arg3: memref<1x256xf32, #tpu.memory_space<vmem>>, %arg4: memref<256x768xbf16, #tpu.memory_space<vmem>>, %arg5: memref<1x768xf32, #tpu.memory_space<vmem>>, %arg6: memref<256x256xbf16, #tpu.memory_space<vmem>>, %arg7: memref<1x256xf32, #tpu.memory_space<vmem>>, %arg8: memref<1x256xf32, #tpu.memory_space<vmem>>, %arg9: memref<1x256xf32, #tpu.memory_space<vmem>>, %arg10: memref<256x1024xbf16, #tpu.memory_space<vmem>>, %arg11: memref<1x1024xf32, #tpu.memory_space<vmem>>, %arg12: memref<1024x256xbf16, #tpu.memory_space<vmem>>, %arg13: memref<1x256xf32, #tpu.memory_space<vmem>>, %arg14: memref<2x8x256xbf16, #tpu.memory_space<vmem>>) attributes {dimension_semantics = [#tpu.dimension_semantics<parallel>], iteration_bounds = array<i64: 1>, scalar_prefetch = 0 : i64, scratch_operands = 0 : i64, tpu.core_type = #tpu.core_type<tc>, window_params = [{transform_indices = @transform_0, window_bounds = array<i64: 2, 8, 256>}, {pipeline_mode = #tpu.pipeline_mode<synchronous>, transform_indices = @transform_1, window_bounds = array<i64: 1, 256>}, {pipeline_mode = #tpu.pipeline_mode<synchronous>, transform_indices = @transform_2, window_bounds = array<i64: 1, 256>}, {pipeline_mode = #tpu.pipeline_mode<synchronous>, transform_indices = @transform_3, window_bounds = array<i64: 256, 768>}, {pipeline_mode = #tpu.pipeline_mode<synchronous>, transform_indices = @transform_4, window_bounds = array<i64: 1, 768>}, {pipeline_mode = #tpu.pipeline_mode<synchronous>, transform_indices = @transform_5, window_bounds = array<i64: 256, 256>}, {pipeline_mode = #tpu.pipeline_mode<synchronous>, transform_indices = @transform_6, window_bounds = array<i64: 1, 256>}, {pipeline_mode = #tpu.pipeline_mode<synchronous>, transform_indices = @transform_7, window_bounds = array<i64: 1, 256>}, {pipeline_mode = #tpu.pipeline_mode<synchronous>, transform_indices = @transform_8, window_bounds = array<i64: 1, 256>}, {pipeline_mode = #tpu.pipeline_mode<synchronous>, transform_indices = @transform_9, window_bounds = array<i64: 256, 1024>}, {pipeline_mode = #tpu.pipeline_mode<synchronous>, transform_indices = @transform_10, window_bounds = array<i64: 1, 1024>}, {pipeline_mode = #tpu.pipeline_mode<synchronous>, transform_indices = @transform_11, window_bounds = array<i64: 1024, 256>}, {pipeline_mode = #tpu.pipeline_mode<synchronous>, transform_indices = @transform_12, window_bounds = array<i64: 1, 256>}, {transform_indices = @transform_13, window_bounds = array<i64: 2, 8, 256>}]} {
    %c0 = arith.constant 0 : index
    %c0_0 = arith.constant 0 : index
    %c0_1 = arith.constant 0 : index
    %0 = vector.load %arg1[%c0, %c0_0, %c0_1] : memref<2x8x256xbf16, #tpu.memory_space<vmem>>, vector<2x8x256xbf16>
    %1 = vector.shape_cast %0 : vector<2x8x256xbf16> to vector<16x256xbf16>
    %2 = arith.extf %1 : vector<16x256xbf16> to vector<16x256xf32>
    %c0_2 = arith.constant 0 : index
    %c0_3 = arith.constant 0 : index
    %3 = vector.load %arg2[%c0_2, %c0_3] : memref<1x256xf32, #tpu.memory_space<vmem>>, vector<1x256xf32>
    %c0_4 = arith.constant 0 : index
    %c0_5 = arith.constant 0 : index
    %4 = vector.load %arg3[%c0_4, %c0_5] : memref<1x256xf32, #tpu.memory_space<vmem>>, vector<1x256xf32>
    %cst = arith.constant dense<0.000000e+00> : vector<16xf32>
    %5 = vector.multi_reduction <add>, %2, %cst [1] : vector<16x256xf32> to vector<16xf32>
    %6 = vector.shape_cast %5 : vector<16xf32> to vector<16x1xf32>
    %cst_6 = arith.constant 2.560000e+02 : f32
    %7 = vector.broadcast %cst_6 : f32 to vector<16x1xf32>
    %8 = arith.divf %6, %7 : vector<16x1xf32>
    %9 = vector.broadcast %8 : vector<16x1xf32> to vector<16x256xf32>
    %10 = arith.subf %2, %9 : vector<16x256xf32>
    %11 = arith.mulf %10, %10 : vector<16x256xf32>
    %cst_7 = arith.constant dense<0.000000e+00> : vector<16xf32>
    %12 = vector.multi_reduction <add>, %11, %cst_7 [1] : vector<16x256xf32> to vector<16xf32>
    %13 = vector.shape_cast %12 : vector<16xf32> to vector<16x1xf32>
    %cst_8 = arith.constant 2.560000e+02 : f32
    %14 = vector.broadcast %cst_8 : f32 to vector<16x1xf32>
    %15 = arith.divf %13, %14 : vector<16x1xf32>
    %16 = vector.broadcast %8 : vector<16x1xf32> to vector<16x256xf32>
    %17 = arith.subf %2, %16 : vector<16x256xf32>
    %cst_9 = arith.constant 9.99999974E-6 : f32
    %18 = vector.broadcast %cst_9 : f32 to vector<16x1xf32>
    %19 = arith.addf %15, %18 : vector<16x1xf32>
    %20 = math.rsqrt %19 : vector<16x1xf32>
    %21 = vector.broadcast %20 : vector<16x1xf32> to vector<16x256xf32>
    %22 = arith.mulf %17, %21 : vector<16x256xf32>
    %23 = vector.broadcast %3 : vector<1x256xf32> to vector<16x256xf32>
    %24 = arith.mulf %22, %23 : vector<16x256xf32>
    %25 = vector.broadcast %4 : vector<1x256xf32> to vector<16x256xf32>
    %26 = arith.addf %24, %25 : vector<16x256xf32>
    %27 = arith.truncf %26 : vector<16x256xf32> to vector<16x256xbf16>
    %c0_10 = arith.constant 0 : index
    %c0_11 = arith.constant 0 : index
    %28 = vector.load %arg4[%c0_10, %c0_11] : memref<256x768xbf16, #tpu.memory_space<vmem>>, vector<256x768xbf16>
    %cst_12 = arith.constant dense<0.000000e+00> : vector<16x768xf32>
    %29 = tpu.matmul %27, %28, %cst_12 {dimension_numbers = #tpu.dot_dimension_numbers<[1], [0], [0], [1], [0, 0, 1, 1], [], []>} : vector<16x256xbf16>, vector<256x768xbf16>, vector<16x768xf32> -> vector<16x768xf32>
    %c0_13 = arith.constant 0 : index
    %c0_14 = arith.constant 0 : index
    %30 = vector.load %arg5[%c0_13, %c0_14] : memref<1x768xf32, #tpu.memory_space<vmem>>, vector<1x768xf32>
    %31 = vector.broadcast %30 : vector<1x768xf32> to vector<16x768xf32>
    %32 = arith.addf %29, %31 : vector<16x768xf32>
    %33 = vector.extract_strided_slice %32 {offsets = [0, 0], sizes = [16, 256], strides = [1, 1]} : vector<16x768xf32> to vector<16x256xf32>
    %34 = vector.extract_strided_slice %32 {offsets = [0, 256], sizes = [16, 256], strides = [1, 1]} : vector<16x768xf32> to vector<16x256xf32>
    %35 = vector.extract_strided_slice %32 {offsets = [0, 512], sizes = [16, 256], strides = [1, 1]} : vector<16x768xf32> to vector<16x256xf32>
    %36 = vector.extract_strided_slice %33 {offsets = [0, 0], sizes = [8, 256], strides = [1, 1]} : vector<16x256xf32> to vector<8x256xf32>
    %37 = vector.shape_cast %36 : vector<8x256xf32> to vector<8x2x128xf32>
    %38 = tpu.transpose %37, [1, 0, 2] : vector<8x2x128xf32> -> vector<2x8x128xf32>
    %39 = arith.truncf %38 : vector<2x8x128xf32> to vector<2x8x128xbf16>
    %40 = vector.extract_strided_slice %34 {offsets = [0, 0], sizes = [8, 256], strides = [1, 1]} : vector<16x256xf32> to vector<8x256xf32>
    %41 = vector.shape_cast %40 : vector<8x256xf32> to vector<8x2x128xf32>
    %42 = tpu.transpose %41, [1, 0, 2] : vector<8x2x128xf32> -> vector<2x8x128xf32>
    %43 = arith.truncf %42 : vector<2x8x128xf32> to vector<2x8x128xbf16>
    %44 = vector.extract_strided_slice %35 {offsets = [0, 0], sizes = [8, 256], strides = [1, 1]} : vector<16x256xf32> to vector<8x256xf32>
    %45 = vector.shape_cast %44 : vector<8x256xf32> to vector<8x2x128xf32>
    %46 = tpu.transpose %45, [1, 0, 2] : vector<8x2x128xf32> -> vector<2x8x128xf32>
    %47 = arith.truncf %46 : vector<2x8x128xf32> to vector<2x8x128xbf16>
    %cst_15 = arith.constant 0xFF800000 : f32
    %48 = vector.broadcast %cst_15 : f32 to vector<2x8x1xf32>
    %cst_16 = arith.constant 0.000000e+00 : f32
    %49 = vector.broadcast %cst_16 : f32 to vector<2x8x1xf32>
    %cst_17 = arith.constant 0.000000e+00 : f32
    %50 = vector.broadcast %cst_17 : f32 to vector<2x8x128xf32>
    %51 = tpu.iota {dimensions = array<i32: 0>} : vector<8x8xi32>
    "tpu.trace_start"() <{level = 10 : i32, message = "nqd,nkd->nqk"}> : () -> ()
    %cst_18 = arith.constant dense<0.000000e+00> : vector<2x8x8xf32>
    %52 = tpu.matmul %39, %43, %cst_18 {dimension_numbers = #tpu.dot_dimension_numbers<[2], [2], [1], [1], [0, 0, 0, 1, 1, 1], [0], [0]>} : vector<2x8x128xbf16>, vector<2x8x128xbf16>, vector<2x8x8xf32> -> vector<2x8x8xf32>
    "tpu.trace_stop"() : () -> ()
    %53 = tpu.iota {dimensions = array<i32: 1>} : vector<8x8xi32>
    %c0_i32 = arith.constant 0 : i32
    %54 = vector.broadcast %c0_i32 : i32 to vector<8x8xi32>
    %55 = arith.addi %54, %53 : vector<8x8xi32>
    %56 = arith.cmpi sle, %55, %51 : vector<8x8xi32>
    %57 = vector.shape_cast %56 : vector<8x8xi1> to vector<1x8x8xi1>
    %cst_19 = arith.constant -1.000000e+30 : f32
    %58 = vector.shape_cast %57 : vector<1x8x8xi1> to vector<1x8x8xi1>
    %59 = vector.broadcast %58 : vector<1x8x8xi1> to vector<2x8x8xi1>
    %60 = vector.broadcast %cst_19 : f32 to vector<2x8x8xf32>
    %61 = arith.select %59, %52, %60 : vector<2x8x8xi1>, vector<2x8x8xf32>
    %cst_20 = arith.constant dense<0xFF800000> : vector<2x8xf32>
    %62 = vector.multi_reduction <maximumf>, %61, %cst_20 [2] : vector<2x8x8xf32> to vector<2x8xf32>
    %63 = vector.shape_cast %62 : vector<2x8xf32> to vector<2x8x1xf32>
    %64 = arith.maximumf %48, %63 : vector<2x8x1xf32>
    %65 = arith.subf %48, %64 : vector<2x8x1xf32>
    %66 = math.exp %65 : vector<2x8x1xf32>
    %67 = vector.broadcast %64 : vector<2x8x1xf32> to vector<2x8x8xf32>
    %68 = arith.subf %61, %67 : vector<2x8x8xf32>
    %69 = math.exp %68 : vector<2x8x8xf32>
    %70 = arith.mulf %66, %49 : vector<2x8x1xf32>
    %cst_21 = arith.constant dense<0.000000e+00> : vector<2x8xf32>
    %71 = vector.multi_reduction <add>, %69, %cst_21 [2] : vector<2x8x8xf32> to vector<2x8xf32>
    %72 = vector.shape_cast %71 : vector<2x8xf32> to vector<2x8x1xf32>
    %73 = arith.addf %70, %72 : vector<2x8x1xf32>
    %74 = vector.broadcast %66 : vector<2x8x1xf32> to vector<2x8x128xf32>
    %75 = arith.mulf %74, %50 : vector<2x8x128xf32>
    %76 = arith.truncf %69 : vector<2x8x8xf32> to vector<2x8x8xbf16>
    "tpu.trace_start"() <{level = 10 : i32, message = "nqk,nkd->nqd"}> : () -> ()
    %cst_22 = arith.constant dense<0.000000e+00> : vector<2x8x128xf32>
    %77 = tpu.matmul %76, %47, %cst_22 {dimension_numbers = #tpu.dot_dimension_numbers<[2], [1], [1], [2], [0, 0, 0, 1, 1, 2], [0], [0]>} : vector<2x8x8xbf16>, vector<2x8x128xbf16>, vector<2x8x128xf32> -> vector<2x8x128xf32>
    "tpu.trace_stop"() : () -> ()
    %78 = arith.addf %75, %77 : vector<2x8x128xf32>
    %79 = tpu.reciprocal %73 {approx = true} : vector<2x8x1xf32> -> vector<2x8x1xf32>
    %80 = vector.broadcast %79 : vector<2x8x1xf32> to vector<2x8x128xf32>
    %81 = arith.mulf %78, %80 : vector<2x8x128xf32>
    %82 = tpu.transpose %81, [1, 0, 2] : vector<2x8x128xf32> -> vector<8x2x128xf32>
    %83 = vector.shape_cast %82 : vector<8x2x128xf32> to vector<8x256xf32>
    %84 = vector.extract_strided_slice %33 {offsets = [8, 0], sizes = [8, 256], strides = [1, 1]} : vector<16x256xf32> to vector<8x256xf32>
    %85 = vector.shape_cast %84 : vector<8x256xf32> to vector<8x2x128xf32>
    %86 = tpu.transpose %85, [1, 0, 2] : vector<8x2x128xf32> -> vector<2x8x128xf32>
    %87 = arith.truncf %86 : vector<2x8x128xf32> to vector<2x8x128xbf16>
    %88 = vector.extract_strided_slice %34 {offsets = [8, 0], sizes = [8, 256], strides = [1, 1]} : vector<16x256xf32> to vector<8x256xf32>
    %89 = vector.shape_cast %88 : vector<8x256xf32> to vector<8x2x128xf32>
    %90 = tpu.transpose %89, [1, 0, 2] : vector<8x2x128xf32> -> vector<2x8x128xf32>
    %91 = arith.truncf %90 : vector<2x8x128xf32> to vector<2x8x128xbf16>
    %92 = vector.extract_strided_slice %35 {offsets = [8, 0], sizes = [8, 256], strides = [1, 1]} : vector<16x256xf32> to vector<8x256xf32>
    %93 = vector.shape_cast %92 : vector<8x256xf32> to vector<8x2x128xf32>
    %94 = tpu.transpose %93, [1, 0, 2] : vector<8x2x128xf32> -> vector<2x8x128xf32>
    %95 = arith.truncf %94 : vector<2x8x128xf32> to vector<2x8x128xbf16>
    %cst_23 = arith.constant 0xFF800000 : f32
    %96 = vector.broadcast %cst_23 : f32 to vector<2x8x1xf32>
    %cst_24 = arith.constant 0.000000e+00 : f32
    %97 = vector.broadcast %cst_24 : f32 to vector<2x8x1xf32>
    %cst_25 = arith.constant 0.000000e+00 : f32
    %98 = vector.broadcast %cst_25 : f32 to vector<2x8x128xf32>
    %99 = tpu.iota {dimensions = array<i32: 0>} : vector<8x8xi32>
    "tpu.trace_start"() <{level = 10 : i32, message = "nqd,nkd->nqk"}> : () -> ()
    %cst_26 = arith.constant dense<0.000000e+00> : vector<2x8x8xf32>
    %100 = tpu.matmul %87, %91, %cst_26 {dimension_numbers = #tpu.dot_dimension_numbers<[2], [2], [1], [1], [0, 0, 0, 1, 1, 1], [0], [0]>} : vector<2x8x128xbf16>, vector<2x8x128xbf16>, vector<2x8x8xf32> -> vector<2x8x8xf32>
    "tpu.trace_stop"() : () -> ()
    %101 = tpu.iota {dimensions = array<i32: 1>} : vector<8x8xi32>
    %c0_i32_27 = arith.constant 0 : i32
    %102 = vector.broadcast %c0_i32_27 : i32 to vector<8x8xi32>
    %103 = arith.addi %102, %101 : vector<8x8xi32>
    %104 = arith.cmpi sle, %103, %99 : vector<8x8xi32>
    %105 = vector.shape_cast %104 : vector<8x8xi1> to vector<1x8x8xi1>
    %cst_28 = arith.constant -1.000000e+30 : f32
    %106 = vector.shape_cast %105 : vector<1x8x8xi1> to vector<1x8x8xi1>
    %107 = vector.broadcast %106 : vector<1x8x8xi1> to vector<2x8x8xi1>
    %108 = vector.broadcast %cst_28 : f32 to vector<2x8x8xf32>
    %109 = arith.select %107, %100, %108 : vector<2x8x8xi1>, vector<2x8x8xf32>
    %cst_29 = arith.constant dense<0xFF800000> : vector<2x8xf32>
    %110 = vector.multi_reduction <maximumf>, %109, %cst_29 [2] : vector<2x8x8xf32> to vector<2x8xf32>
    %111 = vector.shape_cast %110 : vector<2x8xf32> to vector<2x8x1xf32>
    %112 = arith.maximumf %96, %111 : vector<2x8x1xf32>
    %113 = arith.subf %96, %112 : vector<2x8x1xf32>
    %114 = math.exp %113 : vector<2x8x1xf32>
    %115 = vector.broadcast %112 : vector<2x8x1xf32> to vector<2x8x8xf32>
    %116 = arith.subf %109, %115 : vector<2x8x8xf32>
    %117 = math.exp %116 : vector<2x8x8xf32>
    %118 = arith.mulf %114, %97 : vector<2x8x1xf32>
    %cst_30 = arith.constant dense<0.000000e+00> : vector<2x8xf32>
    %119 = vector.multi_reduction <add>, %117, %cst_30 [2] : vector<2x8x8xf32> to vector<2x8xf32>
    %120 = vector.shape_cast %119 : vector<2x8xf32> to vector<2x8x1xf32>
    %121 = arith.addf %118, %120 : vector<2x8x1xf32>
    %122 = vector.broadcast %114 : vector<2x8x1xf32> to vector<2x8x128xf32>
    %123 = arith.mulf %122, %98 : vector<2x8x128xf32>
    %124 = arith.truncf %117 : vector<2x8x8xf32> to vector<2x8x8xbf16>
    "tpu.trace_start"() <{level = 10 : i32, message = "nqk,nkd->nqd"}> : () -> ()
    %cst_31 = arith.constant dense<0.000000e+00> : vector<2x8x128xf32>
    %125 = tpu.matmul %124, %95, %cst_31 {dimension_numbers = #tpu.dot_dimension_numbers<[2], [1], [1], [2], [0, 0, 0, 1, 1, 2], [0], [0]>} : vector<2x8x8xbf16>, vector<2x8x128xbf16>, vector<2x8x128xf32> -> vector<2x8x128xf32>
    "tpu.trace_stop"() : () -> ()
    %126 = arith.addf %123, %125 : vector<2x8x128xf32>
    %127 = tpu.reciprocal %121 {approx = true} : vector<2x8x1xf32> -> vector<2x8x1xf32>
    %128 = vector.broadcast %127 : vector<2x8x1xf32> to vector<2x8x128xf32>
    %129 = arith.mulf %126, %128 : vector<2x8x128xf32>
    %130 = tpu.transpose %129, [1, 0, 2] : vector<2x8x128xf32> -> vector<8x2x128xf32>
    %131 = vector.shape_cast %130 : vector<8x2x128xf32> to vector<8x256xf32>
    %132 = tpu.concatenate %83, %131 in 0 : vector<8x256xf32>, vector<8x256xf32> -> vector<16x256xf32>
    %133 = arith.truncf %132 : vector<16x256xf32> to vector<16x256xbf16>
    %c0_32 = arith.constant 0 : index
    %c0_33 = arith.constant 0 : index
    %134 = vector.load %arg6[%c0_32, %c0_33] : memref<256x256xbf16, #tpu.memory_space<vmem>>, vector<256x256xbf16>
    %cst_34 = arith.constant dense<0.000000e+00> : vector<16x256xf32>
    %135 = tpu.matmul %133, %134, %cst_34 {dimension_numbers = #tpu.dot_dimension_numbers<[1], [0], [0], [1], [0, 0, 1, 1], [], []>} : vector<16x256xbf16>, vector<256x256xbf16>, vector<16x256xf32> -> vector<16x256xf32>
    %c0_35 = arith.constant 0 : index
    %c0_36 = arith.constant 0 : index
    %136 = vector.load %arg7[%c0_35, %c0_36] : memref<1x256xf32, #tpu.memory_space<vmem>>, vector<1x256xf32>
    %137 = vector.broadcast %136 : vector<1x256xf32> to vector<16x256xf32>
    %138 = arith.addf %135, %137 : vector<16x256xf32>
    %139 = arith.addf %2, %138 : vector<16x256xf32>
    %c0_37 = arith.constant 0 : index
    %c0_38 = arith.constant 0 : index
    %140 = vector.load %arg8[%c0_37, %c0_38] : memref<1x256xf32, #tpu.memory_space<vmem>>, vector<1x256xf32>
    %c0_39 = arith.constant 0 : index
    %c0_40 = arith.constant 0 : index
    %141 = vector.load %arg9[%c0_39, %c0_40] : memref<1x256xf32, #tpu.memory_space<vmem>>, vector<1x256xf32>
    %cst_41 = arith.constant dense<0.000000e+00> : vector<16xf32>
    %142 = vector.multi_reduction <add>, %139, %cst_41 [1] : vector<16x256xf32> to vector<16xf32>
    %143 = vector.shape_cast %142 : vector<16xf32> to vector<16x1xf32>
    %cst_42 = arith.constant 2.560000e+02 : f32
    %144 = vector.broadcast %cst_42 : f32 to vector<16x1xf32>
    %145 = arith.divf %143, %144 : vector<16x1xf32>
    %146 = vector.broadcast %145 : vector<16x1xf32> to vector<16x256xf32>
    %147 = arith.subf %139, %146 : vector<16x256xf32>
    %148 = arith.mulf %147, %147 : vector<16x256xf32>
    %cst_43 = arith.constant dense<0.000000e+00> : vector<16xf32>
    %149 = vector.multi_reduction <add>, %148, %cst_43 [1] : vector<16x256xf32> to vector<16xf32>
    %150 = vector.shape_cast %149 : vector<16xf32> to vector<16x1xf32>
    %cst_44 = arith.constant 2.560000e+02 : f32
    %151 = vector.broadcast %cst_44 : f32 to vector<16x1xf32>
    %152 = arith.divf %150, %151 : vector<16x1xf32>
    %153 = vector.broadcast %145 : vector<16x1xf32> to vector<16x256xf32>
    %154 = arith.subf %139, %153 : vector<16x256xf32>
    %cst_45 = arith.constant 9.99999974E-6 : f32
    %155 = vector.broadcast %cst_45 : f32 to vector<16x1xf32>
    %156 = arith.addf %152, %155 : vector<16x1xf32>
    %157 = math.rsqrt %156 : vector<16x1xf32>
    %158 = vector.broadcast %157 : vector<16x1xf32> to vector<16x256xf32>
    %159 = arith.mulf %154, %158 : vector<16x256xf32>
    %160 = vector.broadcast %140 : vector<1x256xf32> to vector<16x256xf32>
    %161 = arith.mulf %159, %160 : vector<16x256xf32>
    %162 = vector.broadcast %141 : vector<1x256xf32> to vector<16x256xf32>
    %163 = arith.addf %161, %162 : vector<16x256xf32>
    %164 = arith.truncf %163 : vector<16x256xf32> to vector<16x256xbf16>
    %c0_46 = arith.constant 0 : index
    %c0_47 = arith.constant 0 : index
    %165 = vector.load %arg10[%c0_46, %c0_47] : memref<256x1024xbf16, #tpu.memory_space<vmem>>, vector<256x1024xbf16>
    %cst_48 = arith.constant dense<0.000000e+00> : vector<16x1024xf32>
    %166 = tpu.matmul %164, %165, %cst_48 {dimension_numbers = #tpu.dot_dimension_numbers<[1], [0], [0], [1], [0, 0, 1, 1], [], []>} : vector<16x256xbf16>, vector<256x1024xbf16>, vector<16x1024xf32> -> vector<16x1024xf32>
    %c0_49 = arith.constant 0 : index
    %c0_50 = arith.constant 0 : index
    %167 = vector.load %arg11[%c0_49, %c0_50] : memref<1x1024xf32, #tpu.memory_space<vmem>>, vector<1x1024xf32>
    %168 = vector.broadcast %167 : vector<1x1024xf32> to vector<16x1024xf32>
    %169 = arith.addf %166, %168 : vector<16x1024xf32>
    %cst_51 = arith.constant 0.000000e+00 : f32
    %170 = vector.broadcast %cst_51 : f32 to vector<16x1024xf32>
    %171 = arith.maximumf %169, %170 : vector<16x1024xf32>
    %172 = arith.truncf %171 : vector<16x1024xf32> to vector<16x1024xbf16>
    %c0_52 = arith.constant 0 : index
    %c0_53 = arith.constant 0 : index
    %173 = vector.load %arg12[%c0_52, %c0_53] : memref<1024x256xbf16, #tpu.memory_space<vmem>>, vector<1024x256xbf16>
    %cst_54 = arith.constant dense<0.000000e+00> : vector<16x256xf32>
    %174 = tpu.matmul %172, %173, %cst_54 {dimension_numbers = #tpu.dot_dimension_numbers<[1], [0], [0], [1], [0, 0, 1, 1], [], []>} : vector<16x1024xbf16>, vector<1024x256xbf16>, vector<16x256xf32> -> vector<16x256xf32>
    %175 = arith.addf %139, %174 : vector<16x256xf32>
    %c0_55 = arith.constant 0 : index
    %c0_56 = arith.constant 0 : index
    %176 = vector.load %arg13[%c0_55, %c0_56] : memref<1x256xf32, #tpu.memory_space<vmem>>, vector<1x256xf32>
    %177 = vector.broadcast %176 : vector<1x256xf32> to vector<16x256xf32>
    %178 = arith.addf %175, %177 : vector<16x256xf32>
    %179 = vector.shape_cast %178 : vector<16x256xf32> to vector<2x8x256xf32>
    %180 = arith.truncf %179 : vector<2x8x256xf32> to vector<2x8x256xbf16>
    %c0_57 = arith.constant 0 : index
    %c0_58 = arith.constant 0 : index
    %c0_59 = arith.constant 0 : index
    %181 = vector.load %arg14[%c0_57, %c0_58, %c0_59] : memref<2x8x256xbf16, #tpu.memory_space<vmem>>, vector<2x8x256xbf16>
    tpu.vector_store %arg14[%c0_57, %c0_58, %c0_59], %180 {strides = array<i32>} : memref<2x8x256xbf16, #tpu.memory_space<vmem>>, vector<2x8x256xbf16>,
    return
  }
  func.func @transform_0(%arg0: i32) -> (i32, i32, i32) {
    %c0_i32 = arith.constant 0 : i32
    %c0_i32_0 = arith.constant 0 : i32
    %c0_i32_1 = arith.constant 0 : i32
    return %arg0, %c0_i32, %c0_i32_0 : i32, i32, i32
  }
  func.func @transform_1(%arg0: i32) -> (i32, i32) {
    %c0_i32 = arith.constant 0 : i32
    %c0_i32_0 = arith.constant 0 : i32
    %c0_i32_1 = arith.constant 0 : i32
    return %c0_i32, %c0_i32_0 : i32, i32
  }
  func.func @transform_2(%arg0: i32) -> (i32, i32) {
    %c0_i32 = arith.constant 0 : i32
    %c0_i32_0 = arith.constant 0 : i32
    %c0_i32_1 = arith.constant 0 : i32
    return %c0_i32, %c0_i32_0 : i32, i32
  }
  func.func @transform_3(%arg0: i32) -> (i32, i32) {
    %c0_i32 = arith.constant 0 : i32
    %c0_i32_0 = arith.constant 0 : i32
    %c0_i32_1 = arith.constant 0 : i32
    return %c0_i32, %c0_i32_0 : i32, i32
  }
  func.func @transform_4(%arg0: i32) -> (i32, i32) {
    %c0_i32 = arith.constant 0 : i32
    %c0_i32_0 = arith.constant 0 : i32
    %c0_i32_1 = arith.constant 0 : i32
    return %c0_i32, %c0_i32_0 : i32, i32
  }
  func.func @transform_5(%arg0: i32) -> (i32, i32) {
    %c0_i32 = arith.constant 0 : i32
    %c0_i32_0 = arith.constant 0 : i32
    %c0_i32_1 = arith.constant 0 : i32
    return %c0_i32, %c0_i32_0 : i32, i32
  }
  func.func @transform_6(%arg0: i32) -> (i32, i32) {
    %c0_i32 = arith.constant 0 : i32
    %c0_i32_0 = arith.constant 0 : i32
    %c0_i32_1 = arith.constant 0 : i32
    return %c0_i32, %c0_i32_0 : i32, i32
  }
  func.func @transform_7(%arg0: i32) -> (i32, i32) {
    %c0_i32 = arith.constant 0 : i32
    %c0_i32_0 = arith.constant 0 : i32
    %c0_i32_1 = arith.constant 0 : i32
    return %c0_i32, %c0_i32_0 : i32, i32
  }
  func.func @transform_8(%arg0: i32) -> (i32, i32) {
    %c0_i32 = arith.constant 0 : i32
    %c0_i32_0 = arith.constant 0 : i32
    %c0_i32_1 = arith.constant 0 : i32
    return %c0_i32, %c0_i32_0 : i32, i32
  }
  func.func @transform_9(%arg0: i32) -> (i32, i32) {
    %c0_i32 = arith.constant 0 : i32
    %c0_i32_0 = arith.constant 0 : i32
    %c0_i32_1 = arith.constant 0 : i32
    return %c0_i32, %c0_i32_0 : i32, i32
  }
  func.func @transform_10(%arg0: i32) -> (i32, i32) {
    %c0_i32 = arith.constant 0 : i32
    %c0_i32_0 = arith.constant 0 : i32
    %c0_i32_1 = arith.constant 0 : i32
    return %c0_i32, %c0_i32_0 : i32, i32
  }
  func.func @transform_11(%arg0: i32) -> (i32, i32) {
    %c0_i32 = arith.constant 0 : i32
    %c0_i32_0 = arith.constant 0 : i32
    %c0_i32_1 = arith.constant 0 : i32
    return %c0_i32, %c0_i32_0 : i32, i32
  }
  func.func @transform_12(%arg0: i32) -> (i32, i32) {
    %c0_i32 = arith.constant 0 : i32
    %c0_i32_0 = arith.constant 0 : i32
    %c0_i32_1 = arith.constant 0 : i32
    return %c0_i32, %c0_i32_0 : i32, i32
  }
  func.func @transform_13(%arg0: i32) -> (i32, i32, i32) {
    %c0_i32 = arith.constant 0 : i32
    %c0_i32_0 = arith.constant 0 : i32
    %c0_i32_1 = arith.constant 0 : i32
    return %arg0, %c0_i32, %c0_i32_0 : i32, i32, i32
  }
}

</mosaic_0001>

<bundles_post_ra>
// kernel: tpu_custom_call.1
= control target key start
LH: loop header
LB: loop body
LE: loop exit
PB: predicated region body
PF: predicated region fallthrough
CT: control target
= control target key end

     0   :  { %18 = vsyncpa [#allocation3], 0  ;;  %s6336_s0 = inlined_call_operand.hbm [shape: bf16[2,8,256], index: 0, kind: input, shape index: {}]   ;;  %s6337_s1 = inlined_call_operand.hbm [shape: f32[1,256], index: 1, kind: input, shape index: {}]   ;;  %s6338_s2 = inlined_call_operand.hbm [shape: f32[1,256], index: 2, kind: input, shape index: {}]   ;;  %s6339_s3 = inlined_call_operand.hbm [shape: bf16[256,768], index: 3, kind: input, shape index: {}]   ;;  %s6340_s4 = inlined_call_operand.vmem [shape: f32[1,768], index: 4, kind: input, shape index: {}]   ;;  %s6341_s5 = inlined_call_operand.hbm [shape: bf16[256,256], index: 5, kind: input, shape index: {}]   ;;  %s6342_s6 = inlined_call_operand.vmem [shape: f32[1,256], index: 6, kind: input, shape index: {}]   ;;  %s6343_s7 = inlined_call_operand.vmem [shape: f32[1,256], index: 7, kind: input, shape index: {}]   ;;  %s6344_s8 = inlined_call_operand.vmem [shape: f32[1,256], index: 8, kind: input, shape index: {}]   ;;  %s6345_s9 = inlined_call_operand.hbm [shape: bf16[256,1024], index: 9, kind: input, shape index: {}]   ;;  %s6346_s10 = inlined_call_operand.vmem [shape: f32[1,1024], index: 10, kind: input, shape index: {}]   ;;  %s6347_s11 = inlined_call_operand.hbm [shape: bf16[1024,256], index: 11, kind: input, shape index: {}]   ;;  %s6348_s12 = inlined_call_operand.vmem [shape: f32[1,256], index: 12, kind: input, shape index: {}]   ;;  %s6349_s13 = inlined_call_operand.hbm [shape: bf16[2,8,256], index: 13, kind: output, shape index: {}]  }
   0x1   :  { %19 = vsyncpa [#allocation6], 0 }
   0x2   :  { %20 = vsyncpa [#allocation9], 0 }
   0x3   :  { %21 = vsyncpa [#allocation12], 0 }
   0x4   :  { %22 = vsyncpa [#allocation4], 0  ;;  %s5743_s25 = smov [#allocation5]   ;;  %s5744_s27 = smov [#allocation8]  }
   0x5   :  { %s41_s26 = sshll.u32 %s5743_s25, 4  ;;  %s60_s28 = sshll.u32 %s5744_s27, 4  ;;  %s42_s26 = int_to_ptr.vmem [resolvable:$true] %s41_s26  ;;  %s5831_s28 = int_to_ptr.vmem [resolvable:$true] %s60_s28 }
   0x6   :  { %s5557_s14 = scalar_lea.hbm %s6337_s1, 32 }
   0x7   :  { %p5558_p0 = scmp.ne.s32.totalorder %s6337_s1, %s5557_s14  ;;  %p5561_p1 = scmp.lt.u32.totalorder %s5557_s14, %s6337_s1 }
   0x9   :  { %p5563_p2 = pnand %p5561_p1, %p5558_p0 }
   0xb   :  { %5566 = shalt.err (!%p5563_p2)
}
   0xc   :  { %s5567_s19 = scalar_lea.vmem %s42_s26, 32  ;;  %p5572_p4 = scmp.lt.s32.totalorder %s42_s26, %s42_s26 }
   0xd   :  { %p5568_p3 = scmp.ne.s32.totalorder %s42_s26, %s5567_s19  ;;  %p5573_p5 = scmp.lt.s32.totalorder %s5567_s19, %s5567_s19 }
   0xf   :  { %p5574_p6 = por %p5573_p5, %p5572_p4 }
  0x11   :  { %p5575_p7 = pnand %p5574_p6, %p5568_p3 }
  0x13   :  { %5578 = shalt.err (!%p5575_p7)
}
  0x14   :  { %44 = dma.hbm_to_vmem [thread:$0]  %s6337_s1, 32, %s42_s26, [#allocation6]  }
  0x15   :  { %s5579_s24 = scalar_lea.hbm %s6339_s3, 12288 }
  0x16   :  { %p5580_p8 = scmp.ne.s32.totalorder %s6339_s3, %s5579_s24  ;;  %p5583_p9 = scmp.lt.u32.totalorder %s5579_s24, %s6339_s3 }
  0x18   :  { %p5585_p10 = pnand %p5583_p9, %p5580_p8 }
  0x1a   :  { %5588 = shalt.err (!%p5585_p10)
}
  0x1b   :  { %s5589_s14 = scalar_lea.vmem %s5831_s28, 12288  ;;  %p5594_p12 = scmp.lt.s32.totalorder %s5831_s28, %s5831_s28 }
  0x1c   :  { %p5590_p11 = scmp.ne.s32.totalorder %s5831_s28, %s5589_s14  ;;  %p5595_p13 = scmp.lt.s32.totalorder %s5589_s14, %s5589_s14 }
  0x1e   :  { %p5596_p0 = por %p5595_p13, %p5594_p12 }
  0x20   :  { %p5597_p1 = pnand %p5596_p0, %p5590_p11 }
  0x22   :  { %5600 = shalt.err (!%p5597_p1)
}
  0x23   :  { %s5745_s1 = smov 384   ;;  %s5746_s26 = smov 24  }
  0x24   :  { %66 = dma.hbm_to_vmem [thread:$0]  %s6339_s3, 12288, %s5831_s28, [#allocation9], %s5745_s1, %s5745_s1, %s5746_s26  }
  0x25   :  { %s5747_s17 = smov [#allocation11]   ;;  %s5601_s21 = scalar_lea.hbm %s6345_s9, 16384 }
  0x26   :  { %s92_s18 = sshll.u32 %s5747_s17, 4  ;;  %p5602_p2 = scmp.ne.s32.totalorder %s6345_s9, %s5601_s21  ;;  %s93_s18 = int_to_ptr.vmem [resolvable:$true] %s92_s18 }
  0x27   :  { %p5605_p3 = scmp.lt.u32.totalorder %s5601_s21, %s6345_s9 }
  0x29   :  { %p5607_p4 = pnand %p5605_p3, %p5602_p2 }
  0x2b   :  { %5610 = shalt.err (!%p5607_p4)
}
  0x2c   :  { %s5611_s27 = scalar_lea.vmem %s93_s18, 16384  ;;  %p5616_p6 = scmp.lt.s32.totalorder %s93_s18, %s93_s18 }
  0x2d   :  { %p5612_p5 = scmp.ne.s32.totalorder %s93_s18, %s5611_s27  ;;  %p5617_p7 = scmp.lt.s32.totalorder %s5611_s27, %s5611_s27 }
  0x2f   :  { %p5618_p8 = por %p5617_p7, %p5616_p6 }
  0x31   :  { %p5619_p9 = pnand %p5618_p8, %p5612_p5 }
  0x33   :  { %5622 = shalt.err (!%p5619_p9)
}
  0x34   :  { %s5748_s3 = smov 512   ;;  %s5749_s28 = smov 32  }
  0x35   :  { %98 = dma.hbm_to_vmem [thread:$0]  %s6345_s9, 16384, %s93_s18, [#allocation12], %s5748_s3, %s5748_s3, %s5749_s28  }
  0x36   :  { %s5750_s14 = smov [#allocation2]   ;;  %s5623_s16 = scalar_lea.hbm %s6336_s0, 256 }
  0x37   :  { %s28_s1 = sshll.u32 %s5750_s14, 4  ;;  %p5624_p10 = scmp.ne.s32.totalorder %s6336_s0, %s5623_s16  ;;  %s29_s1 = int_to_ptr.vmem [resolvable:$true] %s28_s1 }
  0x38   :  { %p5627_p11 = scmp.lt.u32.totalorder %s5623_s16, %s6336_s0 }
  0x3a   :  { %p5629_p12 = pnand %p5627_p11, %p5624_p10 }
  0x3c   :  { %5632 = shalt.err (!%p5629_p12)
}
  0x3d   :  { %s5633_s22 = scalar_lea.vmem %s29_s1, 256  ;;  %p5638_p0 = scmp.lt.s32.totalorder %s29_s1, %s29_s1 }
  0x3e   :  { %p5634_p13 = scmp.ne.s32.totalorder %s29_s1, %s5633_s22  ;;  %p5639_p1 = scmp.lt.s32.totalorder %s5633_s22, %s5633_s22 }
  0x40   :  { %p5640_p2 = por %p5639_p1, %p5638_p0 }
  0x42   :  { %p5641_p3 = pnand %p5640_p2, %p5634_p13 }
  0x44   :  { %5644 = shalt.err (!%p5641_p3)
}
  0x45   :  { %s5751_s9 = smov 128   ;;  %s5752_s18 = smov 8  }
  0x46   :  { %34 = dma.hbm_to_vmem [thread:$0]  %s6336_s0, 256, %s29_s1, [#allocation3], %s5751_s9, %s5751_s9, %s5752_s18  }
  0x47   :  { %s5753_s25 = smov [#allocation7]   ;;  %s5754_s3 = smov [#allocation10]  }
  0x48   :  { %s51_s27 = sshll.u32 %s5753_s25, 4  ;;  %s74_s28 = sshll.u32 %s5754_s3, 4  ;;  %s52_s27 = int_to_ptr.vmem [resolvable:$true] %s51_s27  ;;  %s5889_s28 = int_to_ptr.vmem [resolvable:$true] %s74_s28 }
  0x49   :  { %s5645_s14 = scalar_lea.hbm %s6338_s2, 32 }
  0x4a   :  { %p5646_p4 = scmp.ne.s32.totalorder %s6338_s2, %s5645_s14  ;;  %p5649_p5 = scmp.lt.u32.totalorder %s5645_s14, %s6338_s2 }
  0x4c   :  { %p5651_p6 = pnand %p5649_p5, %p5646_p4 }
  0x4e   :  { %5654 = shalt.err (!%p5651_p6)
}
  0x4f   :  { %s5655_s0 = scalar_lea.vmem %s52_s27, 32  ;;  %p5660_p8 = scmp.lt.s32.totalorder %s52_s27, %s52_s27 }
  0x50   :  { %p5656_p7 = scmp.ne.s32.totalorder %s52_s27, %s5655_s0  ;;  %p5661_p9 = scmp.lt.s32.totalorder %s5655_s0, %s5655_s0 }
  0x52   :  { %p5662_p10 = por %p5661_p9, %p5660_p8 }
  0x54   :  { %p5663_p11 = pnand %p5662_p10, %p5656_p7 }
  0x56   :  { %5666 = shalt.err (!%p5663_p11)
}
  0x57   :  { %54 = dma.hbm_to_vmem [thread:$0]  %s6338_s2, 32, %s52_s27, [#allocation6]  }
  0x58   :  { %s5667_s22 = scalar_lea.hbm %s6341_s5, 4096 }
  0x59   :  { %p5668_p12 = scmp.ne.s32.totalorder %s6341_s5, %s5667_s22  ;;  %p5671_p13 = scmp.lt.u32.totalorder %s5667_s22, %s6341_s5 }
  0x5b   :  { %p5673_p0 = pnand %p5671_p13, %p5668_p12 }
  0x5d   :  { %5676 = shalt.err (!%p5673_p0)
}
  0x5e   :  { %s5677_s29 = scalar_lea.vmem %s5889_s28, 4096  ;;  %p5682_p2 = scmp.lt.s32.totalorder %s5889_s28, %s5889_s28 }
  0x5f   :  { %p5678_p1 = scmp.ne.s32.totalorder %s5889_s28, %s5677_s29  ;;  %p5683_p3 = scmp.lt.s32.totalorder %s5677_s29, %s5677_s29 }
  0x61   :  { %p5684_p4 = por %p5683_p3, %p5682_p2 }
  0x63   :  { %p5685_p5 = pnand %p5684_p4, %p5678_p1 }
  0x65   :  { %5688 = shalt.err (!%p5685_p5)
}
  0x66   :  { %80 = dma.hbm_to_vmem [thread:$0]  %s6341_s5, 4096, %s5889_s28, [#allocation9], %s5751_s9, %s5751_s9, %s5752_s18  }
  0x67   :  { %s5755_s30 = smov [#allocation13]   ;;  %s5689_s16 = scalar_lea.hbm %s6347_s11, 16384 }
  0x68   :  { %s106_s14 = sshll.u32 %s5755_s30, 4  ;;  %p5690_p6 = scmp.ne.s32.totalorder %s6347_s11, %s5689_s16  ;;  %s107_s14 = int_to_ptr.vmem [resolvable:$true] %s106_s14 }
  0x69   :  { %p5693_p7 = scmp.lt.u32.totalorder %s5689_s16, %s6347_s11 }
  0x6b   :  { %p5695_p8 = pnand %p5693_p7, %p5690_p6 }
  0x6d   :  { %5698 = shalt.err (!%p5695_p8)
}
  0x6e   :  { %s5699_s20 = scalar_lea.vmem %s107_s14, 16384  ;;  %p5704_p10 = scmp.lt.s32.totalorder %s107_s14, %s107_s14 }
  0x6f   :  { %p5700_p9 = scmp.ne.s32.totalorder %s107_s14, %s5699_s20  ;;  %p5705_p11 = scmp.lt.s32.totalorder %s5699_s20, %s5699_s20 }
  0x71   :  { %p5706_p12 = por %p5705_p11, %p5704_p10 }
  0x73   :  { %p5707_p13 = pnand %p5706_p12, %p5700_p9 }
  0x75   :  { %5710 = shalt.err (!%p5707_p13)
}
  0x76   :  { %112 = dma.hbm_to_vmem [thread:$0]  %s6347_s11, 16384, %s107_s14, [#allocation12], %s5751_s9, %s5751_s9, %s5752_s18  }
  0x77   :  { %5733 = dma.done.wait [#allocation3], 256  }
  0x78   :  { %5734 = vsyncadd [#allocation3], 4294967040 }
  0x79   :  { %5735 = dma.done.wait [#allocation6], 64  }
  0x7a   :  { %5736 = vsyncadd [#allocation6], 4294967232 }
  0x7b   :  { %5737 = dma.done.wait [#allocation9], 16384  }
  0x7c   :  { %5738 = vsyncadd [#allocation9], 4294950912 }
  0x7d   :  { %5739 = dma.done.wait [#allocation12], 32768  }
  0x7e   :  { %5740 = vsyncadd [#allocation12], 4294934528  ;;  %v137_v0 = vld [vmem:[#allocation2] sm:$0xff]  ;;  %v138_v1 = vld [vmem:[#allocation2 + $0x8] sm:$0xff]  ;;  %v179_v59 = vlaneseq  ;;  %vm5757_vm0 = vmmov 0   ;;  %vm1424_vm1 = vcmask 1043456  }
  0x7f   :  { %v5938_v2 = vunpack.c.l.bf16 %v137_v0  ;;  %v5940_v3 = vunpack.c.h.bf16 %v137_v0  ;;  %v5942_v4 = vunpack.c.l.bf16 %v138_v1  ;;  %v5944_v5 = vunpack.c.h.bf16 %v138_v1  ;;  %v5141_v8 = vld [vmem:[#allocation8 + $0x4] ss:$24 sps:$4 sm:$0xff]   ;;  %v5143_v9 = vld [vmem:[#allocation8] ss:$24 sps:$4 sm:$0xff]   ;;  %v5144_v10 = vld [vmem:[#allocation8 + $0x34] ss:$24 sps:$4 sm:$0xff]  }
  0x80   :  { %818 = vmatprep.subr.bf16.mxu0 %v5141_v8  ;;  %v5146_v11 = vld [vmem:[#allocation8 + $0x30] ss:$24 sps:$4 sm:$0xff]   ;;  %v5147_v12 = vld [vmem:[#allocation8 + $0x64] ss:$24 sps:$4 sm:$0xff]   ;;  %v5149_v13 = vld [vmem:[#allocation8 + $0x60] ss:$24 sps:$4 sm:$0xff]  }
  0x81   :  { %v145_v6 = vadd.f32 %v5940_v3, %v5938_v2  ;;  %v148_v7 = vadd.f32 %v5944_v5, %v5942_v4  ;;  %819 = vmatpush1.bf16.msra.mxu0 %v5143_v9  ;;  %v5150_v14 = vld [vmem:[#allocation8 + $0x94] ss:$24 sps:$4 sm:$0xff]   ;;  %v5152_v15 = vld [vmem:[#allocation8 + $0x90] ss:$24 sps:$4 sm:$0xff]   ;;  %v5153_v16 = vld [vmem:[#allocation8 + $0xc4] ss:$24 sps:$4 sm:$0xff]  }
  0x82   :  { %820 = vmatprep.subr.bf16.mxu0 %v5144_v10  ;;  %v5155_v17 = vld [vmem:[#allocation8 + $0xc0] ss:$24 sps:$4 sm:$0xff]   ;;  %v5156_v18 = vld [vmem:[#allocation8 + $0xf4] ss:$24 sps:$4 sm:$0xff]   ;;  %v5158_v19 = vld [vmem:[#allocation8 + $0xf0] ss:$24 sps:$4 sm:$0xff]  }
  0x83   :  { %146 = vadd.xlane.f32.xlu0 %v145_v6  ;;  %v5159_v20 = vld [vmem:[#allocation8 + $0x124] ss:$24 sps:$4 sm:$0xff]   ;;  %v5161_v21 = vld [vmem:[#allocation8 + $0x120] ss:$24 sps:$4 sm:$0xff]   ;;  %v5162_v22 = vld [vmem:[#allocation8 + $0x154] ss:$24 sps:$4 sm:$0xff]  }
  0x84   :  { %v5164_v23 = vld [vmem:[#allocation8 + $0x150] ss:$24 sps:$4 sm:$0xff]   ;;  %v5165_v24 = vld [vmem:[#allocation8 + $0x184] ss:$24 sps:$4 sm:$0xff]   ;;  %v5167_v25 = vld [vmem:[#allocation8 + $0x180] ss:$24 sps:$4 sm:$0xff]  }
  0x85   :  { %821 = vmatpush1.bf16.msra.mxu0 %v5146_v11  ;;  %v5168_v26 = vld [vmem:[#allocation8 + $0x1b4] ss:$24 sps:$4 sm:$0xff]   ;;  %v5170_v41 = vld [vmem:[#allocation8 + $0x1b0] ss:$24 sps:$4 sm:$0xff]   ;;  %v5171_v42 = vld [vmem:[#allocation8 + $0x1e4] ss:$24 sps:$4 sm:$0xff]  }
  0x86   :  { %822 = vmatprep.subr.bf16.mxu0 %v5147_v12  ;;  %v5173_v43 = vld [vmem:[#allocation8 + $0x1e0] ss:$24 sps:$4 sm:$0xff]   ;;  %v5174_v44 = vld [vmem:[#allocation8 + $0x214] ss:$24 sps:$4 sm:$0xff]   ;;  %v5176_v45 = vld [vmem:[#allocation8 + $0x210] ss:$24 sps:$4 sm:$0xff]  }
  0x87   :  { %149 = vadd.xlane.f32.xlu0 %v148_v7  ;;  %v5177_v46 = vld [vmem:[#allocation8 + $0x244] ss:$24 sps:$4 sm:$0xff]   ;;  %v5179_v47 = vld [vmem:[#allocation8 + $0x240] ss:$24 sps:$4 sm:$0xff]   ;;  %v5180_v48 = vld [vmem:[#allocation8 + $0x274] ss:$24 sps:$4 sm:$0xff]  }
  0x88   :  { %v5182_v49 = vld [vmem:[#allocation8 + $0x270] ss:$24 sps:$4 sm:$0xff]   ;;  %v5183_v50 = vld [vmem:[#allocation8 + $0x2a4] ss:$24 sps:$4 sm:$0xff]   ;;  %v5185_v51 = vld [vmem:[#allocation8 + $0x2a0] ss:$24 sps:$4 sm:$0xff]  }
  0x89   :  { %823 = vmatpush1.bf16.msra.mxu0 %v5149_v13  ;;  %v5186_v52 = vld [vmem:[#allocation8 + $0x2d4] ss:$24 sps:$4 sm:$0xff]   ;;  %v5188_v53 = vld [vmem:[#allocation8 + $0x2d0] ss:$24 sps:$4 sm:$0xff]   ;;  %v5955_v62 = vshrl.u32 %v179_v59, 7  ;;  %vm1390_vm3 = vcmask 64512  }
  0x8a   :  { %824 = vmatprep.subr.bf16.mxu0 %v5150_v14  ;;  %v5191_v54 = vld [vmem:[#allocation8 + $0xc] ss:$24 sps:$4 sm:$0xff]   ;;  %v143_v1 = vld [vmem:[#allocation5] sm:$0x3]  ;;  %v144_v7 = vld [vmem:[#allocation7] sm:$0x3] }
  0x8b   :  { %v5958_v63 = vsub.s32 1, %v5955_v62  ;;  %v5961_v0 = vsub.s32 0, %v5955_v62 }
  0x8d   :  { %825 = vmatpush1.bf16.msra.mxu0 %v5152_v15  ;;  %v186_v9 = vrot.slane %v143_v1, %v5958_v63  ;;  %v182_v11 = vrot.slane %v143_v1, %v5961_v0  ;;  %v201_v13 = vrot.slane %v144_v7, %v5958_v63  ;;  %v197_v14 = vrot.slane %v144_v7, %v5961_v0  ;;  %v5240_v1 = vld [vmem:[#allocation8 + $0x40] ss:$24 sps:$4 sm:$0xff]   ;;  %v5243_v7 = vld [vmem:[#allocation8 + $0x70] ss:$24 sps:$4 sm:$0xff]  }
  0x8e   :  { %826 = vmatprep.subr.bf16.mxu0 %v5153_v16 }
  0x91   :  { %827 = vmatpush1.bf16.msra.mxu0 %v5155_v17 }
  0x92   :  { %828 = vmatprep.subr.bf16.mxu0 %v5156_v18 }
  0x95   :  { %829 = vmatpush1.bf16.msra.mxu0 %v5158_v19 }
  0x96   :  { %830 = vmatprep.subr.bf16.mxu0 %v5159_v20 }
  0x99   :  { %831 = vmatpush1.bf16.msra.mxu0 %v5161_v21 }
  0x9a   :  { %832 = vmatprep.subr.bf16.mxu0 %v5162_v22 }
  0x9d   :  { %833 = vmatpush1.bf16.msra.mxu0 %v5164_v23 }
  0x9e   :  { %834 = vmatprep.subr.bf16.mxu0 %v5165_v24 }
  0xa1   :  { %835 = vmatpush1.bf16.msra.mxu0 %v5167_v25 }
  0xa2   :  { %836 = vmatprep.subr.bf16.mxu0 %v5168_v26  ;;  %v5189_v26 = vld [vmem:[#allocation8 + $0x8] ss:$24 sps:$4 sm:$0xff]  }
  0xa5   :  { %837 = vmatpush1.bf16.msra.mxu0 %v5170_v41  ;;  %v5210_v41 = vld [vmem:[#allocation8 + $0x158] ss:$24 sps:$4 sm:$0xff]  }
  0xa6   :  { %838 = vmatprep.subr.bf16.mxu0 %v5171_v42  ;;  %v5215_v42 = vld [vmem:[#allocation8 + $0x18c] ss:$24 sps:$4 sm:$0xff]  }
  0xa9   :  { %839 = vmatpush1.bf16.msra.mxu0 %v5173_v43  ;;  %v5213_v43 = vld [vmem:[#allocation8 + $0x188] ss:$24 sps:$4 sm:$0xff]  }
  0xaa   :  { %840 = vmatprep.subr.bf16.mxu0 %v5174_v44  ;;  %v5218_v44 = vld [vmem:[#allocation8 + $0x1bc] ss:$24 sps:$4 sm:$0xff]  }
  0xad   :  { %841 = vmatpush1.bf16.msra.mxu0 %v5176_v45  ;;  %v5216_v45 = vld [vmem:[#allocation8 + $0x1b8] ss:$24 sps:$4 sm:$0xff]  }
  0xae   :  { %842 = vmatprep.subr.bf16.mxu0 %v5177_v46  ;;  %v5221_v46 = vld [vmem:[#allocation8 + $0x1ec] ss:$24 sps:$4 sm:$0xff]  }
  0xb1   :  { %843 = vmatpush1.bf16.msra.mxu0 %v5179_v47  ;;  %v5219_v47 = vld [vmem:[#allocation8 + $0x1e8] ss:$24 sps:$4 sm:$0xff]  }
  0xb2   :  { %844 = vmatprep.subr.bf16.mxu0 %v5180_v48  ;;  %v5224_v48 = vld [vmem:[#allocation8 + $0x21c] ss:$24 sps:$4 sm:$0xff]  }
  0xb5   :  { %845 = vmatpush1.bf16.msra.mxu0 %v5182_v49  ;;  %v5222_v49 = vld [vmem:[#allocation8 + $0x218] ss:$24 sps:$4 sm:$0xff]  }
  0xb6   :  { %846 = vmatprep.subr.bf16.mxu0 %v5183_v50  ;;  %v5227_v50 = vld [vmem:[#allocation8 + $0x24c] ss:$24 sps:$4 sm:$0xff]  }
  0xb9   :  { %847 = vmatpush1.bf16.msra.mxu0 %v5185_v51  ;;  %v5225_v51 = vld [vmem:[#allocation8 + $0x248] ss:$24 sps:$4 sm:$0xff]  }
  0xba   :  { %848 = vmatprep.subr.bf16.mxu0 %v5186_v52  ;;  %v5230_v52 = vld [vmem:[#allocation8 + $0x27c] ss:$24 sps:$4 sm:$0xff]  }
  0xbd   :  { %849 = vmatpush1.bf16.msra.mxu0 %v5188_v53  ;;  %v5228_v53 = vld [vmem:[#allocation8 + $0x278] ss:$24 sps:$4 sm:$0xff]  }
  0xbe   :  { %861 = vmatprep.subr.bf16.mxu0 %v5191_v54  ;;  %v5233_v54 = vld [vmem:[#allocation8 + $0x2ac] ss:$24 sps:$4 sm:$0xff]  }
 0x110   :  { %v147_v27 = vpop.xlane.xlu0 %146 }
 0x111   :  { %v152_v28 = vmul.f32 0.00390625, %v147_v27 }
 0x113   :  { %v154_v29 = vsub.f32 %v5938_v2, %v152_v28  ;;  %v155_v30 = vsub.f32 %v5940_v3, %v152_v28  ;;  %v5194_v28 = vld [vmem:[#allocation8 + $0x3c] ss:$24 sps:$4 sm:$0xff]  }
 0x114   :  { %v150_v31 = vpop.xlane.xlu0 %149 }
 0x115   :  { %v153_v32 = vmul.f32 0.00390625, %v150_v31  ;;  %v158_v33 = vmul.f32 %v154_v29, %v154_v29  ;;  %v159_v34 = vmul.f32 %v155_v30, %v155_v30  ;;  %v5195_v31 = vld [vmem:[#allocation8 + $0x68] ss:$24 sps:$4 sm:$0xff]  }
 0x117   :  { %v156_v35 = vsub.f32 %v5942_v4, %v153_v32  ;;  %v157_v36 = vsub.f32 %v5944_v5, %v153_v32  ;;  %v162_v37 = vadd.f32 %v159_v34, %v158_v33  ;;  %v5200_v32 = vld [vmem:[#allocation8 + $0x9c] ss:$24 sps:$4 sm:$0xff]   ;;  %v5198_v33 = vld [vmem:[#allocation8 + $0x98] ss:$24 sps:$4 sm:$0xff]   ;;  %v5203_v34 = vld [vmem:[#allocation8 + $0xcc] ss:$24 sps:$4 sm:$0xff]  }
 0x119   :  { %163 = vadd.xlane.f32.xlu1 %v162_v37  ;;  %v160_v38 = vmul.f32 %v156_v35, %v156_v35  ;;  %v161_v39 = vmul.f32 %v157_v36, %v157_v36  ;;  %v5204_v37 = vld [vmem:[#allocation8 + $0xf8] ss:$24 sps:$4 sm:$0xff]  }
 0x11b   :  { %v165_v40 = vadd.f32 %v161_v39, %v160_v38  ;;  %v5209_v38 = vld [vmem:[#allocation8 + $0x12c] ss:$24 sps:$4 sm:$0xff]   ;;  %v5207_v39 = vld [vmem:[#allocation8 + $0x128] ss:$24 sps:$4 sm:$0xff]  }
 0x11d   :  { %166 = vadd.xlane.f32.xlu1 %v165_v40  ;;  %v5212_v40 = vld [vmem:[#allocation8 + $0x15c] ss:$24 sps:$4 sm:$0xff]  }
 0x1a6   :  { %v164_v55 = vpop.xlane.xlu1 %163 }
 0x1a7   :  { %v168_v56 = vmul.f32 0.00390625, %v164_v55  ;;  %v5231_v55 = vld [vmem:[#allocation8 + $0x2a8] ss:$24 sps:$4 sm:$0xff]  }
 0x1a9   :  { %v170_v57 = vadd.f32 1e-05, %v168_v56  ;;  %v5236_v56 = vld [vmem:[#allocation8 + $0x2dc] ss:$24 sps:$4 sm:$0xff]  }
 0x1aa   :  { %v167_v58 = vpop.xlane.xlu1 %166 }
 0x1ab   :  { %5525 = vrsqrt.f32 %v170_v57  ;;  %v169_v60 = vmul.f32 0.00390625, %v167_v58  ;;  %v5234_v57 = vld [vmem:[#allocation8 + $0x2d8] ss:$24 sps:$4 sm:$0xff]   ;;  %v5239_v58 = vld [vmem:[#allocation8 + $0x14] ss:$24 sps:$4 sm:$0xff]  }
 0x1ad   :  { %v171_v61 = vadd.f32 1e-05, %v169_v60  ;;  %v5237_v60 = vld [vmem:[#allocation8 + $0x10] ss:$24 sps:$4 sm:$0xff]  }
 0x1af   :  { %5527 = vrsqrt.f32 %v171_v61  ;;  %v5242_v61 = vld [vmem:[#allocation8 + $0x44] ss:$24 sps:$4 sm:$0xff]  }
 0x1b5   :  { %v5526_v6 = vpop.eup %5525 }
 0x1b6   :  { %v175_v8 = vmul.f32 %v5526_v6, %v155_v30  ;;  %v174_v10 = vmul.f32 %v5526_v6, %v154_v29  ;;  %v5192_v29 = vld [vmem:[#allocation8 + $0x38] ss:$24 sps:$4 sm:$0xff]   ;;  %v5197_v30 = vld [vmem:[#allocation8 + $0x6c] ss:$24 sps:$4 sm:$0xff]  }
 0x1b7   :  { %v5245_v6 = vld [vmem:[#allocation8 + $0x74] ss:$24 sps:$4 sm:$0xff]  }
 0x1b8   :  { %v190_v16 = vmul.f32 %v186_v9, %v175_v8  ;;  %v189_v18 = vmul.f32 %v182_v11, %v174_v10  ;;  %v5248_v8 = vld [vmem:[#allocation8 + $0xa4] ss:$24 sps:$4 sm:$0xff]   ;;  %v5251_v10 = vld [vmem:[#allocation8 + $0xd4] ss:$24 sps:$4 sm:$0xff]  }
 0x1b9   :  { %v5528_v12 = vpop.eup %5527 }
 0x1ba   :  { %v177_v15 = vmul.f32 %v5528_v12, %v157_v36  ;;  %v176_v17 = vmul.f32 %v5528_v12, %v156_v35  ;;  %v205_v21 = vadd.f32 %v201_v13, %v190_v16  ;;  %v204_v23 = vadd.f32 %v197_v14, %v189_v18  ;;  %v5201_v35 = vld [vmem:[#allocation8 + $0xc8] ss:$24 sps:$4 sm:$0xff]   ;;  %v5206_v36 = vld [vmem:[#allocation8 + $0xfc] ss:$24 sps:$4 sm:$0xff]  }
 0x1bb   :  { %v5254_v12 = vld [vmem:[#allocation8 + $0x104] ss:$24 sps:$4 sm:$0xff]   ;;  %v5756_v16 = vmov 0.0   ;;  %v5258_v18 = vld [vmem:[#allocation8 + $0x160] ss:$24 sps:$4 sm:$0xff]  }
 0x1bc   :  { %v192_v19 = vmul.f32 %v186_v9, %v177_v15  ;;  %v191_v20 = vmul.f32 %v182_v11, %v176_v17  ;;  %v5246_v9 = vld [vmem:[#allocation8 + $0xa0] ss:$24 sps:$4 sm:$0xff]   ;;  %v5249_v11 = vld [vmem:[#allocation8 + $0xd0] ss:$24 sps:$4 sm:$0xff]   ;;  %5087 = vmatprep.subr.bf16.mxu1 %v5756_v16  ;;  %v5260_v17 = vld [vmem:[#allocation8 + $0x164] ss:$24 sps:$4 sm:$0xff]   ;;  %5089 = vmatprep.mubr.msk.bf16.mxu1 %vm5757_vm0, %v5756_v16 }
 0x1bd   :  { %v5255_v15 = vld [vmem:[#allocation8 + $0x130] ss:$24 sps:$4 sm:$0xff]  }
 0x1be   :  { %v207_v22 = vadd.f32 %v201_v13, %v192_v19  ;;  %v206_v24 = vadd.f32 %v197_v14, %v191_v20  ;;  %v5252_v13 = vld [vmem:[#allocation8 + $0x100] ss:$24 sps:$4 sm:$0xff]   ;;  %v5257_v14 = vld [vmem:[#allocation8 + $0x134] ss:$24 sps:$4 sm:$0xff]   ;;  %v5261_v20 = vld [vmem:[#allocation8 + $0x190] ss:$24 sps:$4 sm:$0xff]  }
 0x1bf   :  { %v5263_v19 = vld [vmem:[#allocation8 + $0x194] ss:$24 sps:$4 sm:$0xff]  }
 0x1c0   :  { %v5967_v25 = vpack.c.bf16 %v207_v22, %v205_v21  ;;  %v5969_v27 = vpack.c.bf16 %v206_v24, %v204_v23  ;;  %v5266_v21 = vld [vmem:[#allocation8 + $0x1c4] ss:$24 sps:$4 sm:$0xff]   ;;  %v5264_v22 = vld [vmem:[#allocation8 + $0x1c0] ss:$24 sps:$4 sm:$0xff]   ;;  %v5269_v23 = vld [vmem:[#allocation8 + $0x1f4] ss:$24 sps:$4 sm:$0xff]  }
 0x1c1   :  { %v5267_v24 = vld [vmem:[#allocation8 + $0x1f0] ss:$24 sps:$4 sm:$0xff]  }
 0x1c2   :  { %850 = vmatprep.mubr.bf16.mxu0 %v5967_v25 }
 0x1c3   :  { %851 = vmatmul.mubr.bf16.vlgmr.msra.gmra.mrb[0].mxu0 %v5969_v27 }
 0x1c4   :  { %862 = vmatpush1.bf16.msra.mxu0 %v5189_v26  ;;  %893 = vmatprep.mubr.bf16.mxu0 %v5967_v25  ;;  %v5270_v26 = vld [vmem:[#allocation8 + $0x220] ss:$24 sps:$4 sm:$0xff]  }
 0x1c5   :  { %863 = vmatprep.subr.bf16.mxu0 %v5194_v28  ;;  %v5275_v28 = vld [vmem:[#allocation8 + $0x254] ss:$24 sps:$4 sm:$0xff]  }
 0x1c8   :  { %864 = vmatpush1.bf16.msra.mxu0 %v5192_v29  ;;  %v5273_v29 = vld [vmem:[#allocation8 + $0x250] ss:$24 sps:$4 sm:$0xff]  }
 0x1c9   :  { %865 = vmatprep.subr.bf16.mxu0 %v5197_v30  ;;  %v5278_v30 = vld [vmem:[#allocation8 + $0x284] ss:$24 sps:$4 sm:$0xff]  }
 0x1cc   :  { %866 = vmatpush1.bf16.msra.mxu0 %v5195_v31  ;;  %v5276_v31 = vld [vmem:[#allocation8 + $0x280] ss:$24 sps:$4 sm:$0xff]  }
 0x1cd   :  { %867 = vmatprep.subr.bf16.mxu0 %v5200_v32  ;;  %v5281_v32 = vld [vmem:[#allocation8 + $0x2b4] ss:$24 sps:$4 sm:$0xff]  }
 0x1d0   :  { %868 = vmatpush1.bf16.msra.mxu0 %v5198_v33  ;;  %v5279_v33 = vld [vmem:[#allocation8 + $0x2b0] ss:$24 sps:$4 sm:$0xff]  }
 0x1d1   :  { %869 = vmatprep.subr.bf16.mxu0 %v5203_v34  ;;  %v5284_v34 = vld [vmem:[#allocation8 + $0x2e4] ss:$24 sps:$4 sm:$0xff]  }
 0x1d4   :  { %870 = vmatpush1.bf16.msra.mxu0 %v5201_v35  ;;  %v5282_v35 = vld [vmem:[#allocation8 + $0x2e0] ss:$24 sps:$4 sm:$0xff]  }
 0x1d5   :  { %871 = vmatprep.subr.bf16.mxu0 %v5206_v36  ;;  %v5758_v36 = vmov 1983009808  }
 0x1d8   :  { %872 = vmatpush1.bf16.msra.mxu0 %v5204_v37  ;;  %v949_v37 = vunpack.c.l.s4 %v5758_v36 }
 0x1d9   :  { %873 = vmatprep.subr.bf16.mxu0 %v5209_v38  ;;  %v5986_v38 = vld [vmem:[%s6340_s4] sm:$0x3f] }
 0x1dc   :  { %874 = vmatpush1.bf16.msra.mxu0 %v5207_v39  ;;  %v950_v39 = vunpack.c.0.s8 %v949_v37 }
 0x1dd   :  { %875 = vmatprep.subr.bf16.mxu0 %v5212_v40  ;;  %v5759_v40 = vmov 1934713408  }
 0x1e0   :  { %876 = vmatpush1.bf16.msra.mxu0 %v5210_v41  ;;  %v980_v41 = vunpack.c.l.s4 %v5759_v40 }
 0x1e1   :  { %877 = vmatprep.subr.bf16.mxu0 %v5215_v42  ;;  %v315_v42 = vrot.slane %v5986_v38, %v5958_v63 }
 0x1e4   :  { %878 = vmatpush1.bf16.msra.mxu0 %v5213_v43  ;;  %v5993_v43 = vsub.s32 %v950_v39, %v5955_v62 }
 0x1e5   :  { %879 = vmatprep.subr.bf16.mxu0 %v5218_v44  ;;  %v981_v44 = vunpack.c.0.s8 %v980_v41 }
 0x1e8   :  { %880 = vmatpush1.bf16.msra.mxu0 %v5216_v45 }
 0x1e9   :  { %881 = vmatprep.subr.bf16.mxu0 %v5221_v46 }
 0x1ec   :  { %882 = vmatpush1.bf16.msra.mxu0 %v5219_v47 }
 0x1ed   :  { %883 = vmatprep.subr.bf16.mxu0 %v5224_v48 }
 0x1f0   :  { %884 = vmatpush1.bf16.msra.mxu0 %v5222_v49 }
 0x1f1   :  { %885 = vmatprep.subr.bf16.mxu0 %v5227_v50 }
 0x1f4   :  { %886 = vmatpush1.bf16.msra.mxu0 %v5225_v51 }
 0x1f5   :  { %887 = vmatprep.subr.bf16.mxu0 %v5230_v52 }
 0x1f8   :  { %888 = vmatpush1.bf16.msra.mxu0 %v5228_v53 }
 0x1f9   :  { %889 = vmatprep.subr.bf16.mxu0 %v5233_v54  ;;  %v5998_v54 = vsub.s32 %v981_v44, %v5955_v62 }
 0x1fc   :  { %890 = vmatpush1.bf16.msra.mxu0 %v5231_v55 }
 0x1fd   :  { %891 = vmatprep.subr.bf16.mxu0 %v5236_v56 }
 0x200   :  { %892 = vmatpush1.bf16.msra.mxu0 %v5234_v57 }
 0x201   :  { %904 = vmatprep.subr.bf16.mxu0 %v5239_v58 }
 0x203   :  { %894 = vmatmul.mubr.bf16.vlgmr.msra.gmra.mrb[4].mxu0 %v5969_v27 }
 0x204   :  { %905 = vmatpush1.bf16.msra.mxu0 %v5237_v60  ;;  %936 = vmatprep.mubr.bf16.mxu0 %v5967_v25  ;;  %v5272_v25 = vld [vmem:[#allocation8 + $0x224] ss:$24 sps:$4 sm:$0xff]  }
 0x205   :  { %906 = vmatprep.subr.bf16.mxu0 %v5242_v61 }
 0x208   :  { %907 = vmatpush1.bf16.msra.mxu0 %v5240_v1 }
 0x209   :  { %908 = vmatprep.subr.bf16.mxu0 %v5245_v6 }
 0x20c   :  { %909 = vmatpush1.bf16.msra.mxu0 %v5243_v7 }
 0x20d   :  { %910 = vmatprep.subr.bf16.mxu0 %v5248_v8 }
 0x210   :  { %911 = vmatpush1.bf16.msra.mxu0 %v5246_v9 }
 0x211   :  { %912 = vmatprep.subr.bf16.mxu0 %v5251_v10 }
 0x214   :  { %913 = vmatpush1.bf16.msra.mxu0 %v5249_v11 }
 0x215   :  { %914 = vmatprep.subr.bf16.mxu0 %v5254_v12 }
 0x218   :  { %915 = vmatpush1.bf16.msra.mxu0 %v5252_v13 }
 0x219   :  { %916 = vmatprep.subr.bf16.mxu0 %v5257_v14 }
 0x21c   :  { %917 = vmatpush1.bf16.msra.mxu0 %v5255_v15 }
 0x21d   :  { %918 = vmatprep.subr.bf16.mxu0 %v5260_v17 }
 0x220   :  { %919 = vmatpush1.bf16.msra.mxu0 %v5258_v18 }
 0x221   :  { %920 = vmatprep.subr.bf16.mxu0 %v5263_v19 }
 0x224   :  { %921 = vmatpush1.bf16.msra.mxu0 %v5261_v20 }
 0x225   :  { %922 = vmatprep.subr.bf16.mxu0 %v5266_v21 }
 0x228   :  { %923 = vmatpush1.bf16.msra.mxu0 %v5264_v22 }
 0x229   :  { %924 = vmatprep.subr.bf16.mxu0 %v5269_v23 }
 0x22c   :  { %925 = vmatpush1.bf16.msra.mxu0 %v5267_v24 }
 0x22d   :  { %926 = vmatprep.subr.bf16.mxu0 %v5272_v25 }
 0x230   :  { %927 = vmatpush1.bf16.msra.mxu0 %v5270_v26 }
 0x231   :  { %928 = vmatprep.subr.bf16.mxu0 %v5275_v28 }
 0x234   :  { %929 = vmatpush1.bf16.msra.mxu0 %v5273_v29 }
 0x235   :  { %930 = vmatprep.subr.bf16.mxu0 %v5278_v30 }
 0x238   :  { %931 = vmatpush1.bf16.msra.mxu0 %v5276_v31 }
 0x239   :  { %932 = vmatprep.subr.bf16.mxu0 %v5281_v32 }
 0x23c   :  { %933 = vmatpush1.bf16.msra.mxu0 %v5279_v33 }
 0x23d   :  { %934 = vmatprep.subr.bf16.mxu0 %v5284_v34 }
 0x240   :  { %935 = vmatpush1.bf16.msra.mxu0 %v5282_v35 }
 0x241   :  { %5063 = vmatprep.subr.bf16.mxu0 %v5756_v16 }
 0x243   :  { %937 = vmatmul.mubr.bf16.vlgmr.msra.gmra.mrb[8].mxu0 %v5969_v27  ;;  %v311_v27 = vrot.slane %v5986_v38, %v5961_v0 }
 0x244   :  { %5065 = vmatprep.mubr.msk.bf16.mxu0 %vm5757_vm0, %v5756_v16 }
 0x296   :  { %v852_v45 = vpop.f32.mrb[0].mxu0 }
 0x297   :  { %v853_v46 = vadd.f32 %v852_v45, %v311_v27  ;;  %v854_v47 = vpop.f32.mrb[1].mxu0 }
 0x298   :  { %v855_v48 = vadd.f32 %v854_v47, %v315_v42  ;;  %v856_v49 = vpop.f32.mrb[2].mxu0 }
 0x299   :  { %v947_v50 = vcombine.high %v853_v46, %v5756_v16  ;;  %v954_v51 = vrot.slane %v853_v46, %v5993_v43  ;;  %v857_v52 = vadd.f32 %v856_v49, %v311_v27  ;;  %v858_v53 = vpop.f32.mrb[3].mxu0 }
 0x29a   :  { %v962_v55 = vcombine.high %v855_v48, %v5756_v16  ;;  %v969_v56 = vrot.slane %v855_v48, %v5993_v43  ;;  %v859_v57 = vadd.f32 %v858_v53, %v315_v42 }
 0x29b   :  { %v961_v58 = vrot.slane %v947_v50, %v5993_v43  ;;  %v1636_v60 = vcombine.high %v857_v52, %v5756_v16  ;;  %v1643_v61 = vrot.slane %v857_v52, %v5993_v43 }
 0x29c   :  { %v976_v1 = vrot.slane %v962_v55, %v5993_v43  ;;  %v977_v6 = vcombine.low %v954_v51, %v969_v56  ;;  %v978_v7 = vcombine.high %v954_v51, %v969_v56  ;;  %v1651_v8 = vcombine.high %v859_v57, %v5756_v16 }
 0x29d   :  { %v1650_v9 = vrot.slane %v1636_v60, %v5993_v43  ;;  %v1658_v10 = vrot.slane %v859_v57, %v5993_v43  ;;  %v322_v60 = vsub.s32 3, %v5955_v62 }
 0x29e   :  { %v985_v11 = vrot.slane %v977_v6, %v5998_v54  ;;  %v992_v12 = vrot.slane %v978_v7, %v5998_v54  ;;  %v993_v13 = vcombine.low %v961_v58, %v976_v1  ;;  %v994_v14 = vcombine.high %v961_v58, %v976_v1 }
 0x29f   :  { %v1665_v15 = vrot.slane %v1651_v8, %v5993_v43  ;;  %v1666_v17 = vcombine.low %v1643_v61, %v1658_v10  ;;  %v1667_v18 = vcombine.high %v1643_v61, %v1658_v10  ;;  %v318_v58 = vsub.s32 2, %v5955_v62 }
 0x2a0   :  { %v1001_v19 = vrot.slane %v993_v13, %v5998_v54  ;;  %v1008_v20 = vrot.slane %v994_v14, %v5998_v54  ;;  %v1013_v21 = vcombine.low %v985_v11, %v992_v12  ;;  %v4735_v22 = vcombine.high %v985_v11, %v992_v12 }
 0x2a1   :  { %v1674_v23 = vrot.slane %v1666_v17, %v5998_v54  ;;  %v1681_v24 = vrot.slane %v1667_v18, %v5998_v54  ;;  %v1682_v25 = vcombine.low %v1650_v9, %v1665_v15  ;;  %v1683_v26 = vcombine.high %v1650_v9, %v1665_v15 }
 0x2a2   :  { %v1020_v28 = vrot.slane %v1013_v21, %v5993_v43  ;;  %v1028_v29 = vrot.slane %v4735_v22, %v5993_v43  ;;  %v1029_v30 = vcombine.low %v1001_v19, %v1008_v20  ;;  %v4736_v31 = vcombine.high %v1001_v19, %v1008_v20 }
 0x2a3   :  { %v1690_v32 = vrot.slane %v1682_v25, %v5998_v54  ;;  %v1697_v33 = vrot.slane %v1683_v26, %v5998_v54  ;;  %v1702_v34 = vcombine.low %v1674_v23, %v1681_v24  ;;  %v4745_v35 = vcombine.high %v1674_v23, %v1681_v24 }
 0x2a4   :  { %v1036_v36 = vrot.slane %v1029_v30, %v5993_v43  ;;  %v1044_v37 = vrot.slane %v4736_v31, %v5993_v43  ;;  %v1045_v39 = vcombine.low %v1020_v28, %v1028_v29  ;;  %v319_v61 = vrot.slane %v5986_v38, %v318_v58 }
 0x2a5   :  { %v1718_v40 = vcombine.low %v1690_v32, %v1697_v33  ;;  %v4746_v41 = vcombine.high %v1690_v32, %v1697_v33  ;;  %v1709_v27 = vrot.slane %v1702_v34, %v5993_v43  ;;  %v1717_v42 = vrot.slane %v4745_v35, %v5993_v43 }
 0x2a6   :  { %v1053_v44 = vcombine.low %v1036_v36, %v1044_v37  ;;  %v1052_v48 = vrot.slane %v1045_v39, %v5998_v54  ;;  %v323_v1 = vrot.slane %v5986_v38, %v322_v60 }
 0x2a7   :  { %v1725_v45 = vrot.slane %v1718_v40, %v5993_v43  ;;  %v1733_v46 = vrot.slane %v4746_v41, %v5993_v43  ;;  %v1734_v47 = vcombine.low %v1709_v27, %v1717_v42 }
 0x2a8   :  { %v1060_v49 = vrot.slane %v1053_v44, %v5998_v54 }
 0x2a9   :  { %v1742_v50 = vcombine.low %v1725_v45, %v1733_v46  ;;  %v1741_v53 = vrot.slane %v1734_v47, %v5998_v54 }
 0x2aa   :  { %v6028_v51 = vcombine.low %v1052_v48, %v1060_v49  ;;  %v6030_v52 = vcombine.high %v1052_v48, %v1060_v49 }
 0x2ab   :  { %v1749_v55 = vrot.slane %v1742_v50, %v5998_v54 }
 0x2ad   :  { %v6034_v56 = vcombine.low %v1741_v53, %v1749_v55  ;;  %v6036_v57 = vcombine.high %v1741_v53, %v1749_v55 }
 0x2d6   :  { %v895_v6 = vpop.f32.mrb[4].mxu0 }
 0x2d7   :  { %v896_v7 = vadd.f32 %v895_v6, %v319_v61  ;;  %v897_v8 = vpop.f32.mrb[5].mxu0 }
 0x2d8   :  { %v898_v9 = vadd.f32 %v897_v8, %v323_v1  ;;  %v899_v10 = vpop.f32.mrb[6].mxu0 }
 0x2d9   :  { %v1065_v11 = vcombine.high %v896_v7, %v5756_v16  ;;  %v1072_v12 = vrot.slane %v896_v7, %v5993_v43  ;;  %v900_v13 = vadd.f32 %v899_v10, %v319_v61  ;;  %v901_v14 = vpop.f32.mrb[7].mxu0 }
 0x2da   :  { %v1080_v15 = vcombine.high %v898_v9, %v5756_v16  ;;  %v1087_v17 = vrot.slane %v898_v9, %v5993_v43  ;;  %v902_v18 = vadd.f32 %v901_v14, %v323_v1 }
 0x2db   :  { %v1079_v19 = vrot.slane %v1065_v11, %v5993_v43  ;;  %v1754_v20 = vcombine.high %v900_v13, %v5756_v16  ;;  %v1761_v21 = vrot.slane %v900_v13, %v5993_v43 }
 0x2dc   :  { %v1094_v22 = vrot.slane %v1080_v15, %v5993_v43  ;;  %v1095_v23 = vcombine.low %v1072_v12, %v1087_v17  ;;  %v1096_v24 = vcombine.high %v1072_v12, %v1087_v17  ;;  %v1769_v25 = vcombine.high %v902_v18, %v5756_v16 }
 0x2dd   :  { %v1768_v26 = vrot.slane %v1754_v20, %v5993_v43  ;;  %v1776_v28 = vrot.slane %v902_v18, %v5993_v43 }
 0x2de   :  { %v1103_v29 = vrot.slane %v1095_v23, %v5998_v54  ;;  %v1110_v30 = vrot.slane %v1096_v24, %v5998_v54  ;;  %v1111_v31 = vcombine.low %v1079_v19, %v1094_v22  ;;  %v1112_v32 = vcombine.high %v1079_v19, %v1094_v22 }
 0x2df   :  { %v1783_v33 = vrot.slane %v1769_v25, %v5993_v43  ;;  %v1784_v34 = vcombine.low %v1761_v21, %v1776_v28  ;;  %v1785_v35 = vcombine.high %v1761_v21, %v1776_v28  ;;  %v1063_v28 = vpack.c.bf16 %v6028_v51, %v6028_v51 }
 0x2e0   :  { %v1119_v36 = vrot.slane %v1111_v31, %v5998_v54  ;;  %v1126_v37 = vrot.slane %v1112_v32, %v5998_v54  ;;  %v1131_v39 = vcombine.low %v1103_v29, %v1110_v30  ;;  %v4737_v40 = vcombine.high %v1103_v29, %v1110_v30 }
 0x2e1   :  { %v1792_v41 = vrot.slane %v1784_v34, %v5998_v54  ;;  %v1799_v27 = vrot.slane %v1785_v35, %v5998_v54  ;;  %v1800_v42 = vcombine.low %v1768_v26, %v1783_v33  ;;  %v1801_v44 = vcombine.high %v1768_v26, %v1783_v33 }
 0x2e2   :  { %v1138_v45 = vrot.slane %v1131_v39, %v5993_v43  ;;  %v1146_v46 = vrot.slane %v4737_v40, %v5993_v43  ;;  %v1147_v47 = vcombine.low %v1119_v36, %v1126_v37  ;;  %v4738_v48 = vcombine.high %v1119_v36, %v1126_v37 }
 0x2e3   :  { %v1808_v49 = vrot.slane %v1800_v42, %v5998_v54  ;;  %v1815_v50 = vrot.slane %v1801_v44, %v5998_v54  ;;  %v1820_v53 = vcombine.low %v1792_v41, %v1799_v27  ;;  %v4747_v55 = vcombine.high %v1792_v41, %v1799_v27 }
 0x2e4   :  { %v1154_v61 = vrot.slane %v1147_v47, %v5993_v43  ;;  %v1162_v1 = vrot.slane %v4738_v48, %v5993_v43  ;;  %v1163_v6 = vcombine.low %v1138_v45, %v1146_v46  ;;  %v1752_v30 = vpack.c.bf16 %v6034_v56, %v6034_v56 }
 0x2e5   :  { %v1827_v7 = vrot.slane %v1820_v53, %v5993_v43  ;;  %v1835_v8 = vrot.slane %v4747_v55, %v5993_v43  ;;  %v1836_v9 = vcombine.low %v1808_v49, %v1815_v50  ;;  %v4748_v10 = vcombine.high %v1808_v49, %v1815_v50 }
 0x2e6   :  { %v1171_v11 = vcombine.low %v1154_v61, %v1162_v1  ;;  %v1170_v15 = vrot.slane %v1163_v6, %v5998_v54  ;;  %v1064_v51 = vpack.c.bf16 %v6030_v52, %v6030_v52  ;;  %v1753_v56 = vpack.c.bf16 %v6036_v57, %v6036_v57 }
 0x2e7   :  { %v1843_v12 = vrot.slane %v1836_v9, %v5993_v43  ;;  %v1851_v13 = vrot.slane %v4748_v10, %v5993_v43  ;;  %v1852_v14 = vcombine.low %v1827_v7, %v1835_v8  ;;  %v326_v32 = vsub.s32 4, %v5955_v62 }
 0x2e8   :  { %v1178_v17 = vrot.slane %v1171_v11, %v5998_v54  ;;  %v330_v33 = vsub.s32 5, %v5955_v62 }
 0x2e9   :  { %v1860_v18 = vcombine.low %v1843_v12, %v1851_v13  ;;  %v1859_v21 = vrot.slane %v1852_v14, %v5998_v54  ;;  %v327_v34 = vrot.slane %v5986_v38, %v326_v32 }
 0x2ea   :  { %v1179_v19 = vcombine.low %v1170_v15, %v1178_v17  ;;  %v1180_v20 = vcombine.high %v1170_v15, %v1178_v17  ;;  %v331_v52 = vrot.slane %v5986_v38, %v330_v33 }
 0x2eb   :  { %v1867_v22 = vrot.slane %v1860_v18, %v5998_v54 }
 0x2ec   :  { %v1181_v23 = vpack.c.bf16 %v1179_v19, %v1179_v19  ;;  %v1182_v29 = vpack.c.bf16 %v1180_v20, %v1180_v20 }
 0x2ed   :  { %v1868_v24 = vcombine.low %v1859_v21, %v1867_v22  ;;  %v1869_v25 = vcombine.high %v1859_v21, %v1867_v22 }
 0x2ee   :  { %5064 = vmatpush3.bf16.xpose.msra.mxu0 %v1181_v23 }
 0x2ef   :  { %v1870_v26 = vpack.c.bf16 %v1868_v24, %v1868_v24  ;;  %5069 = vmatprep.subr.bf16.mxu0 %v5756_v16  ;;  %v1871_v31 = vpack.c.bf16 %v1869_v25, %v1869_v25 }
 0x2f1   :  { %5088 = vmatpush3.bf16.xpose.msra.mxu1 %v1870_v26 }
 0x2f2   :  { %5093 = vmatprep.subr.bf16.mxu1 %v5756_v16 }
 0x2f5   :  { %5066 = vmatmul.mubr.bf16.vlgmr.msra.gmra.mrb[12].mxu0 %v1063_v28 }
 0x2f6   :  { %5070 = vmatpush3.bf16.xpose.msra.mxu0 %v1182_v29  ;;  %5071 = vmatprep.mubr.msk.bf16.mxu0 %vm5757_vm0, %v5756_v16 }
 0x2f7   :  { %5075 = vmatprep.subr.bf16.mxu0 %v5756_v16 }
 0x2f8   :  { %5090 = vmatmul.mubr.bf16.vlgmr.msra.gmra.mrb[0].mxu1 %v1752_v30 }
 0x2f9   :  { %5094 = vmatpush3.bf16.xpose.msra.mxu1 %v1871_v31  ;;  %5095 = vmatprep.mubr.msk.bf16.mxu1 %vm5757_vm0, %v5756_v16 }
 0x2fa   :  { %5099 = vmatprep.subr.bf16.mxu1 %v5756_v16 }
 0x2fd   :  { %5072 = vmatmul.mubr.bf16.vlgmr.msra.gmra.mrb[16].mxu0 %v1064_v51 }
 0x2fe   :  { %5077 = vmatprep.mubr.msk.bf16.mxu0 %vm5757_vm0, %v5756_v16 }
 0x300   :  { %5096 = vmatmul.mubr.bf16.vlgmr.msra.gmra.mrb[4].mxu1 %v1753_v56 }
 0x301   :  { %5101 = vmatprep.mubr.msk.bf16.mxu1 %vm5757_vm0, %v5756_v16 }
 0x316   :  { %v938_v57 = vpop.f32.mrb[8].mxu0 }
 0x317   :  { %v939_v35 = vadd.f32 %v938_v57, %v327_v34  ;;  %v940_v36 = vpop.f32.mrb[9].mxu0 }
 0x318   :  { %v941_v37 = vadd.f32 %v940_v36, %v331_v52  ;;  %v942_v39 = vpop.f32.mrb[10].mxu0 }
 0x319   :  { %v1183_v40 = vcombine.high %v939_v35, %v5756_v16  ;;  %v1190_v41 = vrot.slane %v939_v35, %v5993_v43  ;;  %v943_v27 = vadd.f32 %v942_v39, %v327_v34  ;;  %v944_v42 = vpop.f32.mrb[11].mxu0 }
 0x31a   :  { %v1198_v44 = vcombine.high %v941_v37, %v5756_v16  ;;  %v1205_v45 = vrot.slane %v941_v37, %v5993_v43  ;;  %v945_v46 = vadd.f32 %v944_v42, %v331_v52 }
 0x31b   :  { %v1197_v47 = vrot.slane %v1183_v40, %v5993_v43  ;;  %v1872_v38 = vcombine.high %v943_v27, %v5756_v16  ;;  %v1879_v48 = vrot.slane %v943_v27, %v5993_v43 }
 0x31c   :  { %v1212_v49 = vrot.slane %v1198_v44, %v5993_v43  ;;  %v1213_v50 = vcombine.low %v1190_v41, %v1205_v45  ;;  %v1214_v53 = vcombine.high %v1190_v41, %v1205_v45  ;;  %v1887_v55 = vcombine.high %v945_v46, %v5756_v16 }
 0x31d   :  { %v1886_v61 = vrot.slane %v1872_v38, %v5993_v43  ;;  %v1894_v1 = vrot.slane %v945_v46, %v5993_v43 }
 0x31e   :  { %v1221_v6 = vrot.slane %v1213_v50, %v5998_v54  ;;  %v1228_v7 = vrot.slane %v1214_v53, %v5998_v54  ;;  %v1229_v8 = vcombine.low %v1197_v47, %v1212_v49  ;;  %v1230_v9 = vcombine.high %v1197_v47, %v1212_v49 }
 0x31f   :  { %v1901_v10 = vrot.slane %v1887_v55, %v5993_v43  ;;  %v1902_v11 = vcombine.low %v1879_v48, %v1894_v1  ;;  %v1903_v12 = vcombine.high %v1879_v48, %v1894_v1 }
 0x320   :  { %v1237_v13 = vrot.slane %v1229_v8, %v5998_v54  ;;  %v1244_v14 = vrot.slane %v1230_v9, %v5998_v54  ;;  %v1249_v15 = vcombine.low %v1221_v6, %v1228_v7  ;;  %v4739_v17 = vcombine.high %v1221_v6, %v1228_v7 }
 0x321   :  { %v1910_v18 = vrot.slane %v1902_v11, %v5998_v54  ;;  %v1917_v19 = vrot.slane %v1903_v12, %v5998_v54  ;;  %v1918_v20 = vcombine.low %v1886_v61, %v1901_v10  ;;  %v1919_v21 = vcombine.high %v1886_v61, %v1901_v10 }
 0x322   :  { %v1256_v22 = vrot.slane %v1249_v15, %v5993_v43  ;;  %v1264_v23 = vrot.slane %v4739_v17, %v5993_v43  ;;  %v1265_v24 = vcombine.low %v1237_v13, %v1244_v14  ;;  %v4740_v25 = vcombine.high %v1237_v13, %v1244_v14 }
 0x323   :  { %v1926_v26 = vrot.slane %v1918_v20, %v5998_v54  ;;  %v1933_v28 = vrot.slane %v1919_v21, %v5998_v54  ;;  %v1938_v29 = vcombine.low %v1910_v18, %v1917_v19  ;;  %v4749_v30 = vcombine.high %v1910_v18, %v1917_v19 }
 0x324   :  { %v1272_v31 = vrot.slane %v1265_v24, %v5993_v43  ;;  %v1280_v51 = vrot.slane %v4740_v25, %v5993_v43  ;;  %v1281_v56 = vcombine.low %v1256_v22, %v1264_v23  ;;  %v1384_v8 = vand.u32 127, %v179_v59 }
 0x325   :  { %v1945_v34 = vrot.slane %v1938_v29, %v5993_v43  ;;  %v1953_v52 = vrot.slane %v4749_v30, %v5993_v43  ;;  %v1954_v57 = vcombine.low %v1926_v26, %v1933_v28  ;;  %v4750_v35 = vcombine.high %v1926_v26, %v1933_v28 }
 0x326   :  { %v1289_v36 = vcombine.low %v1272_v31, %v1280_v51  ;;  %v1288_v41 = vrot.slane %v1281_v56, %v5998_v54  ;;  %vm1385_vm2 = vcmp.le.s32.totalorder %v1384_v8, %v5955_v62  ;;  %v5285_v8 = vld [vmem:[#allocation10] ss:$8 sps:$4 sm:$0xff]  }
 0x327   :  { %v1961_v37 = vrot.slane %v1954_v57, %v5993_v43  ;;  %v1969_v39 = vrot.slane %v4750_v35, %v5993_v43  ;;  %v1970_v40 = vcombine.low %v1945_v34, %v1953_v52 }
 0x328   :  { %v1296_v27 = vrot.slane %v1289_v36, %v5998_v54 }
 0x329   :  { %v1978_v42 = vcombine.low %v1961_v37, %v1969_v39  ;;  %v1977_v46 = vrot.slane %v1970_v40, %v5998_v54 }
 0x32a   :  { %v1297_v44 = vcombine.low %v1288_v41, %v1296_v27  ;;  %v1298_v45 = vcombine.high %v1288_v41, %v1296_v27 }
 0x32b   :  { %v1985_v47 = vrot.slane %v1978_v42, %v5998_v54 }
 0x32c   :  { %v1299_v38 = vpack.c.bf16 %v1297_v44, %v1297_v44  ;;  %v1300_v48 = vpack.c.bf16 %v1298_v45, %v1298_v45 }
 0x32d   :  { %v1986_v49 = vcombine.low %v1977_v46, %v1985_v47  ;;  %v1987_v50 = vcombine.high %v1977_v46, %v1985_v47 }
 0x32e   :  { %v1426_v53 = vsel %vm1424_vm1, %v1299_v38, 0  ;;  %v1472_v55 = vsel %vm1424_vm1, %v1300_v48, 0 }
 0x32f   :  { %5076 = vmatpush3.bf16.msra.mxu0 %v1426_v53  ;;  %v1988_v61 = vpack.c.bf16 %v1986_v49, %v1986_v49  ;;  %v1989_v1 = vpack.c.bf16 %v1987_v50, %v1987_v50 }
 0x330   :  { %5081 = vmatprep.subr.bf16.mxu0 %v5756_v16 }
 0x331   :  { %v2106_v6 = vsel %vm1424_vm1, %v1988_v61, 0  ;;  %v2152_v7 = vsel %vm1424_vm1, %v1989_v1, 0 }
 0x332   :  { %5100 = vmatpush3.bf16.msra.mxu1 %v2106_v6 }
 0x333   :  { %5105 = vmatprep.subr.bf16.mxu1 %v5756_v16 }
 0x3c8   :  { %v1337_v9 = vpop.f32.mrb[12].mxu0 }
 0x3c9   :  { %v1388_v10 = vsel %vm1385_vm2, %v1337_v9, -1e+30  ;;  %v5067_v11 = vpop.f32.mrb[13].mxu0  ;;  %v5287_v9 = vld [vmem:[#allocation10 + $0x4] ss:$8 sps:$4 sm:$0xff]  }
 0x3ca   :  { %v1340_v12 = vpop.f32.mrb[14].mxu0  ;;  %v1391_v13 = vsel %vm1390_vm3, %v1388_v10, -inf  ;;  %v5293_v11 = vld [vmem:[#allocation10 + $0x24] ss:$8 sps:$4 sm:$0xff]  }
 0x3cb   :  { %v2024_v14 = vpop.f32.mrb[0].mxu1  ;;  %1392 = vmax.xlane.f32.xlu0 %v1391_v13  ;;  %v5068_v15 = vpop.f32.mrb[15].mxu0  ;;  %v5291_v12 = vld [vmem:[#allocation10 + $0x20] ss:$8 sps:$4 sm:$0xff]   ;;  %v5296_v13 = vld [vmem:[#allocation10 + $0x34] ss:$8 sps:$4 sm:$0xff]  }
 0x3cc   :  { %v2070_v17 = vsel %vm1385_vm2, %v2024_v14, -1e+30  ;;  %v5091_v18 = vpop.f32.mrb[1].mxu1  ;;  %v5294_v14 = vld [vmem:[#allocation10 + $0x30] ss:$8 sps:$4 sm:$0xff]  }
 0x3cd   :  { %v2027_v19 = vpop.f32.mrb[2].mxu1  ;;  %v2072_v59 = vsel %vm1390_vm3, %v2070_v17, -inf  ;;  %v5299_v15 = vld [vmem:[#allocation10 + $0x44] ss:$8 sps:$4 sm:$0xff]   ;;  %v5302_v18 = vld [vmem:[#allocation10 + $0x54] ss:$8 sps:$4 sm:$0xff]  }
 0x3ce   :  { %2073 = vmax.xlane.f32.xlu1 %v2072_v59  ;;  %v5092_v20 = vpop.f32.mrb[3].mxu1  ;;  %v5300_v19 = vld [vmem:[#allocation10 + $0x50] ss:$8 sps:$4 sm:$0xff]   ;;  %v5305_v59 = vld [vmem:[#allocation10 + $0x64] ss:$8 sps:$4 sm:$0xff]  }
 0x3cf   :  { %v5303_v20 = vld [vmem:[#allocation10 + $0x60] ss:$8 sps:$4 sm:$0xff]  }
 0x3d0   :  { %v1377_v21 = vpop.f32.mrb[16].mxu0 }
 0x3d1   :  { %v1389_v22 = vsel %vm1385_vm2, %v1377_v21, -1e+30  ;;  %v5073_v23 = vpop.f32.mrb[17].mxu0  ;;  %v5308_v21 = vld [vmem:[#allocation10 + $0x74] ss:$8 sps:$4 sm:$0xff]  }
 0x3d2   :  { %v1380_v24 = vpop.f32.mrb[18].mxu0  ;;  %v1394_v25 = vsel %vm1390_vm3, %v1389_v22, -inf  ;;  %v5311_v23 = vld [vmem:[#allocation10 + $0x84] ss:$8 sps:$4 sm:$0xff]  }
 0x3d3   :  { %v2064_v26 = vpop.f32.mrb[4].mxu1  ;;  %1395 = vmax.xlane.f32.xlu0 %v1394_v25  ;;  %v5074_v28 = vpop.f32.mrb[19].mxu0  ;;  %v5309_v24 = vld [vmem:[#allocation10 + $0x80] ss:$8 sps:$4 sm:$0xff]   ;;  %v5314_v25 = vld [vmem:[#allocation10 + $0x94] ss:$8 sps:$4 sm:$0xff]  }
 0x3d4   :  { %v2071_v29 = vsel %vm1385_vm2, %v2064_v26, -1e+30  ;;  %v5097_v30 = vpop.f32.mrb[5].mxu1  ;;  %v5312_v26 = vld [vmem:[#allocation10 + $0x90] ss:$8 sps:$4 sm:$0xff]  }
 0x3d5   :  { %v2067_v31 = vpop.f32.mrb[6].mxu1  ;;  %v2075_v51 = vsel %vm1390_vm3, %v2071_v29, -inf  ;;  %v5317_v28 = vld [vmem:[#allocation10 + $0xa4] ss:$8 sps:$4 sm:$0xff]   ;;  %v5320_v30 = vld [vmem:[#allocation10 + $0xb4] ss:$8 sps:$4 sm:$0xff]  }
 0x3d6   :  { %2076 = vmax.xlane.f32.xlu1 %v2075_v51  ;;  %v5098_v56 = vpop.f32.mrb[7].mxu1  ;;  %v5318_v31 = vld [vmem:[#allocation10 + $0xb0] ss:$8 sps:$4 sm:$0xff]   ;;  %v5323_v51 = vld [vmem:[#allocation10 + $0xc4] ss:$8 sps:$4 sm:$0xff]  }
 0x3d7   :  { %v5321_v56 = vld [vmem:[#allocation10 + $0xc0] ss:$8 sps:$4 sm:$0xff]  }
 0x458   :  { %v6154_v34 = vpop.xlane.xlu0 %1392 }
 0x459   :  { %v1403_v52 = vsub.f32 %v1388_v10, %v6154_v34  ;;  %v5288_v10 = vld [vmem:[#allocation10 + $0x10] ss:$8 sps:$4 sm:$0xff]  }
 0x45b   :  { %v1405_v57 = vmul.f32 1.442695, %v1403_v52  ;;  %v6157_v35 = vpop.xlane.xlu1 %2073  ;;  %v5324_v52 = vld [vmem:[#allocation10 + $0xd0] ss:$8 sps:$4 sm:$0xff]  }
 0x45c   :  { %v2084_v36 = vsub.f32 %v2070_v17, %v6157_v35  ;;  %v5297_v17 = vld [vmem:[#allocation10 + $0x40] ss:$8 sps:$4 sm:$0xff]  }
 0x45d   :  { %5529 = vpow2.f32 %v1405_v57  ;;  %v5326_v57 = vld [vmem:[#allocation10 + $0xd4] ss:$8 sps:$4 sm:$0xff]  }
 0x45e   :  { %v2086_v37 = vmul.f32 1.442695, %v2084_v36  ;;  %v5329_v36 = vld [vmem:[#allocation10 + $0xe4] ss:$8 sps:$4 sm:$0xff]  }
 0x460   :  { %v6160_v39 = vpop.xlane.xlu0 %1395  ;;  %5531 = vpow2.f32 %v2086_v37  ;;  %v5327_v37 = vld [vmem:[#allocation10 + $0xe0] ss:$8 sps:$4 sm:$0xff]  }
 0x461   :  { %v1404_v40 = vsub.f32 %v1389_v22, %v6160_v39  ;;  %v5306_v22 = vld [vmem:[#allocation10 + $0x70] ss:$8 sps:$4 sm:$0xff]  }
 0x463   :  { %v1407_v41 = vmul.f32 1.442695, %v1404_v40  ;;  %v6163_v27 = vpop.xlane.xlu1 %2076  ;;  %v5332_v40 = vld [vmem:[#allocation10 + $0xf4] ss:$8 sps:$4 sm:$0xff]  }
 0x464   :  { %v2085_v42 = vsub.f32 %v2071_v29, %v6163_v27  ;;  %v5315_v29 = vld [vmem:[#allocation10 + $0xa0] ss:$8 sps:$4 sm:$0xff]  }
 0x465   :  { %5533 = vpow2.f32 %v1407_v41  ;;  %v5330_v41 = vld [vmem:[#allocation10 + $0xf0] ss:$8 sps:$4 sm:$0xff]  }
 0x466   :  { %v2088_v44 = vmul.f32 1.442695, %v2085_v42  ;;  %v1397_v42 = vsub.f32 -inf, %v6154_v34 }
 0x467   :  { %v5530_v45 = vpop.eup %5529 }
 0x468   :  { %5535 = vpow2.f32 %v2088_v44  ;;  %v1411_v46 = vsel %vm1390_vm3, %v5530_v45, 0.0  ;;  %v1419_v47 = vpack.c.bf16 %v5530_v45, %v5530_v45  ;;  %v2078_v44 = vsub.f32 -inf, %v6157_v35 }
 0x469   :  { %1412 = vadd.xlane.f32.xlu0 %v1411_v46  ;;  %v1399_v45 = vmul.f32 1.442695, %v1397_v42 }
 0x46a   :  { %v5532_v38 = vpop.eup %5531  ;;  %5078 = vmatmul.mubr.msk.bf16.vlgmr.msra.gmra.mrb[20].mxu0 %vm1390_vm3, %v1419_v47  ;;  %v2080_v46 = vmul.f32 1.442695, %v2078_v44  ;;  %v1398_v47 = vsub.f32 -inf, %v6160_v39 }
 0x46b   :  { %5082 = vmatpush3.bf16.msra.mxu0 %v1472_v55  ;;  %v2100_v48 = vpack.c.bf16 %v5532_v38, %v5532_v38  ;;  %5083 = vmatprep.mubr.msk.bf16.mxu0 %vm5757_vm0, %v5756_v16  ;;  %v2092_v49 = vsel %vm1390_vm3, %v5532_v38, 0.0  ;;  %5537 = vpow2.f32 %v1399_v45  ;;  %v2079_v38 = vsub.f32 -inf, %v6163_v27 }
 0x46c   :  { %2522 = vmatprep.subr.bf16.mxu0 %v5287_v9  ;;  %5539 = vpow2.f32 %v2080_v46 }
 0x46d   :  { %5102 = vmatmul.mubr.msk.bf16.vlgmr.msra.gmra.mrb[8].mxu1 %vm1390_vm3, %v2100_v48  ;;  %2093 = vadd.xlane.f32.xlu0 %v2092_v49  ;;  %v1401_v48 = vmul.f32 1.442695, %v1398_v47  ;;  %v2082_v49 = vmul.f32 1.442695, %v2079_v38 }
 0x46e   :  { %5106 = vmatpush3.bf16.msra.mxu1 %v2152_v7  ;;  %5107 = vmatprep.mubr.msk.bf16.mxu1 %vm5757_vm0, %v5756_v16  ;;  %v5290_v7 = vld [vmem:[#allocation10 + $0x14] ss:$8 sps:$4 sm:$0xff]  }
 0x46f   :  { %v5534_v50 = vpop.eup %5533  ;;  %5541 = vpow2.f32 %v1401_v48 }
 0x470   :  { %v1414_v53 = vsel %vm1390_vm3, %v5534_v50, 0.0  ;;  %v1420_v61 = vpack.c.bf16 %v5534_v50, %v5534_v50  ;;  %5543 = vpow2.f32 %v2082_v49 }
 0x471   :  { %1415 = vadd.xlane.f32.xlu1 %v1414_v53 }
 0x472   :  { %v5536_v1 = vpop.eup %5535  ;;  %5084 = vmatmul.mubr.msk.bf16.vlgmr.msra.gmra.mrb[24].mxu0 %vm1390_vm3, %v1420_v61 }
 0x473   :  { %v2101_v55 = vpack.c.bf16 %v5536_v1, %v5536_v1  ;;  %v2095_v6 = vsel %vm1390_vm3, %v5536_v1, 0.0  ;;  %2523 = vmatpush1.bf16.msra.mxu0 %v5285_v8 }
 0x474   :  { %2524 = vmatprep.subr.bf16.mxu0 %v5290_v7 }
 0x475   :  { %5108 = vmatmul.mubr.msk.bf16.vlgmr.msra.gmra.mrb[12].mxu1 %vm1390_vm3, %v2101_v55  ;;  %2096 = vadd.xlane.f32.xlu1 %v2095_v6  ;;  %v5538_v53 = vpop.eup %5537 }
 0x476   :  { %v5540_v61 = vpop.eup %5539  ;;  %v1409_v1 = vmul.f32 0.0, %v5538_v53 }
 0x477   :  { %2525 = vmatpush1.bf16.msra.mxu0 %v5288_v10  ;;  %v2090_v6 = vmul.f32 0.0, %v5540_v61 }
 0x478   :  { %2526 = vmatprep.subr.bf16.mxu0 %v5293_v11 }
 0x479   :  { %v5542_v8 = vpop.eup %5541 }
 0x47a   :  { %v5544_v7 = vpop.eup %5543  ;;  %v1410_v39 = vmul.f32 0.0, %v5542_v8 }
 0x47b   :  { %2527 = vmatpush1.bf16.msra.mxu0 %v5291_v12  ;;  %v2091_v11 = vmul.f32 0.0, %v5544_v7 }
 0x47c   :  { %2528 = vmatprep.subr.bf16.mxu0 %v5296_v13 }
 0x47f   :  { %2529 = vmatpush1.bf16.msra.mxu0 %v5294_v14 }
 0x480   :  { %2530 = vmatprep.subr.bf16.mxu0 %v5299_v15 }
 0x483   :  { %2531 = vmatpush1.bf16.msra.mxu0 %v5297_v17 }
 0x484   :  { %2532 = vmatprep.subr.bf16.mxu0 %v5302_v18 }
 0x487   :  { %2533 = vmatpush1.bf16.msra.mxu0 %v5300_v19 }
 0x488   :  { %2534 = vmatprep.subr.bf16.mxu0 %v5305_v59 }
 0x48b   :  { %2535 = vmatpush1.bf16.msra.mxu0 %v5303_v20 }
 0x48c   :  { %2536 = vmatprep.subr.bf16.mxu0 %v5308_v21 }
 0x48f   :  { %2537 = vmatpush1.bf16.msra.mxu0 %v5306_v22 }
 0x490   :  { %2538 = vmatprep.subr.bf16.mxu0 %v5311_v23 }
 0x493   :  { %2539 = vmatpush1.bf16.msra.mxu0 %v5309_v24 }
 0x494   :  { %2540 = vmatprep.subr.bf16.mxu0 %v5314_v25 }
 0x497   :  { %2541 = vmatpush1.bf16.msra.mxu0 %v5312_v26 }
 0x498   :  { %2542 = vmatprep.subr.bf16.mxu0 %v5317_v28 }
 0x49b   :  { %2543 = vmatpush1.bf16.msra.mxu0 %v5315_v29 }
 0x49c   :  { %2544 = vmatprep.subr.bf16.mxu0 %v5320_v30 }
 0x49f   :  { %2545 = vmatpush1.bf16.msra.mxu0 %v5318_v31 }
 0x4a0   :  { %2546 = vmatprep.subr.bf16.mxu0 %v5323_v51 }
 0x4a3   :  { %2547 = vmatpush1.bf16.msra.mxu0 %v5321_v56 }
 0x4a4   :  { %2548 = vmatprep.subr.bf16.mxu0 %v5326_v57 }
 0x4a7   :  { %2549 = vmatpush1.bf16.msra.mxu0 %v5324_v52 }
 0x4a8   :  { %2550 = vmatprep.subr.bf16.mxu0 %v5329_v36 }
 0x4ab   :  { %2551 = vmatpush1.bf16.msra.mxu0 %v5327_v37 }
 0x4ac   :  { %2552 = vmatprep.subr.bf16.mxu0 %v5332_v40 }
 0x4af   :  { %2553 = vmatpush1.bf16.msra.mxu0 %v5330_v41 }
 0x4f6   :  { %v1413_v50 = vpop.xlane.xlu0 %1412 }
 0x4f7   :  { %v1417_v55 = vadd.f32 %v1413_v50, %v1409_v1 }
 0x4f9   :  { %5545 = vrcp.f32 %v1417_v55 }
 0x4fa   :  { %v2094_v34 = vpop.xlane.xlu0 %2093 }
 0x4fb   :  { %v2098_v9 = vadd.f32 %v2094_v34, %v2090_v6 }
 0x4fd   :  { %5547 = vrcp.f32 %v2098_v9 }
 0x4fe   :  { %v1416_v35 = vpop.xlane.xlu1 %1415 }
 0x4ff   :  { %v1418_v10 = vadd.f32 %v1416_v35, %v1410_v39 }
 0x501   :  { %5549 = vrcp.f32 %v1418_v10 }
 0x502   :  { %v2097_v27 = vpop.xlane.xlu1 %2096 }
 0x503   :  { %v2099_v12 = vadd.f32 %v2097_v27, %v2091_v11  ;;  %v5546_v17 = vpop.eup %5545 }
 0x505   :  { %5551 = vrcp.f32 %v2099_v12 }
 0x507   :  { %v5548_v23 = vpop.eup %5547 }
 0x50b   :  { %v5550_v31 = vpop.eup %5549 }
 0x50f   :  { %v5552_v41 = vpop.eup %5551 }
 0x53d   :  { %v1462_v13 = vpop.f32.mrb[20].mxu0 }
 0x53e   :  { %v1514_v14 = vadd.f32 %v1462_v13, %v1409_v1  ;;  %v5079_v15 = vpop.f32.mrb[21].mxu0 }
 0x53f   :  { %v1465_v18 = vpop.f32.mrb[22].mxu0 }
 0x540   :  { %v1518_v19 = vmul.f32 %v5546_v17, %v1514_v14  ;;  %v2142_v59 = vpop.f32.mrb[8].mxu1  ;;  %v5080_v20 = vpop.f32.mrb[23].mxu0 }
 0x541   :  { %v2194_v21 = vadd.f32 %v2142_v59, %v2090_v6  ;;  %v5103_v22 = vpop.f32.mrb[9].mxu1 }
 0x542   :  { %v2145_v24 = vpop.f32.mrb[10].mxu1  ;;  %v1520_v56 = vcombine.high %v1518_v19, %v5756_v16  ;;  %v1527_v42 = vrot.slane %v1518_v19, %v5993_v43 }
 0x543   :  { %v2198_v25 = vmul.f32 %v5548_v23, %v2194_v21  ;;  %v5104_v26 = vpop.f32.mrb[11].mxu1 }
 0x544   :  { %v1534_v49 = vrot.slane %v1520_v56, %v5993_v43 }
 0x545   :  { %v1508_v28 = vpop.f32.mrb[24].mxu0  ;;  %v2200_v47 = vcombine.high %v2198_v25, %v5756_v16  ;;  %v2207_v1 = vrot.slane %v2198_v25, %v5993_v43 }
 0x546   :  { %v1515_v29 = vadd.f32 %v1508_v28, %v1410_v39  ;;  %v5085_v30 = vpop.f32.mrb[25].mxu0 }
 0x547   :  { %v1511_v51 = vpop.f32.mrb[26].mxu0  ;;  %v2214_v7 = vrot.slane %v2200_v47, %v5993_v43 }
 0x548   :  { %v1519_v52 = vmul.f32 %v5550_v31, %v1515_v29  ;;  %v2188_v57 = vpop.f32.mrb[12].mxu1  ;;  %v5086_v36 = vpop.f32.mrb[27].mxu0 }
 0x549   :  { %v2195_v37 = vadd.f32 %v2188_v57, %v2091_v11  ;;  %v5109_v40 = vpop.f32.mrb[13].mxu1 }
 0x54a   :  { %v1535_v44 = vcombine.high %v1519_v52, %v5756_v16  ;;  %v1542_v45 = vrot.slane %v1519_v52, %v5993_v43  ;;  %v2191_v46 = vpop.f32.mrb[14].mxu1 }
 0x54b   :  { %v2199_v38 = vmul.f32 %v5552_v41, %v2195_v37  ;;  %v5110_v48 = vpop.f32.mrb[15].mxu1 }
 0x54c   :  { %v1549_v50 = vrot.slane %v1535_v44, %v5993_v43  ;;  %v1550_v53 = vcombine.low %v1527_v42, %v1542_v45  ;;  %v1551_v61 = vcombine.high %v1527_v42, %v1542_v45 }
 0x54d   :  { %v2215_v55 = vcombine.high %v2199_v38, %v5756_v16  ;;  %v2222_v34 = vrot.slane %v2199_v38, %v5993_v43 }
 0x54e   :  { %v1558_v6 = vrot.slane %v1550_v53, %v5998_v54  ;;  %v1565_v35 = vrot.slane %v1551_v61, %v5998_v54  ;;  %v1566_v8 = vcombine.low %v1534_v49, %v1549_v50  ;;  %v1567_v9 = vcombine.high %v1534_v49, %v1549_v50 }
 0x54f   :  { %v2229_v39 = vrot.slane %v2215_v55, %v5993_v43  ;;  %v2230_v10 = vcombine.low %v2207_v1, %v2222_v34  ;;  %v2231_v27 = vcombine.high %v2207_v1, %v2222_v34 }
 0x550   :  { %v1574_v11 = vrot.slane %v1566_v8, %v5998_v54  ;;  %v1581_v12 = vrot.slane %v1567_v9, %v5998_v54  ;;  %v1586_v13 = vcombine.low %v1558_v6, %v1565_v35  ;;  %v4743_v16 = vcombine.high %v1558_v6, %v1565_v35 }
 0x551   :  { %v2238_v14 = vrot.slane %v2230_v10, %v5998_v54  ;;  %v2245_v15 = vrot.slane %v2231_v27, %v5998_v54  ;;  %v2246_v17 = vcombine.low %v2214_v7, %v2229_v39  ;;  %v2247_v18 = vcombine.high %v2214_v7, %v2229_v39 }
 0x552   :  { %v1602_v19 = vcombine.low %v1574_v11, %v1581_v12  ;;  %v4744_v59 = vcombine.high %v1574_v11, %v1581_v12  ;;  %v1593_v20 = vrot.slane %v1586_v13, %v5993_v43  ;;  %v1601_v21 = vrot.slane %v4743_v16, %v5993_v43  ;;  %v2635_v12 = vld [vmem:[#allocation11] sm:$0xff]  ;;  %v2636_v16 = vld [vmem:[#allocation11 + $0x8] sm:$0xff] }
 0x553   :  { %v2254_v22 = vrot.slane %v2246_v17, %v5998_v54  ;;  %v2261_v23 = vrot.slane %v2247_v18, %v5998_v54  ;;  %v2266_v24 = vcombine.low %v2238_v14, %v2245_v15  ;;  %v4753_v25 = vcombine.high %v2238_v14, %v2245_v15  ;;  %v2639_v13 = vld [vmem:[#allocation11 + $0x20] sm:$0xff]  ;;  %v2640_v15 = vld [vmem:[#allocation11 + $0x28] sm:$0xff] }
 0x554   :  { %v1609_v26 = vrot.slane %v1602_v19, %v5993_v43  ;;  %v1617_v28 = vrot.slane %v4744_v59, %v5993_v43  ;;  %v1618_v29 = vcombine.low %v1593_v20, %v1601_v21  ;;  %v4788_v14 = vcombine.high %v2635_v12, %v2639_v13  ;;  %v2643_v17 = vld [vmem:[#allocation11 + $0x40] sm:$0xff]  ;;  %v2644_v59 = vld [vmem:[#allocation11 + $0x48] sm:$0xff] }
 0x555   :  { %v2282_v30 = vcombine.low %v2254_v22, %v2261_v23  ;;  %v4754_v31 = vcombine.high %v2254_v22, %v2261_v23  ;;  %v2273_v51 = vrot.slane %v2266_v24, %v5993_v43  ;;  %v2281_v56 = vrot.slane %v4753_v25, %v5993_v43  ;;  %v2648_v20 = vld [vmem:[#allocation11 + $0x68] sm:$0xff]  ;;  %v2651_v21 = vld [vmem:[#allocation11 + $0x80] sm:$0xff] }
 0x556   :  { %v1626_v52 = vcombine.low %v1609_v26, %v1617_v28  ;;  %v1625_v40 = vrot.slane %v1618_v29, %v5998_v54  ;;  %v4789_v18 = vcombine.low %v2636_v16, %v2640_v15  ;;  %v4790_v19 = vcombine.high %v2636_v16, %v2640_v15  ;;  %3445 = vmatprep.subr.bf16.mxu1 %v4788_v14  ;;  %v2655_v23 = vld [vmem:[#allocation11 + $0xa0] sm:$0xff]  ;;  %v2652_v24 = vld [vmem:[#allocation11 + $0x88] sm:$0xff] }
 0x557   :  { %v2289_v57 = vrot.slane %v2282_v30, %v5993_v43  ;;  %v2297_v36 = vrot.slane %v4754_v31, %v5993_v43  ;;  %v2298_v37 = vcombine.low %v2273_v51, %v2281_v56  ;;  %v2350_v43 = vld [vmem:[%s6342_s6] sm:$0x3]  ;;  %v4798_v22 = vcombine.high %v2644_v59, %v2648_v20  ;;  %v2659_v31 = vld [vmem:[#allocation11 + $0xc0] sm:$0xff] }
 0x558   :  { %v1633_v41 = vrot.slane %v1626_v52, %v5998_v54  ;;  %v2355_v53 = vrot.slane %v2350_v43, %v5961_v0  ;;  %v2359_v61 = vrot.slane %v2350_v43, %v5958_v63  ;;  %v2656_v25 = vld [vmem:[#allocation11 + $0xa8] sm:$0xff]  ;;  %3488 = vmatprep.subr.bf16.mxu0 %v4790_v19  ;;  %v4797_v28 = vcombine.low %v2644_v59, %v2648_v20  ;;  %v2663_v51 = vld [vmem:[#allocation11 + $0xe0] sm:$0xff] }
 0x559   :  { %v2306_v42 = vcombine.low %v2289_v57, %v2297_v36  ;;  %v2305_v46 = vrot.slane %v2298_v37, %v5998_v54  ;;  %v4804_v29 = vcombine.high %v2651_v21, %v2655_v23  ;;  %v4806_v30 = vcombine.high %v2652_v24, %v2656_v25  ;;  %v2660_v56 = vld [vmem:[#allocation11 + $0xc8] sm:$0xff]  ;;  %v2695_v16 = vld [vmem:[#allocation11 + $0x1e0] sm:$0xff] }
 0x55a   :  { %v1635_v44 = vcombine.high %v1625_v40, %v1633_v41  ;;  %v1634_v45 = vcombine.low %v1625_v40, %v1633_v41  ;;  %v2664_v52 = vld [vmem:[#allocation11 + $0xe8] sm:$0xff]  ;;  %v4803_v57 = vcombine.low %v2651_v21, %v2655_v23  ;;  %v4805_v36 = vcombine.low %v2652_v24, %v2656_v25  ;;  %v2667_v41 = vld [vmem:[#allocation11 + $0x100] sm:$0xff] }
 0x55b   :  { %v2313_v47 = vrot.slane %v2306_v42, %v5998_v54  ;;  %v4812_v37 = vcombine.high %v2659_v31, %v2663_v51  ;;  %v4814_v40 = vcombine.high %v2660_v56, %v2664_v52  ;;  %v2671_v42 = vld [vmem:[#allocation11 + $0x120] sm:$0xff]  ;;  %v2676_v43 = vld [vmem:[#allocation11 + $0x148] sm:$0xff] }
 0x55c   :  { %v2696_v14 = vld [vmem:[#allocation11 + $0x1e8] sm:$0xff]  ;;  %v2699_v19 = vld [vmem:[#allocation11 + $0x200] sm:$0xff] }
 0x55d   :  { %v2315_v38 = vcombine.high %v2305_v46, %v2313_v47  ;;  %v2314_v48 = vcombine.low %v2305_v46, %v2313_v47  ;;  %v4811_v46 = vcombine.low %v2659_v31, %v2663_v51  ;;  %v4813_v47 = vcombine.low %v2660_v56, %v2664_v52  ;;  %v2700_v59 = vld [vmem:[#allocation11 + $0x208] sm:$0xff]  ;;  %v2707_v25 = vld [vmem:[#allocation11 + $0x240] sm:$0xff] }
 0x55e   :  { %v2704_v20 = vld [vmem:[#allocation11 + $0x228] sm:$0xff] }
 0x55f   :  { %v2317_v49 = vpack.c.bf16 %v2315_v38, %v1635_v44  ;;  %v2316_v50 = vpack.c.bf16 %v2314_v48, %v1634_v45  ;;  %v2668_v44 = vld [vmem:[#allocation11 + $0x108] sm:$0xff]  ;;  %v4820_v38 = vcombine.high %v2667_v41, %v2671_v42  ;;  %v4854_v24 = vcombine.high %v2700_v59, %v2704_v20 }
 0x560   :  { %v2672_v45 = vld [vmem:[#allocation11 + $0x128] sm:$0xff]  ;;  %v4853_v31 = vcombine.low %v2700_v59, %v2704_v20  ;;  %v2739_v20 = vld [vmem:[#allocation11 + $0x340] sm:$0xff] }
 0x561   :  { %2554 = vmatprep.mubr.bf16.mxu0 %v2317_v49  ;;  %v4822_v48 = vcombine.high %v2668_v44, %v2672_v45  ;;  %v2675_v49 = vld [vmem:[#allocation11 + $0x140] sm:$0xff] }
 0x562   :  { %2555 = vmatmul.mubr.bf16.vlgmr.msra.gmra.mrb[28].mxu0 %v2316_v50  ;;  %v2679_v50 = vld [vmem:[#allocation11 + $0x160] sm:$0xff] }
 0x563   :  { %3489 = vmatpush1.bf16.msra.mxu0 %v4789_v18 }
 0x564   :  { %3490 = vmatprep.subr.bf16.mxu0 %v4798_v22 }
 0x567   :  { %3491 = vmatpush1.bf16.msra.mxu0 %v4797_v28  ;;  %v2708_v28 = vld [vmem:[#allocation11 + $0x248] sm:$0xff] }
 0x568   :  { %3492 = vmatprep.subr.bf16.mxu0 %v4806_v30 }
 0x56b   :  { %3493 = vmatpush1.bf16.msra.mxu0 %v4805_v36 }
 0x56c   :  { %3494 = vmatprep.subr.bf16.mxu0 %v4814_v40 }
 0x56f   :  { %3495 = vmatpush1.bf16.msra.mxu0 %v4813_v47 }
 0x570   :  { %3496 = vmatprep.subr.bf16.mxu0 %v4822_v48 }
 0x635   :  { %v2556_v1 = vpop.f32.mrb[28].mxu0 }
 0x636   :  { %v2557_v55 = vadd.f32 %v2556_v1, %v2355_v53  ;;  %v2558_v34 = vpop.f32.mrb[29].mxu0  ;;  %v4821_v1 = vcombine.low %v2668_v44, %v2672_v45 }
 0x637   :  { %v2559_v6 = vadd.f32 %v2558_v34, %v2359_v61  ;;  %v2560_v35 = vpop.f32.mrb[30].mxu0 }
 0x638   :  { %v6220_v54 = vadd.f32 %v2557_v55, %v5938_v2  ;;  %v2561_v8 = vadd.f32 %v2560_v35, %v2355_v53  ;;  %v2562_v9 = vpop.f32.mrb[31].mxu0  ;;  %v2680_v53 = vld [vmem:[#allocation11 + $0x168] sm:$0xff]  ;;  %v4828_v55 = vcombine.high %v2675_v49, %v2679_v50  ;;  %v2687_v35 = vld [vmem:[#allocation11 + $0x1a0] sm:$0xff]  ;;  %3497 = vmatpush1.bf16.msra.mxu0 %v4821_v1 }
 0x639   :  { %v6223_v7 = vadd.f32 %v2559_v6, %v5940_v3  ;;  %v2563_v39 = vadd.f32 %v2562_v9, %v2359_v61  ;;  %v4787_v3 = vcombine.low %v2635_v12, %v2639_v13  ;;  %v4819_v61 = vcombine.low %v2667_v41, %v2671_v42  ;;  %v2683_v6 = vld [vmem:[#allocation11 + $0x180] sm:$0xff]  ;;  %v2688_v9 = vld [vmem:[#allocation11 + $0x1a8] sm:$0xff] }
 0x63a   :  { %v6226_v10 = vadd.f32 %v2561_v8, %v5942_v4  ;;  %v2647_v4 = vld [vmem:[#allocation11 + $0x60] sm:$0xff]  ;;  %v4830_v34 = vcombine.high %v2676_v43, %v2680_v53  ;;  %v2684_v8 = vld [vmem:[#allocation11 + $0x188] sm:$0xff]  ;;  %v4835_v15 = vcombine.low %v2683_v6, %v2687_v35 }
 0x63b   :  { %v6229_v27 = vadd.f32 %v2563_v39, %v5944_v5  ;;  %v2571_v11 = vadd.f32 %v6223_v7, %v6220_v54  ;;  %v4796_v5 = vcombine.high %v2643_v17, %v2647_v4  ;;  %3446 = vmatpush1.bf16.msra.mxu1 %v4787_v3  ;;  %v4795_v26 = vcombine.low %v2643_v17, %v2647_v4  ;;  %v2691_v13 = vld [vmem:[#allocation11 + $0x1c0] sm:$0xff]  ;;  %v2692_v3 = vld [vmem:[#allocation11 + $0x1c8] sm:$0xff] }
 0x63c   :  { %v4827_v39 = vcombine.low %v2675_v49, %v2679_v50  ;;  %3498 = vmatprep.subr.bf16.mxu0 %v4830_v34  ;;  %v4838_v12 = vcombine.high %v2684_v8, %v2688_v9  ;;  %v4837_v17 = vcombine.low %v2684_v8, %v2688_v9  ;;  %v4844_v4 = vcombine.high %v2691_v13, %v2695_v16  ;;  %v2716_v1 = vld [vmem:[#allocation11 + $0x288] sm:$0xff]  ;;  %v2723_v9 = vld [vmem:[#allocation11 + $0x2c0] sm:$0xff] }
 0x63d   :  { %2572 = vadd.xlane.f32.xlu0 %v2571_v11  ;;  %v2574_v2 = vadd.f32 %v6229_v27, %v6226_v10  ;;  %3447 = vmatprep.subr.bf16.mxu1 %v4796_v5  ;;  %v4829_v11 = vcombine.low %v2676_v43, %v2680_v53  ;;  %v4846_v18 = vcombine.high %v2692_v3, %v2696_v14  ;;  %v2703_v5 = vld [vmem:[#allocation11 + $0x220] sm:$0xff]  ;;  %v2720_v34 = vld [vmem:[#allocation11 + $0x2a8] sm:$0xff] }
 0x63e   :  { %v4843_v21 = vcombine.low %v2691_v13, %v2695_v16  ;;  %v4845_v22 = vcombine.low %v2692_v3, %v2696_v14  ;;  %v4852_v23 = vcombine.high %v2699_v19, %v2703_v5  ;;  %v4851_v30 = vcombine.low %v2699_v19, %v2703_v5  ;;  %v2715_v53 = vld [vmem:[#allocation11 + $0x280] sm:$0xff] }
 0x63f   :  { %2575 = vadd.xlane.f32.xlu1 %v2574_v2  ;;  %3448 = vmatpush1.bf16.msra.mxu1 %v4795_v26  ;;  %v4836_v2 = vcombine.high %v2683_v6, %v2687_v35  ;;  %v2711_v26 = vld [vmem:[#allocation11 + $0x260] sm:$0xff]  ;;  %v4869_v35 = vcombine.low %v2716_v1, %v2720_v34  ;;  %v4870_v8 = vcombine.high %v2716_v1, %v2720_v34 }
 0x640   :  { %3449 = vmatprep.subr.bf16.mxu1 %v4804_v29  ;;  %3499 = vmatpush1.bf16.msra.mxu0 %v4829_v11  ;;  %v2712_v29 = vld [vmem:[#allocation11 + $0x268] sm:$0xff]  ;;  %v4860_v51 = vcombine.high %v2707_v25, %v2711_v26  ;;  %v4859_v52 = vcombine.low %v2707_v25, %v2711_v26  ;;  %v2731_v14 = vld [vmem:[#allocation11 + $0x300] sm:$0xff] }
 0x641   :  { %3500 = vmatprep.subr.bf16.mxu0 %v4838_v12  ;;  %v4862_v56 = vcombine.high %v2708_v28, %v2712_v29  ;;  %v2724_v11 = vld [vmem:[#allocation11 + $0x2c8] sm:$0xff] }
 0x642   :  { %v2728_v12 = vld [vmem:[#allocation11 + $0x2e8] sm:$0xff] }
 0x643   :  { %3450 = vmatpush1.bf16.msra.mxu1 %v4803_v57  ;;  %v4861_v57 = vcombine.low %v2708_v28, %v2712_v29  ;;  %v4877_v16 = vcombine.low %v2724_v11, %v2728_v12  ;;  %v4878_v3 = vcombine.high %v2724_v11, %v2728_v12  ;;  %v2747_v29 = vld [vmem:[#allocation11 + $0x380] sm:$0xff] }
 0x644   :  { %3451 = vmatprep.subr.bf16.mxu1 %v4812_v37  ;;  %3501 = vmatpush1.bf16.msra.mxu0 %v4837_v17  ;;  %v2732_v17 = vld [vmem:[#allocation11 + $0x308] sm:$0xff] }
 0x645   :  { %3502 = vmatprep.subr.bf16.mxu0 %v4846_v18  ;;  %v2736_v18 = vld [vmem:[#allocation11 + $0x328] sm:$0xff] }
 0x646   :  { %v4885_v5 = vcombine.low %v2732_v17, %v2736_v18  ;;  %v4886_v59 = vcombine.high %v2732_v17, %v2736_v18 }
 0x647   :  { %3452 = vmatpush1.bf16.msra.mxu1 %v4811_v46 }
 0x648   :  { %3453 = vmatprep.subr.bf16.mxu1 %v4820_v38  ;;  %3503 = vmatpush1.bf16.msra.mxu0 %v4845_v22  ;;  %v2740_v22 = vld [vmem:[#allocation11 + $0x348] sm:$0xff] }
 0x649   :  { %3504 = vmatprep.subr.bf16.mxu0 %v4854_v24  ;;  %v2744_v24 = vld [vmem:[#allocation11 + $0x368] sm:$0xff] }
 0x64a   :  { %v4893_v26 = vcombine.low %v2740_v22, %v2744_v24  ;;  %v4894_v28 = vcombine.high %v2740_v22, %v2744_v24 }
 0x64b   :  { %3454 = vmatpush1.bf16.msra.mxu1 %v4819_v61  ;;  %v2719_v61 = vld [vmem:[#allocation11 + $0x2a0] sm:$0xff] }
 0x64c   :  { %3455 = vmatprep.subr.bf16.mxu1 %v4828_v55  ;;  %3505 = vmatpush1.bf16.msra.mxu0 %v4853_v31  ;;  %v4868_v55 = vcombine.high %v2715_v53, %v2719_v61  ;;  %v4867_v6 = vcombine.low %v2715_v53, %v2719_v61  ;;  %v2748_v31 = vld [vmem:[#allocation11 + $0x388] sm:$0xff]  ;;  %v2641_v53 = vld [vmem:[#allocation11 + $0x30] sm:$0xff]  ;;  %v2638_v61 = vld [vmem:[#allocation11 + $0x18] sm:$0xff] }
 0x64d   :  { %3506 = vmatprep.subr.bf16.mxu0 %v4862_v56  ;;  %v2752_v56 = vld [vmem:[#allocation11 + $0x3a8] sm:$0xff] }
 0x64f   :  { %3456 = vmatpush1.bf16.msra.mxu1 %v4827_v39  ;;  %v2727_v39 = vld [vmem:[#allocation11 + $0x2e0] sm:$0xff] }
 0x650   :  { %3457 = vmatprep.subr.bf16.mxu1 %v4836_v2  ;;  %3507 = vmatpush1.bf16.msra.mxu0 %v4861_v57  ;;  %v4876_v2 = vcombine.high %v2723_v9, %v2727_v39  ;;  %v4875_v13 = vcombine.low %v2723_v9, %v2727_v39  ;;  %v4901_v57 = vcombine.low %v2748_v31, %v2752_v56 }
 0x651   :  { %3508 = vmatprep.subr.bf16.mxu0 %v4870_v8 }
 0x653   :  { %3458 = vmatpush1.bf16.msra.mxu1 %v4835_v15  ;;  %v2735_v15 = vld [vmem:[#allocation11 + $0x320] sm:$0xff] }
 0x654   :  { %3459 = vmatprep.subr.bf16.mxu1 %v4844_v4  ;;  %3509 = vmatpush1.bf16.msra.mxu0 %v4869_v35  ;;  %v4884_v4 = vcombine.high %v2731_v14, %v2735_v15  ;;  %v4883_v19 = vcombine.low %v2731_v14, %v2735_v15 }
 0x655   :  { %3510 = vmatprep.subr.bf16.mxu0 %v4878_v3 }
 0x657   :  { %3460 = vmatpush1.bf16.msra.mxu1 %v4843_v21  ;;  %v2743_v21 = vld [vmem:[#allocation11 + $0x360] sm:$0xff] }
 0x658   :  { %3461 = vmatprep.subr.bf16.mxu1 %v4852_v23  ;;  %3511 = vmatpush1.bf16.msra.mxu0 %v4877_v16  ;;  %v4892_v23 = vcombine.high %v2739_v20, %v2743_v21  ;;  %v4891_v25 = vcombine.low %v2739_v20, %v2743_v21  ;;  %v2570_v16 = vld [vmem:[%s6344_s8] sm:$0x3] }
 0x659   :  { %3512 = vmatprep.subr.bf16.mxu0 %v4886_v59 }
 0x65b   :  { %3462 = vmatpush1.bf16.msra.mxu1 %v4851_v30  ;;  %v2751_v30 = vld [vmem:[#allocation11 + $0x3a0] sm:$0xff] }
 0x65c   :  { %3463 = vmatprep.subr.bf16.mxu1 %v4860_v51  ;;  %3513 = vmatpush1.bf16.msra.mxu0 %v4885_v5  ;;  %v4900_v51 = vcombine.high %v2747_v29, %v2751_v30  ;;  %v2622_v5 = vrot.slane %v2570_v16, %v5961_v0 }
 0x65d   :  { %3514 = vmatprep.subr.bf16.mxu0 %v4894_v28 }
 0x65f   :  { %3464 = vmatpush1.bf16.msra.mxu1 %v4859_v52  ;;  %v4899_v52 = vcombine.low %v2747_v29, %v2751_v30  ;;  %v2649_v30 = vld [vmem:[#allocation11 + $0x70] sm:$0xff] }
 0x660   :  { %3465 = vmatprep.subr.bf16.mxu1 %v4868_v55  ;;  %3515 = vmatpush1.bf16.msra.mxu0 %v4893_v26  ;;  %v2642_v55 = vld [vmem:[#allocation11 + $0x38] sm:$0xff] }
 0x661   :  { %v4794_v35 = vcombine.high %v2638_v61, %v2642_v55 }
 0x663   :  { %3466 = vmatpush1.bf16.msra.mxu1 %v4867_v6  ;;  %v4793_v6 = vcombine.low %v2638_v61, %v2642_v55 }
 0x664   :  { %3467 = vmatprep.subr.bf16.mxu1 %v4876_v2 }
 0x667   :  { %3468 = vmatpush1.bf16.msra.mxu1 %v4875_v13  ;;  %v2569_v13 = vld [vmem:[%s6343_s7] sm:$0x3] }
 0x668   :  { %3469 = vmatprep.subr.bf16.mxu1 %v4884_v4  ;;  %v2611_v3 = vrot.slane %v2569_v13, %v5958_v63  ;;  %v2607_v14 = vrot.slane %v2569_v13, %v5961_v0  ;;  %v2681_v13 = vld [vmem:[#allocation11 + $0x170] sm:$0xff] }
 0x66b   :  { %3470 = vmatpush1.bf16.msra.mxu1 %v4883_v19  ;;  %v2626_v19 = vrot.slane %v2570_v16, %v5958_v63  ;;  %v2678_v16 = vld [vmem:[#allocation11 + $0x158] sm:$0xff] }
 0x66c   :  { %3471 = vmatprep.subr.bf16.mxu1 %v4892_v23 }
 0x66f   :  { %3472 = vmatpush1.bf16.msra.mxu1 %v4891_v25 }
 0x670   :  { %3473 = vmatprep.subr.bf16.mxu1 %v4900_v51 }
 0x673   :  { %3474 = vmatpush1.bf16.msra.mxu1 %v4899_v52  ;;  %v2653_v52 = vld [vmem:[#allocation11 + $0x90] sm:$0xff] }
 0x6ca   :  { %v2573_v36 = vpop.xlane.xlu0 %2572 }
 0x6cb   :  { %v2577_v37 = vmul.f32 0.00390625, %v2573_v36  ;;  %v4902_v36 = vcombine.high %v2748_v31, %v2752_v56  ;;  %v2650_v31 = vld [vmem:[#allocation11 + $0x78] sm:$0xff] }
 0x6cc   :  { %v2576_v40 = vpop.xlane.xlu1 %2575 }
 0x6cd   :  { %v6236_v41 = vsub.f32 %v6220_v54, %v2577_v37  ;;  %v6239_v42 = vsub.f32 %v6223_v7, %v2577_v37  ;;  %v2578_v44 = vmul.f32 0.00390625, %v2576_v40  ;;  %v2755_v37 = vld [vmem:[#allocation11 + $0x3c0] sm:$0xff]  ;;  %3516 = vmatprep.subr.bf16.mxu0 %v4902_v36  ;;  %v2654_v36 = vld [vmem:[#allocation11 + $0x98] sm:$0xff] }
 0x6ce   :  { %v2759_v40 = vld [vmem:[#allocation11 + $0x3e0] sm:$0xff]  ;;  %3517 = vmatpush1.bf16.msra.mxu0 %v4901_v57  ;;  %v2657_v57 = vld [vmem:[#allocation11 + $0xb0] sm:$0xff] }
 0x6cf   :  { %v6242_v45 = vsub.f32 %v6226_v10, %v2578_v44  ;;  %v6245_v46 = vsub.f32 %v6229_v27, %v2578_v44  ;;  %v2583_v47 = vmul.f32 %v6236_v41, %v6236_v41  ;;  %v2584_v38 = vmul.f32 %v6239_v42, %v6239_v42  ;;  %v2756_v44 = vld [vmem:[#allocation11 + $0x3c8] sm:$0xff] }
 0x6d1   :  { %v2587_v48 = vadd.f32 %v2584_v38, %v2583_v47  ;;  %v2585_v49 = vmul.f32 %v6242_v45, %v6242_v45  ;;  %v2586_v50 = vmul.f32 %v6245_v46, %v6245_v46  ;;  %v4908_v47 = vcombine.high %v2755_v37, %v2759_v40  ;;  %v2760_v38 = vld [vmem:[#allocation11 + $0x3e8] sm:$0xff] }
 0x6d3   :  { %2588 = vadd.xlane.f32.xlu0 %v2587_v48  ;;  %v2590_v43 = vadd.f32 %v2586_v50, %v2585_v49  ;;  %v4907_v48 = vcombine.low %v2755_v37, %v2759_v40  ;;  %v4910_v49 = vcombine.high %v2756_v44, %v2760_v38  ;;  %3475 = vmatprep.subr.bf16.mxu1 %v4908_v47  ;;  %v2658_v37 = vld [vmem:[#allocation11 + $0xb8] sm:$0xff] }
 0x6d4   :  { %v4909_v50 = vcombine.low %v2756_v44, %v2760_v38  ;;  %v4808_v47 = vcombine.high %v2653_v52, %v2657_v57  ;;  %v4810_v38 = vcombine.high %v2654_v36, %v2658_v37  ;;  %v4809_v61 = vcombine.low %v2654_v36, %v2658_v37 }
 0x6d5   :  { %2591 = vadd.xlane.f32.xlu1 %v2590_v43  ;;  %3518 = vmatprep.subr.bf16.mxu0 %v4910_v49  ;;  %v2637_v43 = vld [vmem:[#allocation11 + $0x10] sm:$0xff] }
 0x6d6   :  { %3476 = vmatpush1.bf16.msra.mxu1 %v4907_v48  ;;  %3519 = vmatpush1.bf16.msra.mxu0 %v4909_v50  ;;  %v4792_v1 = vcombine.high %v2637_v43, %v2641_v53  ;;  %v4791_v34 = vcombine.low %v2637_v43, %v2641_v53  ;;  %v2661_v48 = vld [vmem:[#allocation11 + $0xd0] sm:$0xff]  ;;  %v2662_v50 = vld [vmem:[#allocation11 + $0xd8] sm:$0xff]  ;;  %v4807_v53 = vcombine.low %v2653_v52, %v2657_v57 }
 0x6d7   :  { %3574 = vmatprep.subr.bf16.mxu0 %v4794_v35  ;;  %v2665_v49 = vld [vmem:[#allocation11 + $0xf0] sm:$0xff]  ;;  %v2666_v43 = vld [vmem:[#allocation11 + $0xf8] sm:$0xff] }
 0x6d8   :  { %3531 = vmatprep.subr.bf16.mxu1 %v4792_v1  ;;  %v4816_v1 = vcombine.high %v2661_v48, %v2665_v49  ;;  %v4818_v55 = vcombine.high %v2662_v50, %v2666_v43  ;;  %v2670_v35 = vld [vmem:[#allocation11 + $0x118] sm:$0xff] }
 0x6d9   :  { %v2702_v52 = vld [vmem:[#allocation11 + $0x218] sm:$0xff] }
 0x760   :  { %v2589_v8 = vpop.xlane.xlu0 %2588 }
 0x761   :  { %v2593_v9 = vmul.f32 0.00390625, %v2589_v8  ;;  %v2674_v8 = vld [vmem:[#allocation11 + $0x138] sm:$0xff] }
 0x762   :  { %v2592_v39 = vpop.xlane.xlu1 %2591 }
 0x763   :  { %v2595_v11 = vadd.f32 1e-05, %v2593_v9  ;;  %v2594_v2 = vmul.f32 0.00390625, %v2592_v39  ;;  %v4815_v9 = vcombine.low %v2661_v48, %v2665_v49  ;;  %v4817_v39 = vcombine.low %v2662_v50, %v2666_v43 }
 0x765   :  { %5553 = vrsqrt.f32 %v2595_v11  ;;  %v2596_v12 = vadd.f32 1e-05, %v2594_v2  ;;  %v4826_v2 = vcombine.high %v2670_v35, %v2674_v8 }
 0x767   :  { %5555 = vrsqrt.f32 %v2596_v12  ;;  %v2677_v12 = vld [vmem:[#allocation11 + $0x150] sm:$0xff] }
 0x76f   :  { %v5554_v15 = vpop.eup %5553 }
 0x770   :  { %v2599_v17 = vmul.f32 %v5554_v15, %v6236_v41  ;;  %v2600_v4 = vmul.f32 %v5554_v15, %v6239_v42  ;;  %v2645_v41 = vld [vmem:[#allocation11 + $0x50] sm:$0xff]  ;;  %v2646_v42 = vld [vmem:[#allocation11 + $0x58] sm:$0xff]  ;;  %v4825_v15 = vcombine.low %v2670_v35, %v2674_v8 }
 0x771   :  { %v5556_v18 = vpop.eup %5555  ;;  %v4799_v40 = vcombine.low %v2645_v41, %v2649_v30  ;;  %v4801_v44 = vcombine.low %v2646_v42, %v2650_v31 }
 0x772   :  { %v2601_v59 = vmul.f32 %v5556_v18, %v6242_v45  ;;  %v2602_v20 = vmul.f32 %v5556_v18, %v6245_v46  ;;  %v2615_v21 = vmul.f32 %v2611_v3, %v2600_v4  ;;  %v2614_v22 = vmul.f32 %v2607_v14, %v2599_v17  ;;  %v2685_v18 = vld [vmem:[#allocation11 + $0x190] sm:$0xff] }
 0x773   :  { %v4800_v45 = vcombine.high %v2645_v41, %v2649_v30  ;;  %v4802_v46 = vcombine.high %v2646_v42, %v2650_v31  ;;  %v4832_v17 = vcombine.high %v2677_v12, %v2681_v13  ;;  %v2701_v31 = vld [vmem:[#allocation11 + $0x210] sm:$0xff] }
 0x774   :  { %v2617_v23 = vmul.f32 %v2611_v3, %v2602_v20  ;;  %v2616_v24 = vmul.f32 %v2607_v14, %v2601_v59  ;;  %v2630_v25 = vadd.f32 %v2626_v19, %v2615_v21  ;;  %v2629_v28 = vadd.f32 %v2622_v5, %v2614_v22  ;;  %v2682_v3 = vld [vmem:[#allocation11 + $0x178] sm:$0xff] }
 0x775   :  { %v4834_v4 = vcombine.high %v2678_v16, %v2682_v3  ;;  %v2690_v59 = vld [vmem:[#allocation11 + $0x1b8] sm:$0xff]  ;;  %v4831_v20 = vcombine.low %v2677_v12, %v2681_v13  ;;  %v4833_v21 = vcombine.low %v2678_v16, %v2682_v3 }
 0x776   :  { %v2632_v26 = vadd.f32 %v2626_v19, %v2617_v23  ;;  %v2631_v29 = vadd.f32 %v2622_v5, %v2616_v24  ;;  %v2689_v19 = vld [vmem:[#allocation11 + $0x1b0] sm:$0xff]  ;;  %v2686_v5 = vld [vmem:[#allocation11 + $0x198] sm:$0xff] }
 0x777   :  { %v4840_v22 = vcombine.high %v2685_v18, %v2689_v19  ;;  %v4842_v23 = vcombine.high %v2686_v5, %v2690_v59  ;;  %v2693_v24 = vld [vmem:[#allocation11 + $0x1d0] sm:$0xff]  ;;  %v4841_v41 = vcombine.low %v2686_v5, %v2690_v59 }
 0x778   :  { %v2634_v51 = vpack.c.bf16 %v2632_v26, %v2630_v25  ;;  %v6269_v56 = vpack.c.bf16 %v2631_v29, %v2629_v28  ;;  %v2697_v25 = vld [vmem:[#allocation11 + $0x1f0] sm:$0xff]  ;;  %v2694_v26 = vld [vmem:[#allocation11 + $0x1d8] sm:$0xff]  ;;  %v4839_v29 = vcombine.low %v2685_v18, %v2689_v19 }
 0x779   :  { %v2698_v28 = vld [vmem:[#allocation11 + $0x1f8] sm:$0xff]  ;;  %v4848_v30 = vcombine.high %v2693_v24, %v2697_v25 }
 0x77a   :  { %3477 = vmatprep.mubr.bf16.mxu1 %v2634_v51  ;;  %3520 = vmatprep.mubr.bf16.mxu0 %v2634_v51  ;;  %v4850_v42 = vcombine.high %v2694_v26, %v2698_v28  ;;  %v4849_v57 = vcombine.low %v2694_v26, %v2698_v28 }
 0x77b   :  { %3478 = vmatmul.mubr.bf16.vlgmr.msra.gmra.mrb[16].mxu1 %v6269_v56  ;;  %3521 = vmatmul.mubr.bf16.vlgmr.msra.gmra.mrb[32].mxu0 %v6269_v56 }
 0x77c   :  { %3532 = vmatpush1.bf16.msra.mxu1 %v4791_v34  ;;  %3575 = vmatpush1.bf16.msra.mxu0 %v4793_v6  ;;  %v2669_v34 = vld [vmem:[#allocation11 + $0x110] sm:$0xff] }
 0x77d   :  { %3563 = vmatprep.mubr.bf16.mxu1 %v2634_v51  ;;  %3606 = vmatprep.mubr.bf16.mxu0 %v2634_v51  ;;  %v2673_v6 = vld [vmem:[#allocation11 + $0x130] sm:$0xff] }
 0x77e   :  { %3533 = vmatprep.subr.bf16.mxu1 %v4800_v45  ;;  %3576 = vmatprep.subr.bf16.mxu0 %v4802_v46  ;;  %v4824_v11 = vcombine.high %v2669_v34, %v2673_v6  ;;  %v4823_v14 = vcombine.low %v2669_v34, %v2673_v6  ;;  %v2705_v51 = vld [vmem:[#allocation11 + $0x230] sm:$0xff]  ;;  %v2706_v45 = vld [vmem:[#allocation11 + $0x238] sm:$0xff]  ;;  %v4847_v46 = vcombine.low %v2693_v24, %v2697_v25 }
 0x77f   :  { %v4856_v36 = vcombine.high %v2701_v31, %v2705_v51  ;;  %v4858_v37 = vcombine.high %v2702_v52, %v2706_v45  ;;  %v4855_v48 = vcombine.low %v2701_v31, %v2705_v51  ;;  %v4857_v49 = vcombine.low %v2702_v52, %v2706_v45 }
 0x780   :  { %3534 = vmatpush1.bf16.msra.mxu1 %v4799_v40  ;;  %3577 = vmatpush1.bf16.msra.mxu0 %v4801_v44  ;;  %v2709_v40 = vld [vmem:[#allocation11 + $0x250] sm:$0xff] }
 0x781   :  { %3535 = vmatprep.subr.bf16.mxu1 %v4808_v47  ;;  %3578 = vmatprep.subr.bf16.mxu0 %v4810_v38  ;;  %v2713_v44 = vld [vmem:[#allocation11 + $0x270] sm:$0xff]  ;;  %v2710_v47 = vld [vmem:[#allocation11 + $0x258] sm:$0xff] }
 0x782   :  { %v2714_v38 = vld [vmem:[#allocation11 + $0x278] sm:$0xff]  ;;  %v4864_v50 = vcombine.high %v2709_v40, %v2713_v44  ;;  %v4863_v34 = vcombine.low %v2709_v40, %v2713_v44 }
 0x783   :  { %v4866_v43 = vcombine.high %v2710_v47, %v2714_v38  ;;  %v4865_v6 = vcombine.low %v2710_v47, %v2714_v38 }
 0x784   :  { %3536 = vmatpush1.bf16.msra.mxu1 %v4807_v53  ;;  %3579 = vmatpush1.bf16.msra.mxu0 %v4809_v61  ;;  %v2717_v53 = vld [vmem:[#allocation11 + $0x290] sm:$0xff] }
 0x785   :  { %3537 = vmatprep.subr.bf16.mxu1 %v4816_v1  ;;  %3580 = vmatprep.subr.bf16.mxu0 %v4818_v55  ;;  %v2721_v61 = vld [vmem:[#allocation11 + $0x2b0] sm:$0xff]  ;;  %v2718_v1 = vld [vmem:[#allocation11 + $0x298] sm:$0xff] }
 0x786   :  { %v2722_v55 = vld [vmem:[#allocation11 + $0x2b8] sm:$0xff]  ;;  %v4872_v35 = vcombine.high %v2717_v53, %v2721_v61  ;;  %v4871_v12 = vcombine.low %v2717_v53, %v2721_v61 }
 0x787   :  { %v4874_v8 = vcombine.high %v2718_v1, %v2722_v55  ;;  %v4873_v13 = vcombine.low %v2718_v1, %v2722_v55  ;;  %v5338_v53 = vld [vmem:[#allocation13 + $0x14] ss:$8 sps:$4 sm:$0xff]   ;;  %v5336_v61 = vld [vmem:[#allocation13 + $0x10] ss:$8 sps:$4 sm:$0xff]   ;;  %v5341_v1 = vld [vmem:[#allocation13 + $0x24] ss:$8 sps:$4 sm:$0xff]  }
 0x788   :  { %3538 = vmatpush1.bf16.msra.mxu1 %v4815_v9  ;;  %3581 = vmatpush1.bf16.msra.mxu0 %v4817_v39  ;;  %v2725_v9 = vld [vmem:[#allocation11 + $0x2d0] sm:$0xff]  ;;  %v5339_v55 = vld [vmem:[#allocation13 + $0x20] ss:$8 sps:$4 sm:$0xff]  }
 0x789   :  { %3539 = vmatprep.subr.bf16.mxu1 %v4824_v11  ;;  %3582 = vmatprep.subr.bf16.mxu0 %v4826_v2  ;;  %v2729_v39 = vld [vmem:[#allocation11 + $0x2f0] sm:$0xff]  ;;  %v2726_v11 = vld [vmem:[#allocation11 + $0x2d8] sm:$0xff] }
 0x78a   :  { %v2730_v2 = vld [vmem:[#allocation11 + $0x2f8] sm:$0xff]  ;;  %v4880_v16 = vcombine.high %v2725_v9, %v2729_v39  ;;  %v4879_v18 = vcombine.low %v2725_v9, %v2729_v39 }
 0x78b   :  { %v4882_v3 = vcombine.high %v2726_v11, %v2730_v2  ;;  %v4881_v19 = vcombine.low %v2726_v11, %v2730_v2  ;;  %v5350_v9 = vld [vmem:[#allocation13 + $0x54] ss:$8 sps:$4 sm:$0xff]   ;;  %v5348_v39 = vld [vmem:[#allocation13 + $0x50] ss:$8 sps:$4 sm:$0xff]   ;;  %v5351_v11 = vld [vmem:[#allocation13 + $0x60] ss:$8 sps:$4 sm:$0xff]  }
 0x78c   :  { %3540 = vmatpush1.bf16.msra.mxu1 %v4823_v14  ;;  %3583 = vmatpush1.bf16.msra.mxu0 %v4825_v15  ;;  %v2733_v14 = vld [vmem:[#allocation11 + $0x310] sm:$0xff] }
 0x78d   :  { %3541 = vmatprep.subr.bf16.mxu1 %v4832_v17  ;;  %3584 = vmatprep.subr.bf16.mxu0 %v4834_v4  ;;  %v2737_v15 = vld [vmem:[#allocation11 + $0x330] sm:$0xff]  ;;  %v2734_v17 = vld [vmem:[#allocation11 + $0x318] sm:$0xff] }
 0x78e   :  { %v2738_v4 = vld [vmem:[#allocation11 + $0x338] sm:$0xff]  ;;  %v4888_v5 = vcombine.high %v2733_v14, %v2737_v15  ;;  %v4887_v24 = vcombine.low %v2733_v14, %v2737_v15  ;;  %v5365_v15 = vld [vmem:[#allocation13 + $0xa4] ss:$8 sps:$4 sm:$0xff]  }
 0x78f   :  { %v4890_v59 = vcombine.high %v2734_v17, %v2738_v4  ;;  %v4889_v25 = vcombine.low %v2734_v17, %v2738_v4  ;;  %v5356_v2 = vld [vmem:[#allocation13 + $0x74] ss:$8 sps:$4 sm:$0xff]   ;;  %v5360_v14 = vld [vmem:[#allocation13 + $0x90] ss:$8 sps:$4 sm:$0xff]   ;;  %v5363_v17 = vld [vmem:[#allocation13 + $0xa0] ss:$8 sps:$4 sm:$0xff]  }
 0x790   :  { %3542 = vmatpush1.bf16.msra.mxu1 %v4831_v20  ;;  %3585 = vmatpush1.bf16.msra.mxu0 %v4833_v21  ;;  %v2741_v20 = vld [vmem:[#allocation11 + $0x350] sm:$0xff] }
 0x791   :  { %3543 = vmatprep.subr.bf16.mxu1 %v4840_v22  ;;  %3586 = vmatprep.subr.bf16.mxu0 %v4842_v23  ;;  %v2745_v21 = vld [vmem:[#allocation11 + $0x370] sm:$0xff]  ;;  %v2742_v22 = vld [vmem:[#allocation11 + $0x358] sm:$0xff] }
 0x792   :  { %v2746_v23 = vld [vmem:[#allocation11 + $0x378] sm:$0xff]  ;;  %v4896_v26 = vcombine.high %v2741_v20, %v2745_v21  ;;  %v4895_v31 = vcombine.low %v2741_v20, %v2745_v21  ;;  %v5377_v21 = vld [vmem:[#allocation13 + $0xe4] ss:$8 sps:$4 sm:$0xff]  }
 0x793   :  { %v4898_v28 = vcombine.high %v2742_v22, %v2746_v23  ;;  %v4897_v51 = vcombine.low %v2742_v22, %v2746_v23  ;;  %v5368_v4 = vld [vmem:[#allocation13 + $0xb4] ss:$8 sps:$4 sm:$0xff]   ;;  %v5372_v20 = vld [vmem:[#allocation13 + $0xd0] ss:$8 sps:$4 sm:$0xff]   ;;  %v5375_v22 = vld [vmem:[#allocation13 + $0xe0] ss:$8 sps:$4 sm:$0xff]  }
 0x794   :  { %3544 = vmatpush1.bf16.msra.mxu1 %v4839_v29  ;;  %3587 = vmatpush1.bf16.msra.mxu0 %v4841_v41  ;;  %v2749_v29 = vld [vmem:[#allocation11 + $0x390] sm:$0xff] }
 0x795   :  { %3545 = vmatprep.subr.bf16.mxu1 %v4848_v30  ;;  %3588 = vmatprep.subr.bf16.mxu0 %v4850_v42  ;;  %v2753_v41 = vld [vmem:[#allocation11 + $0x3b0] sm:$0xff]  ;;  %v2750_v30 = vld [vmem:[#allocation11 + $0x398] sm:$0xff] }
 0x796   :  { %v2754_v42 = vld [vmem:[#allocation11 + $0x3b8] sm:$0xff]  ;;  %v4904_v52 = vcombine.high %v2749_v29, %v2753_v41  ;;  %v4903_v40 = vcombine.low %v2749_v29, %v2753_v41 }
 0x797   :  { %v4906_v45 = vcombine.high %v2750_v30, %v2754_v42  ;;  %v4905_v44 = vcombine.low %v2750_v30, %v2754_v42  ;;  %v5380_v23 = vld [vmem:[#allocation13 + $0xf4] ss:$8 sps:$4 sm:$0xff]  }
 0x798   :  { %3546 = vmatpush1.bf16.msra.mxu1 %v4847_v46  ;;  %3589 = vmatpush1.bf16.msra.mxu0 %v4849_v57  ;;  %v2757_v46 = vld [vmem:[#allocation11 + $0x3d0] sm:$0xff] }
 0x799   :  { %3547 = vmatprep.subr.bf16.mxu1 %v4856_v36  ;;  %3590 = vmatprep.subr.bf16.mxu0 %v4858_v37  ;;  %v2761_v57 = vld [vmem:[#allocation11 + $0x3f0] sm:$0xff]  ;;  %v2758_v36 = vld [vmem:[#allocation11 + $0x3d8] sm:$0xff] }
 0x79a   :  { %v2762_v37 = vld [vmem:[#allocation11 + $0x3f8] sm:$0xff]  ;;  %v4912_v47 = vcombine.high %v2757_v46, %v2761_v57 }
 0x79b   :  { %v4914_v38 = vcombine.high %v2758_v36, %v2762_v37 }
 0x79c   :  { %3548 = vmatpush1.bf16.msra.mxu1 %v4855_v48  ;;  %3591 = vmatpush1.bf16.msra.mxu0 %v4857_v49  ;;  %v4911_v48 = vcombine.low %v2757_v46, %v2761_v57  ;;  %v4913_v49 = vcombine.low %v2758_v36, %v2762_v37 }
 0x79d   :  { %3549 = vmatprep.subr.bf16.mxu1 %v4864_v50  ;;  %3592 = vmatprep.subr.bf16.mxu0 %v4866_v43  ;;  %v5335_v50 = vld [vmem:[#allocation13 + $0x4] ss:$8 sps:$4 sm:$0xff]   ;;  %v5333_v43 = vld [vmem:[#allocation13] ss:$8 sps:$4 sm:$0xff]  }
 0x7a0   :  { %3550 = vmatpush1.bf16.msra.mxu1 %v4863_v34  ;;  %3593 = vmatpush1.bf16.msra.mxu0 %v4865_v6  ;;  %v5344_v34 = vld [vmem:[#allocation13 + $0x34] ss:$8 sps:$4 sm:$0xff]   ;;  %v5342_v6 = vld [vmem:[#allocation13 + $0x30] ss:$8 sps:$4 sm:$0xff]  }
 0x7a1   :  { %3551 = vmatprep.subr.bf16.mxu1 %v4872_v35  ;;  %3594 = vmatprep.subr.bf16.mxu0 %v4874_v8  ;;  %v5347_v35 = vld [vmem:[#allocation13 + $0x44] ss:$8 sps:$4 sm:$0xff]   ;;  %v5345_v8 = vld [vmem:[#allocation13 + $0x40] ss:$8 sps:$4 sm:$0xff]  }
 0x7a4   :  { %3552 = vmatpush1.bf16.msra.mxu1 %v4871_v12  ;;  %3595 = vmatpush1.bf16.msra.mxu0 %v4873_v13  ;;  %v5354_v12 = vld [vmem:[#allocation13 + $0x70] ss:$8 sps:$4 sm:$0xff]   ;;  %v5359_v13 = vld [vmem:[#allocation13 + $0x84] ss:$8 sps:$4 sm:$0xff]  }
 0x7a5   :  { %3553 = vmatprep.subr.bf16.mxu1 %v4880_v16  ;;  %3596 = vmatprep.subr.bf16.mxu0 %v4882_v3  ;;  %v5357_v16 = vld [vmem:[#allocation13 + $0x80] ss:$8 sps:$4 sm:$0xff]   ;;  %v5362_v3 = vld [vmem:[#allocation13 + $0x94] ss:$8 sps:$4 sm:$0xff]  }
 0x7a8   :  { %3554 = vmatpush1.bf16.msra.mxu1 %v4879_v18  ;;  %3597 = vmatpush1.bf16.msra.mxu0 %v4881_v19  ;;  %v5366_v18 = vld [vmem:[#allocation13 + $0xb0] ss:$8 sps:$4 sm:$0xff]   ;;  %v5371_v19 = vld [vmem:[#allocation13 + $0xc4] ss:$8 sps:$4 sm:$0xff]  }
 0x7a9   :  { %3555 = vmatprep.subr.bf16.mxu1 %v4888_v5  ;;  %3598 = vmatprep.subr.bf16.mxu0 %v4890_v59  ;;  %v5369_v5 = vld [vmem:[#allocation13 + $0xc0] ss:$8 sps:$4 sm:$0xff]   ;;  %v5374_v59 = vld [vmem:[#allocation13 + $0xd4] ss:$8 sps:$4 sm:$0xff]  }
 0x7ac   :  { %3556 = vmatpush1.bf16.msra.mxu1 %v4887_v24  ;;  %3599 = vmatpush1.bf16.msra.mxu0 %v4889_v25  ;;  %v5378_v24 = vld [vmem:[#allocation13 + $0xf0] ss:$8 sps:$4 sm:$0xff]   ;;  %v5383_v25 = vld [vmem:[#allocation13 + $0x104] ss:$8 sps:$4 sm:$0xff]  }
 0x7ad   :  { %3557 = vmatprep.subr.bf16.mxu1 %v4896_v26  ;;  %3600 = vmatprep.subr.bf16.mxu0 %v4898_v28  ;;  %v6278_v26 = vld [vmem:[%s6346_s10] sm:$0xff] }
 0x7ae   :  { %v2768_v28 = vrot.slane %v6278_v26, %v5961_v0  ;;  %v2776_v29 = vrot.slane %v6278_v26, %v318_v58  ;;  %v2772_v41 = vrot.slane %v6278_v26, %v5958_v63  ;;  %v2780_v30 = vrot.slane %v6278_v26, %v322_v60 }
 0x7b0   :  { %3558 = vmatpush1.bf16.msra.mxu1 %v4895_v31  ;;  %3601 = vmatpush1.bf16.msra.mxu0 %v4897_v51 }
 0x7b1   :  { %3559 = vmatprep.subr.bf16.mxu1 %v4904_v52  ;;  %3602 = vmatprep.subr.bf16.mxu0 %v4906_v45 }
 0x7b4   :  { %3560 = vmatpush1.bf16.msra.mxu1 %v4903_v40  ;;  %3603 = vmatpush1.bf16.msra.mxu0 %v4905_v44 }
 0x7b5   :  { %3561 = vmatprep.subr.bf16.mxu1 %v4912_v47  ;;  %3604 = vmatprep.subr.bf16.mxu0 %v4914_v38 }
 0x7b8   :  { %3562 = vmatpush1.bf16.msra.mxu1 %v4911_v48  ;;  %3605 = vmatpush1.bf16.msra.mxu0 %v4913_v49 }
 0x7b9   :  { %4409 = vmatprep.subr.bf16.mxu1 %v5335_v50 }
 0x7bb   :  { %3564 = vmatmul.mubr.bf16.vlgmr.msra.gmra.mrb[20].mxu1 %v6269_v56  ;;  %3607 = vmatmul.mubr.bf16.vlgmr.msra.gmra.mrb[36].mxu0 %v6269_v56  ;;  %v5353_v56 = vld [vmem:[#allocation13 + $0x64] ss:$8 sps:$4 sm:$0xff]  }
 0x7bc   :  { %4410 = vmatpush1.bf16.msra.mxu1 %v5333_v43 }
 0x7bd   :  { %4411 = vmatprep.subr.bf16.mxu1 %v5338_v53 }
 0x7c0   :  { %4412 = vmatpush1.bf16.msra.mxu1 %v5336_v61 }
 0x7c1   :  { %4413 = vmatprep.subr.bf16.mxu1 %v5341_v1 }
 0x7c4   :  { %4414 = vmatpush1.bf16.msra.mxu1 %v5339_v55 }
 0x7c5   :  { %4415 = vmatprep.subr.bf16.mxu1 %v5344_v34 }
 0x7c8   :  { %4416 = vmatpush1.bf16.msra.mxu1 %v5342_v6 }
 0x7c9   :  { %4417 = vmatprep.subr.bf16.mxu1 %v5347_v35 }
 0x7cc   :  { %4418 = vmatpush1.bf16.msra.mxu1 %v5345_v8 }
 0x7cd   :  { %4419 = vmatprep.subr.bf16.mxu1 %v5350_v9 }
 0x7d0   :  { %4420 = vmatpush1.bf16.msra.mxu1 %v5348_v39  ;;  %v5381_v39 = vld [vmem:[#allocation13 + $0x100] ss:$8 sps:$4 sm:$0xff]  }
 0x7d1   :  { %4421 = vmatprep.subr.bf16.mxu1 %v5353_v56  ;;  %v5386_v56 = vld [vmem:[#allocation13 + $0x114] ss:$8 sps:$4 sm:$0xff]  }
 0x7d4   :  { %4422 = vmatpush1.bf16.msra.mxu1 %v5351_v11  ;;  %v5384_v11 = vld [vmem:[#allocation13 + $0x110] ss:$8 sps:$4 sm:$0xff]  }
 0x7d5   :  { %4423 = vmatprep.subr.bf16.mxu1 %v5356_v2  ;;  %v5389_v2 = vld [vmem:[#allocation13 + $0x124] ss:$8 sps:$4 sm:$0xff]  }
 0x7d8   :  { %4424 = vmatpush1.bf16.msra.mxu1 %v5354_v12  ;;  %v5387_v12 = vld [vmem:[#allocation13 + $0x120] ss:$8 sps:$4 sm:$0xff]  }
 0x7d9   :  { %4425 = vmatprep.subr.bf16.mxu1 %v5359_v13  ;;  %v5392_v13 = vld [vmem:[#allocation13 + $0x134] ss:$8 sps:$4 sm:$0xff]  }
 0x7dc   :  { %4426 = vmatpush1.bf16.msra.mxu1 %v5357_v16  ;;  %v5390_v16 = vld [vmem:[#allocation13 + $0x130] ss:$8 sps:$4 sm:$0xff]  }
 0x7dd   :  { %4427 = vmatprep.subr.bf16.mxu1 %v5362_v3  ;;  %v5395_v3 = vld [vmem:[#allocation13 + $0x144] ss:$8 sps:$4 sm:$0xff]  }
 0x7e0   :  { %4428 = vmatpush1.bf16.msra.mxu1 %v5360_v14  ;;  %v5393_v14 = vld [vmem:[#allocation13 + $0x140] ss:$8 sps:$4 sm:$0xff]  }
 0x7e1   :  { %4429 = vmatprep.subr.bf16.mxu1 %v5365_v15  ;;  %v5398_v15 = vld [vmem:[#allocation13 + $0x154] ss:$8 sps:$4 sm:$0xff]  }
 0x7e4   :  { %4430 = vmatpush1.bf16.msra.mxu1 %v5363_v17  ;;  %v5396_v17 = vld [vmem:[#allocation13 + $0x150] ss:$8 sps:$4 sm:$0xff]  }
 0x7e5   :  { %4431 = vmatprep.subr.bf16.mxu1 %v5368_v4  ;;  %v5401_v4 = vld [vmem:[#allocation13 + $0x164] ss:$8 sps:$4 sm:$0xff]  }
 0x7e8   :  { %4432 = vmatpush1.bf16.msra.mxu1 %v5366_v18  ;;  %v5399_v18 = vld [vmem:[#allocation13 + $0x160] ss:$8 sps:$4 sm:$0xff]  }
 0x7e9   :  { %4433 = vmatprep.subr.bf16.mxu1 %v5371_v19  ;;  %v5404_v19 = vld [vmem:[#allocation13 + $0x174] ss:$8 sps:$4 sm:$0xff]  }
 0x7ec   :  { %4434 = vmatpush1.bf16.msra.mxu1 %v5369_v5  ;;  %v5402_v5 = vld [vmem:[#allocation13 + $0x170] ss:$8 sps:$4 sm:$0xff]  }
 0x7ed   :  { %4435 = vmatprep.subr.bf16.mxu1 %v5374_v59  ;;  %v5407_v59 = vld [vmem:[#allocation13 + $0x184] ss:$8 sps:$4 sm:$0xff]  }
 0x7f0   :  { %4436 = vmatpush1.bf16.msra.mxu1 %v5372_v20  ;;  %v5405_v20 = vld [vmem:[#allocation13 + $0x180] ss:$8 sps:$4 sm:$0xff]  }
 0x7f1   :  { %4437 = vmatprep.subr.bf16.mxu1 %v5377_v21  ;;  %v5410_v21 = vld [vmem:[#allocation13 + $0x194] ss:$8 sps:$4 sm:$0xff]  }
 0x7f4   :  { %4438 = vmatpush1.bf16.msra.mxu1 %v5375_v22  ;;  %v5408_v22 = vld [vmem:[#allocation13 + $0x190] ss:$8 sps:$4 sm:$0xff]  }
 0x7f5   :  { %4439 = vmatprep.subr.bf16.mxu1 %v5380_v23  ;;  %v5413_v23 = vld [vmem:[#allocation13 + $0x1a4] ss:$8 sps:$4 sm:$0xff]  }
 0x7f8   :  { %4440 = vmatpush1.bf16.msra.mxu1 %v5378_v24  ;;  %v5411_v24 = vld [vmem:[#allocation13 + $0x1a0] ss:$8 sps:$4 sm:$0xff]  }
 0x7f9   :  { %4452 = vmatprep.subr.bf16.mxu1 %v5383_v25  ;;  %v5416_v25 = vld [vmem:[#allocation13 + $0x1b4] ss:$8 sps:$4 sm:$0xff]  }
 0x84e   :  { %v3479_v42 = vpop.f32.mrb[16].mxu1  ;;  %v3522_v31 = vpop.f32.mrb[32].mxu0 }
 0x84f   :  { %v3480_v51 = vadd.f32 %v3479_v42, %v2768_v28  ;;  %v3523_v52 = vadd.f32 %v3522_v31, %v2776_v29  ;;  %v3481_v45 = vpop.f32.mrb[17].mxu1  ;;  %v3524_v46 = vpop.f32.mrb[33].mxu0  ;;  %v2791_v42 = vsub.s32 6, %v5955_v62  ;;  %v2795_v31 = vsub.s32 7, %v5955_v62 }
 0x850   :  { %v3482_v57 = vadd.f32 %v3481_v45, %v2772_v41  ;;  %v3525_v36 = vadd.f32 %v3524_v46, %v2780_v30  ;;  %v3483_v37 = vpop.f32.mrb[18].mxu1  ;;  %v3526_v40 = vpop.f32.mrb[34].mxu0  ;;  %v5425_v46 = vld [vmem:[#allocation13 + $0x1e4] ss:$8 sps:$4 sm:$0xff]  }
 0x851   :  { %v3484_v44 = vadd.f32 %v3483_v37, %v2768_v28  ;;  %v3527_v47 = vadd.f32 %v3526_v40, %v2776_v29  ;;  %v3485_v58 = vpop.f32.mrb[19].mxu1  ;;  %v3528_v38 = vpop.f32.mrb[35].mxu0  ;;  %v3617_v50 = vmax.f32 %v3480_v51, 0.0  ;;  %v3619_v43 = vmax.f32 %v3523_v52, 0.0  ;;  %v5414_v28 = vld [vmem:[#allocation13 + $0x1b0] ss:$8 sps:$4 sm:$0xff]  }
 0x852   :  { %v3486_v48 = vadd.f32 %v3485_v58, %v2772_v41  ;;  %v3529_v49 = vadd.f32 %v3528_v38, %v2780_v30  ;;  %v3618_v61 = vmax.f32 %v3482_v57, 0.0  ;;  %v3620_v1 = vmax.f32 %v3525_v36, 0.0  ;;  %v5419_v29 = vld [vmem:[#allocation13 + $0x1c4] ss:$8 sps:$4 sm:$0xff]   ;;  %v5417_v41 = vld [vmem:[#allocation13 + $0x1c0] ss:$8 sps:$4 sm:$0xff]  }
 0x853   :  { %v3625_v53 = vmax.f32 %v3484_v44, 0.0  ;;  %v3627_v60 = vmax.f32 %v3527_v47, 0.0  ;;  %v5422_v30 = vld [vmem:[#allocation13 + $0x1d4] ss:$8 sps:$4 sm:$0xff]   ;;  %v5420_v51 = vld [vmem:[#allocation13 + $0x1d0] ss:$8 sps:$4 sm:$0xff]   ;;  %v2784_v52 = vrot.slane %v6278_v26, %v326_v32  ;;  %v2792_v45 = vrot.slane %v6278_v26, %v2791_v42 }
 0x854   :  { %v3626_v55 = vmax.f32 %v3486_v48, 0.0  ;;  %v3628_v34 = vmax.f32 %v3529_v49, 0.0  ;;  %v2788_v57 = vrot.slane %v6278_v26, %v330_v33  ;;  %v2796_v36 = vrot.slane %v6278_v26, %v2795_v31  ;;  %v5423_v44 = vld [vmem:[#allocation13 + $0x1e0] ss:$8 sps:$4 sm:$0xff]   ;;  %v5428_v49 = vld [vmem:[#allocation13 + $0x1f4] ss:$8 sps:$4 sm:$0xff]  }
 0x855   :  { %v3633_v6 = vpack.c.bf16 %v3625_v53, %v3617_v50  ;;  %v6290_v35 = vpack.c.bf16 %v3627_v60, %v3619_v43  ;;  %v5456_v42 = vld [vmem:[#allocation13 + $0x290] ss:$8 sps:$4 sm:$0xff]   ;;  %v5461_v31 = vld [vmem:[#allocation13 + $0x2a4] ss:$8 sps:$4 sm:$0xff]  }
 0x856   :  { %v3634_v8 = vpack.c.bf16 %v3626_v55, %v3618_v61  ;;  %v3636_v9 = vpack.c.bf16 %v3628_v34, %v3620_v1  ;;  %v5426_v55 = vld [vmem:[#allocation13 + $0x1f0] ss:$8 sps:$4 sm:$0xff]  }
 0x858   :  { %4441 = vmatprep.mubr.bf16.mxu1 %v3634_v8 }
 0x859   :  { %4442 = vmatmul.mubr.bf16.vlgmr.msra.gmra.mrb[24].mxu1 %v3633_v6 }
 0x85a   :  { %4453 = vmatpush1.bf16.msra.mxu1 %v5381_v39  ;;  %4484 = vmatprep.mubr.bf16.mxu1 %v3636_v9  ;;  %v5431_v39 = vld [vmem:[#allocation13 + $0x204] ss:$8 sps:$4 sm:$0xff]  }
 0x85b   :  { %4454 = vmatprep.subr.bf16.mxu1 %v5386_v56 }
 0x85e   :  { %4455 = vmatpush1.bf16.msra.mxu1 %v5384_v11 }
 0x85f   :  { %4456 = vmatprep.subr.bf16.mxu1 %v5389_v2 }
 0x862   :  { %4457 = vmatpush1.bf16.msra.mxu1 %v5387_v12 }
 0x863   :  { %4458 = vmatprep.subr.bf16.mxu1 %v5392_v13 }
 0x866   :  { %4459 = vmatpush1.bf16.msra.mxu1 %v5390_v16 }
 0x867   :  { %4460 = vmatprep.subr.bf16.mxu1 %v5395_v3 }
 0x86a   :  { %4461 = vmatpush1.bf16.msra.mxu1 %v5393_v14 }
 0x86b   :  { %4462 = vmatprep.subr.bf16.mxu1 %v5398_v15  ;;  %v5429_v15 = vld [vmem:[#allocation13 + $0x200] ss:$8 sps:$4 sm:$0xff]  }
 0x86e   :  { %4463 = vmatpush1.bf16.msra.mxu1 %v5396_v17  ;;  %v5434_v17 = vld [vmem:[#allocation13 + $0x214] ss:$8 sps:$4 sm:$0xff]  }
 0x86f   :  { %4464 = vmatprep.subr.bf16.mxu1 %v5401_v4  ;;  %v5432_v4 = vld [vmem:[#allocation13 + $0x210] ss:$8 sps:$4 sm:$0xff]  }
 0x872   :  { %4465 = vmatpush1.bf16.msra.mxu1 %v5399_v18  ;;  %v5437_v18 = vld [vmem:[#allocation13 + $0x224] ss:$8 sps:$4 sm:$0xff]  }
 0x873   :  { %4466 = vmatprep.subr.bf16.mxu1 %v5404_v19  ;;  %v5435_v19 = vld [vmem:[#allocation13 + $0x220] ss:$8 sps:$4 sm:$0xff]  }
 0x876   :  { %4467 = vmatpush1.bf16.msra.mxu1 %v5402_v5  ;;  %v5440_v5 = vld [vmem:[#allocation13 + $0x234] ss:$8 sps:$4 sm:$0xff]  }
 0x877   :  { %4468 = vmatprep.subr.bf16.mxu1 %v5407_v59  ;;  %v5438_v59 = vld [vmem:[#allocation13 + $0x230] ss:$8 sps:$4 sm:$0xff]  }
 0x87a   :  { %4469 = vmatpush1.bf16.msra.mxu1 %v5405_v20  ;;  %v5443_v20 = vld [vmem:[#allocation13 + $0x244] ss:$8 sps:$4 sm:$0xff]  }
 0x87b   :  { %4470 = vmatprep.subr.bf16.mxu1 %v5410_v21  ;;  %v5441_v21 = vld [vmem:[#allocation13 + $0x240] ss:$8 sps:$4 sm:$0xff]  }
 0x87e   :  { %4471 = vmatpush1.bf16.msra.mxu1 %v5408_v22  ;;  %v5446_v22 = vld [vmem:[#allocation13 + $0x254] ss:$8 sps:$4 sm:$0xff]  }
 0x87f   :  { %4472 = vmatprep.subr.bf16.mxu1 %v5413_v23  ;;  %v5444_v23 = vld [vmem:[#allocation13 + $0x250] ss:$8 sps:$4 sm:$0xff]  }
 0x882   :  { %4473 = vmatpush1.bf16.msra.mxu1 %v5411_v24  ;;  %v5447_v24 = vld [vmem:[#allocation13 + $0x260] ss:$8 sps:$4 sm:$0xff]  }
 0x883   :  { %4474 = vmatprep.subr.bf16.mxu1 %v5416_v25  ;;  %v5452_v25 = vld [vmem:[#allocation13 + $0x274] ss:$8 sps:$4 sm:$0xff]  }
 0x886   :  { %4475 = vmatpush1.bf16.msra.mxu1 %v5414_v28  ;;  %v5450_v28 = vld [vmem:[#allocation13 + $0x270] ss:$8 sps:$4 sm:$0xff]  }
 0x887   :  { %4476 = vmatprep.subr.bf16.mxu1 %v5419_v29  ;;  %v5455_v29 = vld [vmem:[#allocation13 + $0x284] ss:$8 sps:$4 sm:$0xff]  }
 0x88a   :  { %4477 = vmatpush1.bf16.msra.mxu1 %v5417_v41  ;;  %v5453_v41 = vld [vmem:[#allocation13 + $0x280] ss:$8 sps:$4 sm:$0xff]  }
 0x88b   :  { %4478 = vmatprep.subr.bf16.mxu1 %v5422_v30  ;;  %v5458_v30 = vld [vmem:[#allocation13 + $0x294] ss:$8 sps:$4 sm:$0xff]  }
 0x88e   :  { %v3565_v37 = vpop.f32.mrb[20].mxu1  ;;  %v3608_v40 = vpop.f32.mrb[36].mxu0  ;;  %4479 = vmatpush1.bf16.msra.mxu1 %v5420_v51  ;;  %v5459_v51 = vld [vmem:[#allocation13 + $0x2a0] ss:$8 sps:$4 sm:$0xff]  }
 0x88f   :  { %v3566_v47 = vadd.f32 %v3565_v37, %v2784_v52  ;;  %v3609_v58 = vadd.f32 %v3608_v40, %v2792_v45  ;;  %v3567_v38 = vpop.f32.mrb[21].mxu1  ;;  %v3610_v48 = vpop.f32.mrb[37].mxu0  ;;  %4480 = vmatprep.subr.bf16.mxu1 %v5425_v46  ;;  %v5467_v46 = vld [vmem:[#allocation13 + $0x2c4] ss:$8 sps:$4 sm:$0xff]   ;;  %v5468_v37 = vld [vmem:[#allocation13 + $0x2d0] ss:$8 sps:$4 sm:$0xff]  }
 0x890   :  { %v3568_v32 = vadd.f32 %v3567_v38, %v2788_v57  ;;  %v3611_v50 = vadd.f32 %v3610_v48, %v2796_v36  ;;  %v3569_v43 = vpop.f32.mrb[22].mxu1  ;;  %v3612_v53 = vpop.f32.mrb[38].mxu0  ;;  %v5473_v40 = vld [vmem:[#allocation13 + $0x2e4] ss:$8 sps:$4 sm:$0xff]   ;;  %v5477_v48 = vld [vmem:[#allocation13 + $0x300] ss:$8 sps:$4 sm:$0xff]  }
 0x891   :  { %v3570_v60 = vadd.f32 %v3569_v43, %v2784_v52  ;;  %v3613_v62 = vadd.f32 %v3612_v53, %v2792_v45  ;;  %v3571_v61 = vpop.f32.mrb[23].mxu1  ;;  %v3614_v33 = vpop.f32.mrb[39].mxu0  ;;  %v3621_v34 = vmax.f32 %v3566_v47, 0.0  ;;  %v3623_v6 = vmax.f32 %v3609_v58, 0.0  ;;  %v5464_v52 = vld [vmem:[#allocation13 + $0x2b4] ss:$8 sps:$4 sm:$0xff]  }
 0x892   :  { %v3572_v1 = vadd.f32 %v3571_v61, %v2788_v57  ;;  %v3615_v26 = vadd.f32 %v3614_v33, %v2796_v36  ;;  %4481 = vmatpush1.bf16.msra.mxu1 %v5423_v44  ;;  %v3622_v56 = vmax.f32 %v3568_v32, 0.0  ;;  %v3624_v11 = vmax.f32 %v3611_v50, 0.0  ;;  %v5462_v45 = vld [vmem:[#allocation13 + $0x2b0] ss:$8 sps:$4 sm:$0xff]   ;;  %v5465_v57 = vld [vmem:[#allocation13 + $0x2c0] ss:$8 sps:$4 sm:$0xff]  }
 0x893   :  { %v3629_v8 = vmax.f32 %v3570_v60, 0.0  ;;  %v3631_v9 = vmax.f32 %v3613_v62, 0.0  ;;  %4482 = vmatprep.subr.bf16.mxu1 %v5428_v49  ;;  %v5470_v36 = vld [vmem:[#allocation13 + $0x2d4] ss:$8 sps:$4 sm:$0xff]   ;;  %v5471_v44 = vld [vmem:[#allocation13 + $0x2e0] ss:$8 sps:$4 sm:$0xff]  }
 0x894   :  { %v3630_v2 = vmax.f32 %v3572_v1, 0.0  ;;  %v3632_v12 = vmax.f32 %v3615_v26, 0.0  ;;  %v5476_v47 = vld [vmem:[#allocation13 + $0x2f4] ss:$8 sps:$4 sm:$0xff]   ;;  %v5474_v58 = vld [vmem:[#allocation13 + $0x2f0] ss:$8 sps:$4 sm:$0xff]  }
 0x895   :  { %v6302_v13 = vpack.c.bf16 %v3629_v8, %v3621_v34  ;;  %v6304_v16 = vpack.c.bf16 %v3631_v9, %v3623_v6  ;;  %v5479_v38 = vld [vmem:[#allocation13 + $0x304] ss:$8 sps:$4 sm:$0xff]   ;;  %v5482_v49 = vld [vmem:[#allocation13 + $0x314] ss:$8 sps:$4 sm:$0xff]   ;;  %v5480_v32 = vld [vmem:[#allocation13 + $0x310] ss:$8 sps:$4 sm:$0xff]  }
 0x896   :  { %v3638_v3 = vpack.c.bf16 %v3630_v2, %v3622_v56  ;;  %v6306_v14 = vpack.c.bf16 %v3632_v12, %v3624_v11  ;;  %4483 = vmatpush1.bf16.msra.mxu1 %v5426_v55  ;;  %v5485_v50 = vld [vmem:[#allocation13 + $0x324] ss:$8 sps:$4 sm:$0xff]   ;;  %v5483_v43 = vld [vmem:[#allocation13 + $0x320] ss:$8 sps:$4 sm:$0xff]   ;;  %v5488_v53 = vld [vmem:[#allocation13 + $0x334] ss:$8 sps:$4 sm:$0xff]  }
 0x897   :  { %4495 = vmatprep.subr.bf16.mxu1 %v5431_v39  ;;  %v5486_v60 = vld [vmem:[#allocation13 + $0x330] ss:$8 sps:$4 sm:$0xff]   ;;  %v5491_v62 = vld [vmem:[#allocation13 + $0x344] ss:$8 sps:$4 sm:$0xff]   ;;  %v5489_v61 = vld [vmem:[#allocation13 + $0x340] ss:$8 sps:$4 sm:$0xff]  }
 0x898   :  { %v5494_v33 = vld [vmem:[#allocation13 + $0x354] ss:$8 sps:$4 sm:$0xff]   ;;  %v5492_v1 = vld [vmem:[#allocation13 + $0x350] ss:$8 sps:$4 sm:$0xff]   ;;  %v5497_v26 = vld [vmem:[#allocation13 + $0x364] ss:$8 sps:$4 sm:$0xff]  }
 0x899   :  { %4485 = vmatmul.mubr.bf16.vlgmr.msra.gmra.mrb[24].mxu1 %v6290_v35  ;;  %v5449_v35 = vld [vmem:[#allocation13 + $0x264] ss:$8 sps:$4 sm:$0xff]   ;;  %v5495_v55 = vld [vmem:[#allocation13 + $0x360] ss:$8 sps:$4 sm:$0xff]   ;;  %v5500_v34 = vld [vmem:[#allocation13 + $0x374] ss:$8 sps:$4 sm:$0xff]  }
 0x89a   :  { %4496 = vmatpush1.bf16.msra.mxu1 %v5429_v15  ;;  %4527 = vmatprep.mubr.bf16.mxu1 %v3638_v3  ;;  %v5498_v6 = vld [vmem:[#allocation13 + $0x370] ss:$8 sps:$4 sm:$0xff]   ;;  %v5503_v8 = vld [vmem:[#allocation13 + $0x384] ss:$8 sps:$4 sm:$0xff]   ;;  %v5501_v9 = vld [vmem:[#allocation13 + $0x380] ss:$8 sps:$4 sm:$0xff]  }
 0x89b   :  { %4497 = vmatprep.subr.bf16.mxu1 %v5434_v17  ;;  %v5506_v39 = vld [vmem:[#allocation13 + $0x394] ss:$8 sps:$4 sm:$0xff]   ;;  %v5504_v56 = vld [vmem:[#allocation13 + $0x390] ss:$8 sps:$4 sm:$0xff]   ;;  %v5509_v11 = vld [vmem:[#allocation13 + $0x3a4] ss:$8 sps:$4 sm:$0xff]  }
 0x89c   :  { %v5507_v2 = vld [vmem:[#allocation13 + $0x3a0] ss:$8 sps:$4 sm:$0xff]   ;;  %v5512_v12 = vld [vmem:[#allocation13 + $0x3b4] ss:$8 sps:$4 sm:$0xff]   ;;  %v5515_v3 = vld [vmem:[#allocation13 + $0x3c4] ss:$8 sps:$4 sm:$0xff]  }
 0x89d   :  { %v5518_v15 = vld [vmem:[#allocation13 + $0x3d4] ss:$8 sps:$4 sm:$0xff]   ;;  %v5516_v17 = vld [vmem:[#allocation13 + $0x3d0] ss:$8 sps:$4 sm:$0xff]  }
 0x89e   :  { %4498 = vmatpush1.bf16.msra.mxu1 %v5432_v4  ;;  %v5521_v4 = vld [vmem:[#allocation13 + $0x3e4] ss:$8 sps:$4 sm:$0xff]  }
 0x89f   :  { %4499 = vmatprep.subr.bf16.mxu1 %v5437_v18  ;;  %v5519_v18 = vld [vmem:[#allocation13 + $0x3e0] ss:$8 sps:$4 sm:$0xff]  }
 0x8a2   :  { %4500 = vmatpush1.bf16.msra.mxu1 %v5435_v19  ;;  %v5524_v19 = vld [vmem:[#allocation13 + $0x3f4] ss:$8 sps:$4 sm:$0xff]  }
 0x8a3   :  { %4501 = vmatprep.subr.bf16.mxu1 %v5440_v5  ;;  %v5522_v5 = vld [vmem:[#allocation13 + $0x3f0] ss:$8 sps:$4 sm:$0xff]  }
 0x8a6   :  { %4502 = vmatpush1.bf16.msra.mxu1 %v5438_v59  ;;  %v4585_v59 = vld [vmem:[%s6348_s12] sm:$0x3]  ;;  %s5760_s12 = smov [#allocation14]  }
 0x8a7   :  { %4503 = vmatprep.subr.bf16.mxu1 %v5443_v20  ;;  %v4590_v20 = vrot.slane %v4585_v59, %v5961_v0  ;;  %s4624_s29 = sshll.u32 %s5760_s12, 4  ;;  %s4625_s29 = int_to_ptr.vmem [resolvable:$true] %s4624_s29 }
 0x8a8   :  { %s5711_s2 = scalar_lea.vmem %s4625_s29, 256  ;;  %p5716_p1 = scmp.lt.s32.totalorder %s4625_s29, %s4625_s29 }
 0x8a9   :  { %p5712_p0 = scmp.ne.s32.totalorder %s4625_s29, %s5711_s2  ;;  %p5717_p2 = scmp.lt.s32.totalorder %s5711_s2, %s5711_s2 }
 0x8aa   :  { %4504 = vmatpush1.bf16.msra.mxu1 %v5441_v21 }
 0x8ab   :  { %4505 = vmatprep.subr.bf16.mxu1 %v5446_v22  ;;  %v4594_v22 = vrot.slane %v4585_v59, %v5958_v63  ;;  %p5718_p3 = por %p5717_p2, %p5716_p1 }
 0x8ad   :  { %p5719_p4 = pnand %p5718_p3, %p5712_p0 }
 0x8ae   :  { %4506 = vmatpush1.bf16.msra.mxu1 %v5444_v23 }
 0x8af   :  { %4507 = vmatprep.subr.bf16.mxu1 %v5449_v35 }
 0x8b2   :  { %4508 = vmatpush1.bf16.msra.mxu1 %v5447_v24 }
 0x8b3   :  { %4509 = vmatprep.subr.bf16.mxu1 %v5452_v25 }
 0x8b6   :  { %4510 = vmatpush1.bf16.msra.mxu1 %v5450_v28 }
 0x8b7   :  { %4511 = vmatprep.subr.bf16.mxu1 %v5455_v29 }
 0x8ba   :  { %4512 = vmatpush1.bf16.msra.mxu1 %v5453_v41 }
 0x8bb   :  { %4513 = vmatprep.subr.bf16.mxu1 %v5458_v30 }
 0x8be   :  { %4514 = vmatpush1.bf16.msra.mxu1 %v5456_v42 }
 0x8bf   :  { %4515 = vmatprep.subr.bf16.mxu1 %v5461_v31 }
 0x8c2   :  { %4516 = vmatpush1.bf16.msra.mxu1 %v5459_v51 }
 0x8c3   :  { %4517 = vmatprep.subr.bf16.mxu1 %v5464_v52 }
 0x8c6   :  { %4518 = vmatpush1.bf16.msra.mxu1 %v5462_v45 }
 0x8c7   :  { %4519 = vmatprep.subr.bf16.mxu1 %v5467_v46 }
 0x8ca   :  { %4520 = vmatpush1.bf16.msra.mxu1 %v5465_v57 }
 0x8cb   :  { %4521 = vmatprep.subr.bf16.mxu1 %v5470_v36 }
 0x8ce   :  { %4522 = vmatpush1.bf16.msra.mxu1 %v5468_v37 }
 0x8cf   :  { %4523 = vmatprep.subr.bf16.mxu1 %v5473_v40 }
 0x8d2   :  { %4524 = vmatpush1.bf16.msra.mxu1 %v5471_v44 }
 0x8d3   :  { %4525 = vmatprep.subr.bf16.mxu1 %v5476_v47 }
 0x8d6   :  { %4526 = vmatpush1.bf16.msra.mxu1 %v5474_v58 }
 0x8d7   :  { %4538 = vmatprep.subr.bf16.mxu1 %v5479_v38 }
 0x8d9   :  { %4528 = vmatmul.mubr.bf16.vlgmr.msra.gmra.mrb[24].mxu1 %v6302_v13  ;;  %v5510_v13 = vld [vmem:[#allocation13 + $0x3b0] ss:$8 sps:$4 sm:$0xff]  }
 0x8da   :  { %4539 = vmatpush1.bf16.msra.mxu1 %v5477_v48  ;;  %4570 = vmatprep.mubr.bf16.mxu1 %v6306_v14  ;;  %v5513_v14 = vld [vmem:[#allocation13 + $0x3c0] ss:$8 sps:$4 sm:$0xff]  }
 0x8db   :  { %4540 = vmatprep.subr.bf16.mxu1 %v5482_v49 }
 0x8de   :  { %4541 = vmatpush1.bf16.msra.mxu1 %v5480_v32 }
 0x8df   :  { %4542 = vmatprep.subr.bf16.mxu1 %v5485_v50 }
 0x8e2   :  { %4543 = vmatpush1.bf16.msra.mxu1 %v5483_v43 }
 0x8e3   :  { %4544 = vmatprep.subr.bf16.mxu1 %v5488_v53 }
 0x8e6   :  { %4545 = vmatpush1.bf16.msra.mxu1 %v5486_v60 }
 0x8e7   :  { %4546 = vmatprep.subr.bf16.mxu1 %v5491_v62 }
 0x8ea   :  { %4547 = vmatpush1.bf16.msra.mxu1 %v5489_v61 }
 0x8eb   :  { %4548 = vmatprep.subr.bf16.mxu1 %v5494_v33 }
 0x8ee   :  { %4549 = vmatpush1.bf16.msra.mxu1 %v5492_v1 }
 0x8ef   :  { %4550 = vmatprep.subr.bf16.mxu1 %v5497_v26 }
 0x8f2   :  { %4551 = vmatpush1.bf16.msra.mxu1 %v5495_v55 }
 0x8f3   :  { %4552 = vmatprep.subr.bf16.mxu1 %v5500_v34 }
 0x8f6   :  { %4553 = vmatpush1.bf16.msra.mxu1 %v5498_v6 }
 0x8f7   :  { %4554 = vmatprep.subr.bf16.mxu1 %v5503_v8 }
 0x8fa   :  { %4555 = vmatpush1.bf16.msra.mxu1 %v5501_v9 }
 0x8fb   :  { %4556 = vmatprep.subr.bf16.mxu1 %v5506_v39 }
 0x8fe   :  { %4557 = vmatpush1.bf16.msra.mxu1 %v5504_v56 }
 0x8ff   :  { %4558 = vmatprep.subr.bf16.mxu1 %v5509_v11 }
 0x902   :  { %4559 = vmatpush1.bf16.msra.mxu1 %v5507_v2 }
 0x903   :  { %4560 = vmatprep.subr.bf16.mxu1 %v5512_v12 }
 0x906   :  { %4561 = vmatpush1.bf16.msra.mxu1 %v5510_v13 }
 0x907   :  { %4562 = vmatprep.subr.bf16.mxu1 %v5515_v3 }
 0x90a   :  { %4563 = vmatpush1.bf16.msra.mxu1 %v5513_v14 }
 0x90b   :  { %4564 = vmatprep.subr.bf16.mxu1 %v5518_v15 }
 0x90e   :  { %4565 = vmatpush1.bf16.msra.mxu1 %v5516_v17 }
 0x90f   :  { %4566 = vmatprep.subr.bf16.mxu1 %v5521_v4 }
 0x912   :  { %4567 = vmatpush1.bf16.msra.mxu1 %v5519_v18 }
 0x913   :  { %4568 = vmatprep.subr.bf16.mxu1 %v5524_v19 }
 0x916   :  { %4569 = vmatpush1.bf16.msra.mxu1 %v5522_v5 }
 0x919   :  { %4571 = vmatmul.mubr.bf16.vlgmr.msra.gmra.mrb[24].mxu1 %v6304_v16 }
 0x9ec   :  { %v4572_v21 = vpop.f32.mrb[24].mxu1 }
 0x9ed   :  { %v4581_v23 = vadd.f32 %v4572_v21, %v6220_v54  ;;  %v4574_v35 = vpop.f32.mrb[25].mxu1 }
 0x9ee   :  { %v4582_v24 = vadd.f32 %v4574_v35, %v6223_v7  ;;  %v4576_v25 = vpop.f32.mrb[26].mxu1 }
 0x9ef   :  { %v4597_v28 = vadd.f32 %v4590_v20, %v4581_v23  ;;  %v4583_v29 = vadd.f32 %v4576_v25, %v6226_v10  ;;  %v4578_v41 = vpop.f32.mrb[27].mxu1 }
 0x9f0   :  { %v4598_v16 = vadd.f32 %v4594_v22, %v4582_v24  ;;  %v4584_v30 = vadd.f32 %v4578_v41, %v6229_v27 }
 0x9f1   :  { %v4599_v42 = vadd.f32 %v4590_v20, %v4583_v29 }
 0x9f2   :  { %v5045_v0 = vpack.c.bf16 %v4598_v16, %v4597_v28  ;;  %v4600_v31 = vadd.f32 %v4594_v22, %v4584_v30 }
 0x9f4   :  { %4617 = vst [vmem:[#allocation14] sm:$0xff] %v5045_v0  ;;  %v5046_v63 = vpack.c.bf16 %v4600_v31, %v4599_v42 }
 0x9f6   :  { %4618 = vst [vmem:[#allocation14 + $0x8] sm:$0xff] %v5046_v63 }
 0x9f7   :  { %5722 = shalt.err (!%p5719_p4)
}
 0x9f8   :  { %s5723_s14 = scalar_lea.hbm %s6349_s13, 256 }
 0x9f9   :  { %p5724_p5 = scmp.ne.s32.totalorder %s6349_s13, %s5723_s14  ;;  %p5727_p6 = scmp.lt.u32.totalorder %s5723_s14, %s6349_s13 }
 0x9fb   :  { %p5729_p7 = pnand %p5727_p6, %p5724_p5 }
 0x9fd   :  { %5732 = shalt.err (!%p5729_p7)
}
 0x9fe   :  { %4630 = dma.vmem_to_hbm [thread:$0]  %s4625_s29, 256, %s6349_s13, [#allocation4], %s5751_s9, %s5751_s9, %s5752_s18  }
 0x9ff   :  { %5741 = dma.done.wait [#allocation4], 256  }
 0xa00   :  { %5742 = vsyncadd [#allocation4], 4294967040 }
 0xa01   :  { %4634 = vsyncpa [#allocation3], 1 }
 0xa02   :  { %4635 = vsyncpa [#allocation6], 1 }
 0xa03   :  { %4636 = vsyncpa [#allocation9], 1 }
 0xa04   :  { %4637 = vsyncpa [#allocation12], 1 }
 0xa05   :  { %4638 = vsyncpa [#allocation4], 1 }

</bundles_post_ra>
